<compile_context>
chip_gen: v6e
topology: v6e:2x2x1
jax: 0.10.0
libtpu: 0.0.40
codegen_flags: <defaults>
</compile_context>

<pallas_src>
import functools
import math

import numpy as np

import jax
import jax.numpy as jnp
from jax.experimental import pallas as pl
from jax.experimental.pallas import tpu as pltpu


# ---------------------------------------------------------------------------
# Pallas kernel: fused 3x3 conv (im2col, single MXU matmul per M-chunk)
#                + bias + ReLU + PixelShuffle epilogue.
#                Zero-padding is handled entirely in-kernel.
# ---------------------------------------------------------------------------
def _conv_relu_shuffle_kernel(x_ref, above_ref, below_ref, w_ref, b_ref,
                              o_ref, win_ref, col_ref, *,
                              r, th, wout, cin, grp, h, m_chunks):
    # x_ref     : (1, TH, W, Cin)   body rows of the (unpadded) input tile
    # above_ref : (1, 1,  W, Cin)   row just above the tile (clamped at top)
    # below_ref : (1, 1,  W, Cin)   row just below the tile (clamped at bot.)
    # w_ref     : (9*Cin, r*r*C)    bf16 weights, Cout ordered (i, j, c)
    # b_ref     : (1, r*r*C)        f32 bias, same channel order
    # o_ref     : (1, TH, r, W, r*C)
    # win_ref   : (TH+2, W+2, Cin)  bf16 zero-padded halo window (VMEM)
    # col_ref   : (TH, W, 9*Cin)    bf16 im2col patches (VMEM)
    ti = pl.program_id(1)
    wdt = win_ref.dtype

    # ---- assemble the zero-padded halo window (single cast to bf16) -------
    win_ref[:, 0:1, :] = jnp.zeros((th + 2, 1, cin), wdt)        # left pad
    win_ref[:, wout + 1:wout + 2, :] = jnp.zeros((th + 2, 1, cin), wdt)

    body = x_ref[0].astype(wdt)
    if h % th != 0:
        # The last row-tile sticks out past the image: zero the garbage rows
        # so they cannot contaminate valid rows through the conv halo.
        valid = h - ti * th
        rows = jax.lax.broadcasted_iota(jnp.int32, (th, wout, cin), 0)
        body = jnp.where(rows < valid, body, jnp.zeros_like(body))
    win_ref[1:th + 1, 1:wout + 1, :] = body

    @pl.when(ti == 0)                                            # top pad
    def _():
        win_ref[0:1, 1:wout + 1, :] = jnp.zeros((1, wout, cin), wdt)

    @pl.when(ti > 0)
    def _():
        win_ref[0:1, 1:wout + 1, :] = above_ref[0].astype(wdt)

    row_below = ti * th + th

    @pl.when(row_below < h)
    def _():
        win_ref[th + 1:th + 2, 1:wout + 1, :] = below_ref[0].astype(wdt)

    @pl.when(row_below >= h)                                     # bottom pad
    def _():
        win_ref[th + 1:th + 2, 1:wout + 1, :] = jnp.zeros((1, wout, cin), wdt)

    # ---- im2col: (TH, W, 9*Cin) patches so the conv is ONE matmul with
    #      K = 9*Cin (ideal for the 256-wide MXU when Cin=64, Cout=256) ------
    # TODO(synk): tap writes are Cin-wide (64 lanes for CARN); pairing taps
    # into 128-lane slabs would remove the masked partial stores on v5e.
    t = 0
    for dy in range(3):
        for dx in range(3):
            col_ref[:, :, t * cin:(t + 1) * cin] = win_ref[dy:dy + th,
                                                           dx:dx + wout, :]
            t += 1

    # ---- matmul + bias + ReLU + fused PixelShuffle store, chunked over M
    #      so the f32 accumulator stays small (bounded live ranges) ----------
    rpc = th // m_chunks                                  # rows per M-chunk

    def _chunk(ci, carry):
        rs = pl.multiple_of(ci * rpc, rpc)
        patches = col_ref[pl.ds(rs, rpc), :, :].reshape(rpc * wout, 9 * cin)
        acc = jnp.dot(patches, w_ref[...],
                      preferred_element_type=jnp.float32)
        acc = jnp.maximum(acc + b_ref[...], 0.0)          # bias + ReLU (f32)
        # Columns [i*r*C, (i+1)*r*C) hold (j, c)-ordered data for output row
        # offset i -> lane-dense r*C slabs (128 lanes for CARN C=64, r=2).
        # TODO(synk): for scale=3 (grp = 3*C) the slab is not a multiple of
        # 128 lanes -> masked stores; acceptable minor path.
        for i in range(r):
            slab = acc[:, i * grp:(i + 1) * grp].reshape(rpc, wout, grp)
            o_ref[0, pl.ds(rs, rpc), i, :, :] = slab.astype(o_ref.dtype)
        return carry

    jax.lax.fori_loop(0, m_chunks, _chunk, 0, unroll=(m_chunks <= 2))


# ---------------------------------------------------------------------------
# Per-chip VMEM budgeting / tile selection
# ---------------------------------------------------------------------------
@functools.lru_cache(maxsize=None)
def _vmem_capacity_bytes():
    try:
        cap = getattr(pltpu.get_tpu_info(), "vmem_capacity_bytes", None)
        if cap:
            return int(cap)
    except Exception:
        pass
    return 64 * 1024 * 1024            # conservative fallback (v7x per-core)


def _vmem_estimate_bytes(th, m_chunks, wpix, cin, cout, r, in_isz, out_isz):
    grp = cout // r
    body_blk = th * wpix * cin * in_isz          # body input block
    halo_blk = 2 * wpix * cin * in_isz           # two 1-row halo blocks
    o_blk = th * r * wpix * grp * out_isz        # output block
    w_blk = 9 * cin * cout * 2 + cout * 4        # weights (bf16) + bias (f32)
    win = (th + 2) * (wpix + 2) * cin * 2        # bf16 halo-window scratch
    col = th * wpix * 9 * cin * 2                # bf16 im2col scratch
    acc = (th // m_chunks) * wpix * cout * 4     # per-chunk f32 accumulator
    return 2 * (body_blk + halo_blk + o_blk + w_blk) + win + col + acc


def _choose_tiling(n, h, wpix, cin, cout, r, in_isz, out_isz, budget,
                   acc_budget=2 * 1024 * 1024):
    def pick_chunks(t):
        for d in range(1, t + 1):
            if t % d == 0 and (t // d) * wpix * cout * 4 <= acc_budget:
                return d
        return t

    th = min(64, h)
    if n == 1 and h >= 2:
        th = min(th, -(-h // 2))       # >=2 row tiles: keep both v7x TCs busy
    mc = pick_chunks(th)
    while th > 1 and _vmem_estimate_bytes(th, mc, wpix, cin, cout, r,
                                          in_isz, out_isz) > budget:
        th = max(1, th // 2)
        mc = pick_chunks(th)
    # Prefer a TH that divides H (avoids the masked remainder tile).
    for cand in range(th, max(th // 2, 1) - 1, -1):
        if h % cand == 0:
            th = cand
            mc = pick_chunks(th)
            break
    # TODO(synk): if even TH == 1 exceeds the budget (very wide images on
    # v7x's 64 MiB), tile along W as well instead of relying on the limit.
    return th, mc


# ---------------------------------------------------------------------------
# Wrapper: one upsample stage (Conv3x3 + ReLU + PixelShuffle(r))
# ---------------------------------------------------------------------------
def conv3x3_relu_pixelshuffle(x_nhwc, w, b, r, out_dtype=None):
    """x: (N,H,W,Cin); w: (3,3,Cin,r*r*C) torch-ordered Cout; b: (r*r*C,).

    Returns the upsampled activation (N, H*r, W*r, C) in `out_dtype`."""
    n, h, wpix, cin = x_nhwc.shape
    cout = w.shape[3]
    c = cout // (r * r)
    grp = r * c
    out_dtype = x_nhwc.dtype if out_dtype is None else jnp.dtype(out_dtype)
    in_isz = jnp.dtype(x_nhwc.dtype).itemsize
    out_isz = jnp.dtype(out_dtype).itemsize

    # Re-order output channels from PyTorch PixelShuffle order (c, i, j) to
    # (i, j, c) so the kernel stores contiguous lane slabs (fused shuffle).
    m = np.arange(cout)
    i_off = m // grp
    j_off = (m % grp) // c
    c_idx = m % c
    perm = c_idx * (r * r) + i_off * r + j_off
    w_mat = w[..., perm].reshape(9 * cin, cout).astype(jnp.bfloat16)
    b_row = b[perm].reshape(1, cout).astype(jnp.float32)

    cap = _vmem_capacity_bytes()
    budget = int(0.40 * cap)                     # per-chip tiling budget
    th, m_chunks = _choose_tiling(n, h, wpix, cin, cout, r,
                                  in_isz, out_isz, budget)
    nbh = pl.cdiv(h, th)
    est = _vmem_estimate_bytes(th, m_chunks, wpix, cin, cout, r,
                               in_isz, out_isz)
    # Scoped-VMEM limit = estimate + headroom; never the full physical VMEM
    # unless the fallback path forces it.
    vmem_limit = int(min(cap, max(est * 3 // 2 + (4 << 20), 32 << 20)))

    kernel = functools.partial(_conv_relu_shuffle_kernel, r=r, th=th,
                               wout=wpix, cin=cin, grp=grp, h=h,
                               m_chunks=m_chunks)

    flops = 2 * n * h * wpix * (9 * cin) * cout
    bytes_accessed = (n * h * wpix * cin * in_isz
                      + n * h * r * wpix * grp * out_isz
                      + 9 * cin * cout * 2 + cout * 4)

    out = pl.pallas_call(
        kernel,
        out_shape=jax.ShapeDtypeStruct((n, h, r, wpix, grp), out_dtype),
        grid=(n, nbh),
        in_specs=[
            # body rows of the (unpadded) tile
            pl.BlockSpec((1, th, wpix, cin),
                         lambda bi, ti: (bi, ti, 0, 0)),
            # 1-row halo above (clamped at the top edge; zeroed in-kernel)
            pl.BlockSpec((1, 1, wpix, cin),
                         lambda bi, ti: (bi, jnp.maximum(ti * th - 1, 0),
                                         0, 0)),
            # 1-row halo below (clamped at the bottom edge; zeroed in-kernel)
            pl.BlockSpec((1, 1, wpix, cin),
                         lambda bi, ti: (bi, jnp.minimum(ti * th + th, h - 1),
                                         0, 0)),
            pl.BlockSpec((9 * cin, cout), lambda bi, ti: (0, 0)),
            pl.BlockSpec((1, cout), lambda bi, ti: (0, 0)),
        ],
        out_specs=pl.BlockSpec((1, th, r, wpix, grp),
                               lambda bi, ti: (bi, ti, 0, 0, 0)),
        scratch_shapes=[
            pltpu.VMEM((th + 2, wpix + 2, cin), jnp.bfloat16),
            pltpu.VMEM((th, wpix, 9 * cin), jnp.bfloat16),
        ],
        compiler_params=pltpu.CompilerParams(
            dimension_semantics=("parallel", "parallel"),
            vmem_limit_bytes=vmem_limit),
        cost_estimate=pl.CostEstimate(flops=flops, transcendentals=0,
                                      bytes_accessed=bytes_accessed),
    )(x_nhwc, x_nhwc, x_nhwc, w_mat, b_row)

    # (N, H, r, W, r*C) -> (N, H*r, W*r, C): the row-major layouts coincide,
    # so the PixelShuffle itself is a zero-cost metadata reshape here.
    return out.reshape(n, h * r, wpix * r, c)


# ---------------------------------------------------------------------------
# Parameter init (deterministic, PyTorch-Conv2d-style uniform init)
# ---------------------------------------------------------------------------
def _init_conv(key, cin, cout):
    k1, k2 = jax.random.split(key)
    bound = 1.0 / math.sqrt(cin * 9)
    w = jax.random.uniform(k1, (3, 3, cin, cout), jnp.float32, -bound, bound)
    b = jax.random.uniform(k2, (cout,), jnp.float32, -bound, bound)
    return w, b


def init_upsample_block(key, n_channels, scale, multi_scale, group=1):
    # TODO(synk): grouped USConv2d (groups > 1) / width-slimming not
    # implemented; full-width groups=1 conv only (us=[True,True], width=1).
    assert group == 1

    def stages_for(k, s):
        if s in (2, 4, 8):
            n_stages = int(math.log(s, 2))
            return [_init_conv(kk, n_channels, 4 * n_channels)
                    for kk in jax.random.split(k, n_stages)]
        elif s == 3:
            return [_init_conv(k, n_channels, 9 * n_channels)]
        return []

    if multi_scale:
        k2, k3, k4 = jax.random.split(key, 3)
        return {"up2": stages_for(k2, 2),
                "up3": stages_for(k3, 3),
                "up4": stages_for(k4, 4)}
    return {"up": stages_for(key, scale)}


# ---------------------------------------------------------------------------
# Forward (matches UpsampleBlock.forward(x, scale)); Pallas + pure-JAX ref
# ---------------------------------------------------------------------------
def upsample_block_forward(params, x_nchw, scale, multi_scale):
    x = jnp.transpose(x_nchw, (0, 2, 3, 1))            # NCHW -> NHWC
    stages = (params[{2: "up2", 3: "up3", 4: "up4"}[scale]]
              if multi_scale else params["up"])
    r = 3 if scale == 3 else 2
    final_dtype = x_nchw.dtype
    for si, (w, b) in enumerate(stages):
        last = (si == len(stages) - 1)
        # bf16 inter-stage activations (the MXU consumes bf16 anyway); the
        # final stage writes the caller's dtype directly.
        x = conv3x3_relu_pixelshuffle(
            x, w, b, r, out_dtype=(final_dtype if last else jnp.bfloat16))
    return jnp.transpose(x, (0, 3, 1, 2))              # NHWC -> NCHW


def _pixel_shuffle_nhwc_ref(x, r):
    n, h, w, cc = x.shape
    c = cc // (r * r)
    x = x.reshape(n, h, w, c, r, r)                    # (c, i, j)
    x = jnp.transpose(x, (0, 1, 4, 2, 5, 3))           # (n, h, i, w, j, c)
    return x.reshape(n, h * r, w * r, c)


def _ref_stage(x_nhwc, w, b, r):
    y = jax.lax.conv_general_dilated(
        x_nhwc, w, window_strides=(1, 1), padding="SAME",
        dimension_numbers=("NHWC", "HWIO", "NHWC"))
    y = jnp.maximum(y + b[None, None, None, :], 0.0)
    return _pixel_shuffle_nhwc_ref(y, r)


def upsample_block_forward_ref(params, x_nchw, scale, multi_scale):
    x = jnp.transpose(x_nchw, (0, 2, 3, 1))
    stages = (params[{2: "up2", 3: "up3", 4: "up4"}[scale]]
              if multi_scale else params["up"])
    r = 3 if scale == 3 else 2
    for (w, b) in stages:
        x = _ref_stage(x, w, b, r)
    return jnp.transpose(x, (0, 3, 1, 2))


if __name__ == "__main__":
    key = jax.random.PRNGKey(0)
    kx, kp = jax.random.split(key)

    n_channels = 4
    x = jax.random.normal(kx, (2, n_channels, 16, 16), jnp.float32)  # NCHW

    params = init_upsample_block(kp, n_channels, scale=2, multi_scale=True)

    fwd = jax.jit(upsample_block_forward, static_argnums=(2, 3))

    outs = {}
    for scale in (2, 3, 4):
        outs[scale] = jax.block_until_ready(fwd(params, x, scale, True))

    assert outs[2].shape == (2, n_channels, 32, 32)
    assert outs[3].shape == (2, n_channels, 48, 48)
    assert outs[4].shape == (2, n_channels, 64, 64)

    # Numerical check against a pure-JAX (f32) reference.  The Pallas path
    # uses bf16 MXU inputs and bf16 inter-stage activations, hence the loose
    # tolerance (expected for multi-stage scales like 4).
    for scale in (2, 3, 4):
        ref = upsample_block_forward_ref(params, x, scale, True)
        err = float(jnp.max(jnp.abs(outs[scale] - ref)))
        assert err < 5e-2, f"scale={scale}: max abs err {err}"

    print("KERNEL_OK")
</pallas_src>

<mosaic_0001>
module attributes {stable_mosaic.version = 11 : i64} {
  func.func @_conv_relu_shuffle_kernel(%arg0: i32, %arg1: i32, %arg2: memref<1x16x16x4xf32, #tpu.memory_space<vmem>>, %arg3: memref<1x1x16x4xf32, #tpu.memory_space<vmem>>, %arg4: memref<1x1x16x4xf32, #tpu.memory_space<vmem>>, %arg5: memref<36x16xbf16, #tpu.memory_space<vmem>>, %arg6: memref<1x16xf32, #tpu.memory_space<vmem>>, %arg7: memref<1x16x2x16x8xf32, #tpu.memory_space<vmem>>, %arg8: memref<18x18x4xbf16, #tpu.memory_space<vmem>>, %arg9: memref<16x16x36xbf16, #tpu.memory_space<vmem>>) attributes {dimension_semantics = [#tpu.dimension_semantics<parallel>, #tpu.dimension_semantics<parallel>], iteration_bounds = array<i64: 2, 1>, scalar_prefetch = 0 : i64, scratch_operands = 2 : i64, tpu.core_type = #tpu.core_type<tc>, window_params = [{transform_indices = @transform_0, window_bounds = array<i64: 1, 16, 16, 4>}, {transform_indices = @transform_1, window_bounds = array<i64: 1, 1, 16, 4>}, {transform_indices = @transform_2, window_bounds = array<i64: 1, 1, 16, 4>}, {pipeline_mode = #tpu.pipeline_mode<synchronous>, transform_indices = @transform_3, window_bounds = array<i64: 36, 16>}, {pipeline_mode = #tpu.pipeline_mode<synchronous>, transform_indices = @transform_4, window_bounds = array<i64: 1, 16>}, {transform_indices = @transform_5, window_bounds = array<i64: 1, 16, 2, 16, 8>}]} {
    %cst = arith.constant 0.000000e+00 : bf16
    %0 = vector.broadcast %cst : bf16 to vector<18x1x4xbf16>
    %c0 = arith.constant 0 : index
    %c0_0 = arith.constant 0 : index
    %c0_1 = arith.constant 0 : index
    %1 = vector.load %arg8[%c0, %c0_0, %c0_1] : memref<18x18x4xbf16, #tpu.memory_space<vmem>>, vector<18x1x4xbf16>
    tpu.vector_store %arg8[%c0, %c0_0, %c0_1], %0 {strides = array<i32>} : memref<18x18x4xbf16, #tpu.memory_space<vmem>>, vector<18x1x4xbf16>,
    %cst_2 = arith.constant 0.000000e+00 : bf16
    %2 = vector.broadcast %cst_2 : bf16 to vector<18x1x4xbf16>
    %c0_3 = arith.constant 0 : index
    %c17 = arith.constant 17 : index
    %c0_4 = arith.constant 0 : index
    %3 = vector.load %arg8[%c0_3, %c17, %c0_4] : memref<18x18x4xbf16, #tpu.memory_space<vmem>>, vector<18x1x4xbf16>
    tpu.vector_store %arg8[%c0_3, %c17, %c0_4], %2 {strides = array<i32>} : memref<18x18x4xbf16, #tpu.memory_space<vmem>>, vector<18x1x4xbf16>,
    %c0_5 = arith.constant 0 : index
    %c0_6 = arith.constant 0 : index
    %c0_7 = arith.constant 0 : index
    %c0_8 = arith.constant 0 : index
    %4 = vector.load %arg2[%c0_5, %c0_6, %c0_7, %c0_8] : memref<1x16x16x4xf32, #tpu.memory_space<vmem>>, vector<1x16x16x4xf32>
    %5 = vector.shape_cast %4 : vector<1x16x16x4xf32> to vector<16x16x4xf32>
    %6 = arith.truncf %5 : vector<16x16x4xf32> to vector<16x16x4xbf16>
    %c1 = arith.constant 1 : index
    %c1_9 = arith.constant 1 : index
    %c0_10 = arith.constant 0 : index
    %7 = vector.load %arg8[%c1, %c1_9, %c0_10] : memref<18x18x4xbf16, #tpu.memory_space<vmem>>, vector<16x16x4xbf16>
    tpu.vector_store %arg8[%c1, %c1_9, %c0_10], %6 {strides = array<i32>} : memref<18x18x4xbf16, #tpu.memory_space<vmem>>, vector<16x16x4xbf16>,
    %c0_i32 = arith.constant 0 : i32
    %8 = arith.cmpi eq, %arg1, %c0_i32 : i32
    %9 = arith.extui %8 : i1 to i32
    %c0_i32_11 = arith.constant 0 : i32
    %10 = arith.cmpi ne, %9, %c0_i32_11 : i32
    scf.if %10 {
      %cst_82 = arith.constant 0.000000e+00 : bf16
      %64 = vector.broadcast %cst_82 : bf16 to vector<1x16x4xbf16>
      %c0_83 = arith.constant 0 : index
      %c1_84 = arith.constant 1 : index
      %c0_85 = arith.constant 0 : index
      %65 = vector.load %arg8[%c0_83, %c1_84, %c0_85] : memref<18x18x4xbf16, #tpu.memory_space<vmem>>, vector<1x16x4xbf16>
      tpu.vector_store %arg8[%c0_83, %c1_84, %c0_85], %64 {strides = array<i32>} : memref<18x18x4xbf16, #tpu.memory_space<vmem>>, vector<1x16x4xbf16>,
    } else {
    }
    %c0_i32_12 = arith.constant 0 : i32
    %11 = arith.cmpi sgt, %arg1, %c0_i32_12 : i32
    %12 = arith.extui %11 : i1 to i32
    %c0_i32_13 = arith.constant 0 : i32
    %13 = arith.cmpi ne, %12, %c0_i32_13 : i32
    scf.if %13 {
      %c0_82 = arith.constant 0 : index
      %c0_83 = arith.constant 0 : index
      %c0_84 = arith.constant 0 : index
      %c0_85 = arith.constant 0 : index
      %64 = vector.load %arg3[%c0_82, %c0_83, %c0_84, %c0_85] : memref<1x1x16x4xf32, #tpu.memory_space<vmem>>, vector<1x1x16x4xf32>
      %65 = vector.shape_cast %64 : vector<1x1x16x4xf32> to vector<1x16x4xf32>
      %66 = arith.truncf %65 : vector<1x16x4xf32> to vector<1x16x4xbf16>
      %c0_86 = arith.constant 0 : index
      %c1_87 = arith.constant 1 : index
      %c0_88 = arith.constant 0 : index
      %67 = vector.load %arg8[%c0_86, %c1_87, %c0_88] : memref<18x18x4xbf16, #tpu.memory_space<vmem>>, vector<1x16x4xbf16>
      tpu.vector_store %arg8[%c0_86, %c1_87, %c0_88], %66 {strides = array<i32>} : memref<18x18x4xbf16, #tpu.memory_space<vmem>>, vector<1x16x4xbf16>,
    } else {
    }
    %c16_i32 = arith.constant 16 : i32
    %14 = arith.muli %arg1, %c16_i32 : i32
    %c16_i32_14 = arith.constant 16 : i32
    %15 = arith.addi %14, %c16_i32_14 : i32
    %c16_i32_15 = arith.constant 16 : i32
    %16 = arith.cmpi slt, %15, %c16_i32_15 : i32
    %17 = arith.extui %16 : i1 to i32
    %c0_i32_16 = arith.constant 0 : i32
    %18 = arith.cmpi ne, %17, %c0_i32_16 : i32
    scf.if %18 {
      %c0_82 = arith.constant 0 : index
      %c0_83 = arith.constant 0 : index
      %c0_84 = arith.constant 0 : index
      %c0_85 = arith.constant 0 : index
      %64 = vector.load %arg4[%c0_82, %c0_83, %c0_84, %c0_85] : memref<1x1x16x4xf32, #tpu.memory_space<vmem>>, vector<1x1x16x4xf32>
      %65 = vector.shape_cast %64 : vector<1x1x16x4xf32> to vector<1x16x4xf32>
      %66 = arith.truncf %65 : vector<1x16x4xf32> to vector<1x16x4xbf16>
      %c17_86 = arith.constant 17 : index
      %c1_87 = arith.constant 1 : index
      %c0_88 = arith.constant 0 : index
      %67 = vector.load %arg8[%c17_86, %c1_87, %c0_88] : memref<18x18x4xbf16, #tpu.memory_space<vmem>>, vector<1x16x4xbf16>
      tpu.vector_store %arg8[%c17_86, %c1_87, %c0_88], %66 {strides = array<i32>} : memref<18x18x4xbf16, #tpu.memory_space<vmem>>, vector<1x16x4xbf16>,
    } else {
    }
    %c16_i32_17 = arith.constant 16 : i32
    %19 = arith.cmpi sge, %15, %c16_i32_17 : i32
    %20 = arith.extui %19 : i1 to i32
    %c0_i32_18 = arith.constant 0 : i32
    %21 = arith.cmpi ne, %20, %c0_i32_18 : i32
    scf.if %21 {
      %cst_82 = arith.constant 0.000000e+00 : bf16
      %64 = vector.broadcast %cst_82 : bf16 to vector<1x16x4xbf16>
      %c17_83 = arith.constant 17 : index
      %c1_84 = arith.constant 1 : index
      %c0_85 = arith.constant 0 : index
      %65 = vector.load %arg8[%c17_83, %c1_84, %c0_85] : memref<18x18x4xbf16, #tpu.memory_space<vmem>>, vector<1x16x4xbf16>
      tpu.vector_store %arg8[%c17_83, %c1_84, %c0_85], %64 {strides = array<i32>} : memref<18x18x4xbf16, #tpu.memory_space<vmem>>, vector<1x16x4xbf16>,
    } else {
    }
    %c0_19 = arith.constant 0 : index
    %c0_20 = arith.constant 0 : index
    %c0_21 = arith.constant 0 : index
    %22 = vector.load %arg8[%c0_19, %c0_20, %c0_21] : memref<18x18x4xbf16, #tpu.memory_space<vmem>>, vector<16x16x4xbf16>
    %c0_22 = arith.constant 0 : index
    %c0_23 = arith.constant 0 : index
    %c0_24 = arith.constant 0 : index
    %23 = vector.load %arg9[%c0_22, %c0_23, %c0_24] : memref<16x16x36xbf16, #tpu.memory_space<vmem>>, vector<16x16x4xbf16>
    tpu.vector_store %arg9[%c0_22, %c0_23, %c0_24], %22 {strides = array<i32>} : memref<16x16x36xbf16, #tpu.memory_space<vmem>>, vector<16x16x4xbf16>,
    %c0_25 = arith.constant 0 : index
    %c1_26 = arith.constant 1 : index
    %c0_27 = arith.constant 0 : index
    %24 = vector.load %arg8[%c0_25, %c1_26, %c0_27] : memref<18x18x4xbf16, #tpu.memory_space<vmem>>, vector<16x16x4xbf16>
    %c0_28 = arith.constant 0 : index
    %c0_29 = arith.constant 0 : index
    %c4 = arith.constant 4 : index
    %25 = vector.load %arg9[%c0_28, %c0_29, %c4] : memref<16x16x36xbf16, #tpu.memory_space<vmem>>, vector<16x16x4xbf16>
    tpu.vector_store %arg9[%c0_28, %c0_29, %c4], %24 {strides = array<i32>} : memref<16x16x36xbf16, #tpu.memory_space<vmem>>, vector<16x16x4xbf16>,
    %c0_30 = arith.constant 0 : index
    %c2 = arith.constant 2 : index
    %c0_31 = arith.constant 0 : index
    %26 = vector.load %arg8[%c0_30, %c2, %c0_31] : memref<18x18x4xbf16, #tpu.memory_space<vmem>>, vector<16x16x4xbf16>
    %c0_32 = arith.constant 0 : index
    %c0_33 = arith.constant 0 : index
    %c8 = arith.constant 8 : index
    %27 = vector.load %arg9[%c0_32, %c0_33, %c8] : memref<16x16x36xbf16, #tpu.memory_space<vmem>>, vector<16x16x4xbf16>
    tpu.vector_store %arg9[%c0_32, %c0_33, %c8], %26 {strides = array<i32>} : memref<16x16x36xbf16, #tpu.memory_space<vmem>>, vector<16x16x4xbf16>,
    %c1_34 = arith.constant 1 : index
    %c0_35 = arith.constant 0 : index
    %c0_36 = arith.constant 0 : index
    %28 = vector.load %arg8[%c1_34, %c0_35, %c0_36] : memref<18x18x4xbf16, #tpu.memory_space<vmem>>, vector<16x16x4xbf16>
    %c0_37 = arith.constant 0 : index
    %c0_38 = arith.constant 0 : index
    %c12 = arith.constant 12 : index
    %29 = vector.load %arg9[%c0_37, %c0_38, %c12] : memref<16x16x36xbf16, #tpu.memory_space<vmem>>, vector<16x16x4xbf16>
    tpu.vector_store %arg9[%c0_37, %c0_38, %c12], %28 {strides = array<i32>} : memref<16x16x36xbf16, #tpu.memory_space<vmem>>, vector<16x16x4xbf16>,
    %c1_39 = arith.constant 1 : index
    %c1_40 = arith.constant 1 : index
    %c0_41 = arith.constant 0 : index
    %30 = vector.load %arg8[%c1_39, %c1_40, %c0_41] : memref<18x18x4xbf16, #tpu.memory_space<vmem>>, vector<16x16x4xbf16>
    %c0_42 = arith.constant 0 : index
    %c0_43 = arith.constant 0 : index
    %c16 = arith.constant 16 : index
    %31 = vector.load %arg9[%c0_42, %c0_43, %c16] : memref<16x16x36xbf16, #tpu.memory_space<vmem>>, vector<16x16x4xbf16>
    tpu.vector_store %arg9[%c0_42, %c0_43, %c16], %30 {strides = array<i32>} : memref<16x16x36xbf16, #tpu.memory_space<vmem>>, vector<16x16x4xbf16>,
    %c1_44 = arith.constant 1 : index
    %c2_45 = arith.constant 2 : index
    %c0_46 = arith.constant 0 : index
    %32 = vector.load %arg8[%c1_44, %c2_45, %c0_46] : memref<18x18x4xbf16, #tpu.memory_space<vmem>>, vector<16x16x4xbf16>
    %c0_47 = arith.constant 0 : index
    %c0_48 = arith.constant 0 : index
    %c20 = arith.constant 20 : index
    %33 = vector.load %arg9[%c0_47, %c0_48, %c20] : memref<16x16x36xbf16, #tpu.memory_space<vmem>>, vector<16x16x4xbf16>
    tpu.vector_store %arg9[%c0_47, %c0_48, %c20], %32 {strides = array<i32>} : memref<16x16x36xbf16, #tpu.memory_space<vmem>>, vector<16x16x4xbf16>,
    %c2_49 = arith.constant 2 : index
    %c0_50 = arith.constant 0 : index
    %c0_51 = arith.constant 0 : index
    %34 = vector.load %arg8[%c2_49, %c0_50, %c0_51] : memref<18x18x4xbf16, #tpu.memory_space<vmem>>, vector<16x16x4xbf16>
    %c0_52 = arith.constant 0 : index
    %c0_53 = arith.constant 0 : index
    %c24 = arith.constant 24 : index
    %35 = vector.load %arg9[%c0_52, %c0_53, %c24] : memref<16x16x36xbf16, #tpu.memory_space<vmem>>, vector<16x16x4xbf16>
    tpu.vector_store %arg9[%c0_52, %c0_53, %c24], %34 {strides = array<i32>} : memref<16x16x36xbf16, #tpu.memory_space<vmem>>, vector<16x16x4xbf16>,
    %c2_54 = arith.constant 2 : index
    %c1_55 = arith.constant 1 : index
    %c0_56 = arith.constant 0 : index
    %36 = vector.load %arg8[%c2_54, %c1_55, %c0_56] : memref<18x18x4xbf16, #tpu.memory_space<vmem>>, vector<16x16x4xbf16>
    %c0_57 = arith.constant 0 : index
    %c0_58 = arith.constant 0 : index
    %c28 = arith.constant 28 : index
    %37 = vector.load %arg9[%c0_57, %c0_58, %c28] : memref<16x16x36xbf16, #tpu.memory_space<vmem>>, vector<16x16x4xbf16>
    tpu.vector_store %arg9[%c0_57, %c0_58, %c28], %36 {strides = array<i32>} : memref<16x16x36xbf16, #tpu.memory_space<vmem>>, vector<16x16x4xbf16>,
    %c2_59 = arith.constant 2 : index
    %c2_60 = arith.constant 2 : index
    %c0_61 = arith.constant 0 : index
    %38 = vector.load %arg8[%c2_59, %c2_60, %c0_61] : memref<18x18x4xbf16, #tpu.memory_space<vmem>>, vector<16x16x4xbf16>
    %c0_62 = arith.constant 0 : index
    %c0_63 = arith.constant 0 : index
    %c32 = arith.constant 32 : index
    %39 = vector.load %arg9[%c0_62, %c0_63, %c32] : memref<16x16x36xbf16, #tpu.memory_space<vmem>>, vector<16x16x4xbf16>
    tpu.vector_store %arg9[%c0_62, %c0_63, %c32], %38 {strides = array<i32>} : memref<16x16x36xbf16, #tpu.memory_space<vmem>>, vector<16x16x4xbf16>,
    %c0_i32_64 = arith.constant 0 : i32
    %c16_i32_65 = arith.constant 16 : i32
    %40 = arith.muli %c0_i32_64, %c16_i32_65 : i32
    %41 = tpu.assume_multiple %40, 16 : i32
    %42 = arith.index_cast %41 : i32 to index
    %c0_66 = arith.constant 0 : index
    %c0_67 = arith.constant 0 : index
    %43 = vector.load %arg9[%42, %c0_66, %c0_67] : memref<16x16x36xbf16, #tpu.memory_space<vmem>>, vector<16x16x36xbf16>
    %44 = vector.shape_cast %43 : vector<16x16x36xbf16> to vector<256x36xbf16>
    %c0_68 = arith.constant 0 : index
    %c0_69 = arith.constant 0 : index
    %45 = vector.load %arg5[%c0_68, %c0_69] : memref<36x16xbf16, #tpu.memory_space<vmem>>, vector<36x16xbf16>
    %cst_70 = arith.constant dense<0.000000e+00> : vector<256x16xf32>
    %46 = tpu.matmul %44, %45, %cst_70 {dimension_numbers = #tpu.dot_dimension_numbers<[1], [0], [0], [1], [0, 0, 1, 1], [], []>} : vector<256x36xbf16>, vector<36x16xbf16>, vector<256x16xf32> -> vector<256x16xf32>
    %c0_71 = arith.constant 0 : index
    %c0_72 = arith.constant 0 : index
    %47 = vector.load %arg6[%c0_71, %c0_72] : memref<1x16xf32, #tpu.memory_space<vmem>>, vector<1x16xf32>
    %48 = vector.broadcast %47 : vector<1x16xf32> to vector<256x16xf32>
    %49 = arith.addf %46, %48 : vector<256x16xf32>
    %cst_73 = arith.constant 0.000000e+00 : f32
    %50 = vector.broadcast %cst_73 : f32 to vector<256x16xf32>
    %51 = arith.maximumf %49, %50 : vector<256x16xf32>
    %52 = vector.extract_strided_slice %51 {offsets = [0, 0], sizes = [256, 8], strides = [1, 1]} : vector<256x16xf32> to vector<256x8xf32>
    %53 = vector.shape_cast %52 : vector<256x8xf32> to vector<16x16x8xf32>
    %c0_74 = arith.constant 0 : index
    %54 = arith.index_cast %41 : i32 to index
    %c0_75 = arith.constant 0 : index
    %c0_76 = arith.constant 0 : index
    %c0_77 = arith.constant 0 : index
    %55 = vector.load %arg7[%c0_74, %54, %c0_75, %c0_76, %c0_77] : memref<1x16x2x16x8xf32, #tpu.memory_space<vmem>>, vector<1x16x1x16x8xf32>
    %56 = vector.shape_cast %55 : vector<1x16x1x16x8xf32> to vector<16x16x8xf32>
    %57 = vector.shape_cast %53 : vector<16x16x8xf32> to vector<1x16x1x16x8xf32>
    tpu.vector_store %arg7[%c0_74, %54, %c0_75, %c0_76, %c0_77], %57 {strides = array<i32>} : memref<1x16x2x16x8xf32, #tpu.memory_space<vmem>>, vector<1x16x1x16x8xf32>,
    %58 = vector.extract_strided_slice %51 {offsets = [0, 8], sizes = [256, 8], strides = [1, 1]} : vector<256x16xf32> to vector<256x8xf32>
    %59 = vector.shape_cast %58 : vector<256x8xf32> to vector<16x16x8xf32>
    %c0_78 = arith.constant 0 : index
    %60 = arith.index_cast %41 : i32 to index
    %c1_79 = arith.constant 1 : index
    %c0_80 = arith.constant 0 : index
    %c0_81 = arith.constant 0 : index
    %61 = vector.load %arg7[%c0_78, %60, %c1_79, %c0_80, %c0_81] : memref<1x16x2x16x8xf32, #tpu.memory_space<vmem>>, vector<1x16x1x16x8xf32>
    %62 = vector.shape_cast %61 : vector<1x16x1x16x8xf32> to vector<16x16x8xf32>
    %63 = vector.shape_cast %59 : vector<16x16x8xf32> to vector<1x16x1x16x8xf32>
    tpu.vector_store %arg7[%c0_78, %60, %c1_79, %c0_80, %c0_81], %63 {strides = array<i32>} : memref<1x16x2x16x8xf32, #tpu.memory_space<vmem>>, vector<1x16x1x16x8xf32>,
    %c1_i32 = arith.constant 1 : i32
    return
  }
  func.func @transform_0(%arg0: i32, %arg1: i32) -> (i32, i32, i32, i32) {
    %c0_i32 = arith.constant 0 : i32
    %c0_i32_0 = arith.constant 0 : i32
    %c0_i32_1 = arith.constant 0 : i32
    return %arg0, %arg1, %c0_i32, %c0_i32_0 : i32, i32, i32, i32
  }
  func.func @transform_1(%arg0: i32, %arg1: i32) -> (i32, i32, i32, i32) {
    %c16_i32 = arith.constant 16 : i32
    %0 = arith.muli %arg1, %c16_i32 : i32
    %c1_i32 = arith.constant 1 : i32
    %1 = arith.subi %0, %c1_i32 : i32
    %c0_i32 = arith.constant 0 : i32
    %2 = arith.maxsi %1, %c0_i32 : i32
    %c0_i32_0 = arith.constant 0 : i32
    %c0_i32_1 = arith.constant 0 : i32
    %c0_i32_2 = arith.constant 0 : i32
    return %arg0, %2, %c0_i32_0, %c0_i32_1 : i32, i32, i32, i32
  }
  func.func @transform_2(%arg0: i32, %arg1: i32) -> (i32, i32, i32, i32) {
    %c16_i32 = arith.constant 16 : i32
    %0 = arith.muli %arg1, %c16_i32 : i32
    %c16_i32_0 = arith.constant 16 : i32
    %1 = arith.addi %0, %c16_i32_0 : i32
    %c15_i32 = arith.constant 15 : i32
    %2 = arith.minsi %1, %c15_i32 : i32
    %c0_i32 = arith.constant 0 : i32
    %c0_i32_1 = arith.constant 0 : i32
    %c0_i32_2 = arith.constant 0 : i32
    return %arg0, %2, %c0_i32, %c0_i32_1 : i32, i32, i32, i32
  }
  func.func @transform_3(%arg0: i32, %arg1: i32) -> (i32, i32) {
    %c0_i32 = arith.constant 0 : i32
    %c0_i32_0 = arith.constant 0 : i32
    %c0_i32_1 = arith.constant 0 : i32
    return %c0_i32, %c0_i32_0 : i32, i32
  }
  func.func @transform_4(%arg0: i32, %arg1: i32) -> (i32, i32) {
    %c0_i32 = arith.constant 0 : i32
    %c0_i32_0 = arith.constant 0 : i32
    %c0_i32_1 = arith.constant 0 : i32
    return %c0_i32, %c0_i32_0 : i32, i32
  }
  func.func @transform_5(%arg0: i32, %arg1: i32) -> (i32, i32, i32, i32, i32) {
    %c0_i32 = arith.constant 0 : i32
    %c0_i32_0 = arith.constant 0 : i32
    %c0_i32_1 = arith.constant 0 : i32
    %c0_i32_2 = arith.constant 0 : i32
    return %arg0, %arg1, %c0_i32, %c0_i32_0, %c0_i32_1 : i32, i32, i32, i32, i32
  }
}

</mosaic_0001>

<bundles_post_ra>
// kernel: upsample_block_forward.1
= control target key start
LH: loop header
LB: loop body
LE: loop exit
PB: predicated region body
PF: predicated region fallthrough
CT: control target
= control target key end

     0   :  { %s5443_s18 = smov 0   ;;  %s5445_s19 = smov 0   ;;  %s7130_s0 = inlined_call_operand.vmem [shape: f32[2,16,16,4], index: 0, kind: input, shape index: {}, may-alias: {0,1,2}]   ;;  %s7131_s1 = inlined_call_operand.vmem [shape: f32[2,16,16,4], index: 1, kind: input, shape index: {}, may-alias: {0,1,2}]   ;;  %s7132_s2 = inlined_call_operand.vmem [shape: f32[2,16,16,4], index: 2, kind: input, shape index: {}, may-alias: {0,1,2}]   ;;  %s7133_s3 = inlined_call_operand.vmem [shape: bf16[36,16], index: 3, kind: input, shape index: {}]   ;;  %s7134_s4 = inlined_call_operand.vmem [shape: f32[1,16], index: 4, kind: input, shape index: {}]   ;;  %s7135_s5 = inlined_call_operand.vmem [shape: f32[2,16,2,16,8], index: 5, kind: output, shape index: {}]  }
   0x1   :  { %s5447_s20 = smov 0  }
   0x2 LB: > { %s27_s1 = sadd.s32 1, %s5397_s19  ;;  %p5056_p0 = scmp.ge.s32.totalorder %s5401_s20, 1  ;;  %s5401_s20 = sphi %s5447_s20, %s15_s20   ;;  %s5397_s19 = sphi %s5445_s19, %s7149_s19   ;;  %s5393_s18 = sphi %s5443_s18, %s7148_s18  }
   0x3   : > { %p29_p1 = scmp.ge.s32.totalorder %s27_s1, 2  ;;  %p273_p2 = scmp.lt.s32.totalorder %s5401_s20, 3 }
   0x5   : > { %s7151_s1 = smov (%p29_p1, %s27_s1), 0  ;;  %p274_p3 = pnand %p5056_p0, %p273_p2 }
   0x6   : > { %p338_p4 = scmp.lt.s32.totalorder (!%p274_p3), %s5393_s18, 1  ;;  %s5404_s24 = smov (!%p274_p3), 4  }
   0x7   : > { %277 = sbr.rel (%p274_p3) target bundleno = 1092 (0x444), region = 40  ;;  %s5405_s25 = smov (!%p274_p3), 8  }
   0x8   : > { %s5406_s26 = smov (!%p274_p3), 12   ;;  %s5407_s27 = smov (!%p274_p3), 16  }
   0x9   : > { %s5408_s28 = smov (!%p274_p3), 20   ;;  %s5409_s29 = smov (!%p274_p3), 24  }
   0xa   : > { %s5410_s30 = smov (!%p274_p3), 28   ;;  %s5411_s10 = smov (!%p274_p3), 32  }
   0xc   : > { %vm394_vm0 = vcmask 24576   ;;  %vm395_vm1 = vsmask.f32 256  ;;  %vm451_vm2 = vsmask.f32 7938  ;;  %vm958_vm3 = vcmask 27648  }
   0xd   : > { %vm5462_vm4 = vmand %vm394_vm0, %vm395_vm1  ;;  %v453_v1 = vld [vmem:[#allocation2 + $0x8] sm:$0x1]  ;;  %v5403_v3 = vmov 0   ;;  %v397_v4 = vld [vmem:[#allocation2] sm:$0x1]  ;;  %s7153_s18 = smov (!%p338_p4, %s5393_s18), 1 }
   0xe   : > { %vm5467_vm5 = vmand %vm394_vm0, %vm451_vm2  ;;  %1080 = vst.msk [vmem:[#allocation2 + $0x4] sm:$0xf] %vm958_vm3, %v5403_v3  ;;  %v398_v6 = vsel %vm5462_vm4, 0, %v397_v4  ;;  %v400_v7 = vld [vmem:[#allocation2 + $0xc] sm:$0x1]  ;;  %s5219_s2 = sshll.u32 %s7153_s18, 8 }
   0xf   : > { %1173 = vst.msk [vmem:[#allocation2 + $0xd0] sm:$0xf] %vm958_vm3, %v5403_v3  ;;  %v454_v5 = vsel %vm5467_vm5, 0, %v453_v1  ;;  %399 = vst [vmem:[#allocation2] sm:$0x1] %v398_v6  ;;  %v401_v8 = vsel %vm5462_vm4, 0, %v400_v7  ;;  %s5499_s23 = scalar_lea.vmem %s7130_s0, %s5219_s2 }
  0x10   : > { %455 = vst [vmem:[#allocation2 + $0x8] sm:$0x1] %v454_v5  ;;  %v403_v9 = vld [vmem:[#allocation2 + $0x18] sm:$0x1]  ;;  %v456_v10 = vld [vmem:[#allocation2 + $0x14] sm:$0x1]  ;;  %vm5492_vm6 = vmand %vm958_vm3, %vm451_vm2 }
  0x11   : > { %402 = vst [vmem:[#allocation2 + $0xc] sm:$0x1] %v401_v8  ;;  %v404_v11 = vsel %vm5462_vm4, 0, %v403_v9  ;;  %v457_v12 = vsel %vm5467_vm5, 0, %v456_v10  ;;  %v406_v13 = vld [vmem:[#allocation2 + $0x24] sm:$0x1] }
  0x12   : > { %v459_v14 = vld [vmem:[#allocation2 + $0x20] sm:$0x1]  ;;  %405 = vst [vmem:[#allocation2 + $0x18] sm:$0x1] %v404_v11  ;;  %458 = vst [vmem:[#allocation2 + $0x14] sm:$0x1] %v457_v12 }
  0x13   : > { %v407_v15 = vsel %vm5462_vm4, 0, %v406_v13  ;;  %v460_v16 = vsel %vm5467_vm5, 0, %v459_v14  ;;  %v409_v17 = vld [vmem:[#allocation2 + $0x30] sm:$0x1]  ;;  %v462_v20 = vld [vmem:[#allocation2 + $0x2c] sm:$0x1] }
  0x14   : > { %408 = vst [vmem:[#allocation2 + $0x24] sm:$0x1] %v407_v15  ;;  %461 = vst [vmem:[#allocation2 + $0x20] sm:$0x1] %v460_v16  ;;  %v410_v19 = vsel %vm5462_vm4, 0, %v409_v17  ;;  %v507_v22 = vld [vmem:[%s5499_s23] sm:$0xff] }
  0x15   : > { %v412_v21 = vld [vmem:[#allocation2 + $0x3c] sm:$0x1]  ;;  %v508_v23 = vld [vmem:[%s5499_s23 + $0x8] sm:$0xff]  ;;  %v509_v24 = vld [vmem:[%s5499_s23 + $0x10] sm:$0xff]  ;;  %411 = vst [vmem:[#allocation2 + $0x30] sm:$0x1] %v410_v19  ;;  %v5224_v28 = vpack.c.bf16 %v507_v22, %v507_v22 }
  0x16   : > { %v463_v25 = vsel %vm5467_vm5, 0, %v462_v20  ;;  %v413_v26 = vsel %vm5462_vm4, 0, %v412_v21  ;;  %v1242_v27 = vld [vmem:[#allocation2 + $0x4] sm:$0xf]  ;;  %v5225_v29 = vpack.c.bf16 %v508_v23, %v508_v23  ;;  %vm635_vm7 = vsmask.f32 4368 }
  0x17   : > { %v510_v30 = vld [vmem:[%s5499_s23 + $0x18] sm:$0xff]  ;;  %v5226_v31 = vpack.c.bf16 %v509_v24, %v509_v24  ;;  %v511_v32 = vld [vmem:[%s5499_s23 + $0x20] sm:$0xff]  ;;  %464 = vst [vmem:[#allocation2 + $0x2c] sm:$0x1] %v463_v25  ;;  %414 = vst [vmem:[#allocation2 + $0x3c] sm:$0x1] %v413_v26 }
  0x18   : > { %v1302_v33 = vshll.u32 %v1242_v27, 16  ;;  %v1306_v34 = vshrl.u32 %v1242_v27, 16  ;;  %v5227_v35 = vpack.c.bf16 %v510_v30, %v510_v30  ;;  %v512_v36 = vld [vmem:[%s5499_s23 + $0x28] sm:$0xff]  ;;  %v5228_v37 = vpack.c.bf16 %v511_v32, %v511_v32  ;;  %v513_v38 = vld [vmem:[%s5499_s23 + $0x30] sm:$0xff]  ;;  %v1077_v40 = vld [vmem:[#allocation2] sm:$0xf] }
  0x19   : > { %v1081_v39 = vld [vmem:[#allocation2 + $0x8] sm:$0x1]  ;;  %vm1289_vm8 = vsmask.f32 3328  ;;  %vm1290_vm9 = vsmask.f32 7440  ;;  %v5514_v43 = vpack.c.bf16 %v512_v36, %v512_v36  ;;  %v5516_v44 = vpack.c.bf16 %v513_v38, %v513_v38  ;;  %vm5527_vm10 = vmor %vm395_vm1, %vm635_vm7 }
  0x1a   : > { %v638_v41 = vshrl.u32 %v5224_v28, 16  ;;  %v641_v42 = vshll.u32 %v5224_v28, 16  ;;  %v1082_v45 = vsel %vm5462_vm4, 0, %v1081_v39  ;;  %v5520_v46 = vrot.slane %v1302_v33, 5  ;;  %v960_v54 = vld [vmem:[#allocation2 + $0xc] sm:$0xf]  ;;  %vm5548_vm11 = vmor %vm1289_vm8, %vm1290_vm9 }
  0x1b   : > { %v1308_v47 = vrot.slane %v1306_v34, 4  ;;  %v1078_v48 = vsel %vm5492_vm6, 0, %v1077_v40  ;;  %1083 = vst [vmem:[#allocation2 + $0x8] sm:$0x1] %v1082_v45  ;;  %v646_v50 = vshrl.u32 %v5225_v29, 16  ;;  %v649_v51 = vshll.u32 %v5225_v29, 16 }
  0x1c   : > { %1079 = vst [vmem:[#allocation2] sm:$0xf] %v1078_v48  ;;  %v640_v49 = vrot.slane %v638_v41, 7  ;;  %v655_v52 = vshrl.u32 %v5226_v31, 16  ;;  %v658_v55 = vshll.u32 %v5226_v31, 16  ;;  %v663_v56 = vshrl.u32 %v5227_v35, 16 }
  0x1d   : > { %v1309_v53 = vor.u32 %v1308_v47, %v5520_v46  ;;  %v666_v57 = vshll.u32 %v5227_v35, 16  ;;  %v648_v60 = vrot.slane %v646_v50, 7  ;;  %v968_v3 = vld [vmem:[#allocation2 + $0x18] sm:$0xf]  ;;  %v672_v4 = vshrl.u32 %v5228_v37, 16  ;;  %s5223_s15 = sshll.u32 %s7153_s18, 9 }
  0x1e   : > { %v643_v58 = vor.u32 %v641_v42, %v640_v49  ;;  %v644_v59 = vrot.slane %v640_v49, 4  ;;  %v657_v61 = vrot.slane %v655_v52, 7  ;;  %v665_v1 = vrot.slane %v663_v56, 7  ;;  %v965_v10 = vld [vmem:[#allocation2 + $0x14] sm:$0x1]  ;;  %v514_v15 = vld [vmem:[%s5499_s23 + $0x38] sm:$0xff]  ;;  %s6839_s2 = scalar_lea.vmem %s7135_s5, %s5223_s15 }
  0x1f   : > { %v1310_v62 = vrot.slane %v1309_v53, 4  ;;  %v675_v5 = vshll.u32 %v5228_v37, 16  ;;  %v651_v6 = vor.u32 %v649_v51, %v648_v60  ;;  %v653_v12 = vrot.slane %v648_v60, 4  ;;  %v975_v20 = vld [vmem:[#allocation2 + $0x24] sm:$0xf]  ;;  %s5412_s18 = smov 120  }
  0x20   : > { %v961_v7 = vsel %vm5492_vm6, %v643_v58, %v960_v54  ;;  %v660_v8 = vor.u32 %v658_v55, %v657_v61  ;;  %v661_v9 = vrot.slane %v657_v61, 4  ;;  %v668_v11 = vor.u32 %v666_v57, %v665_v1  ;;  %v972_v22 = vld [vmem:[#allocation2 + $0x20] sm:$0x1]  ;;  %v979_v49 = vld [vmem:[#allocation2 + $0x2c] sm:$0x1] }
  0x21   : > { %962 = vst [vmem:[#allocation2 + $0xc] sm:$0xf] %v961_v7  ;;  %v674_v13 = vrot.slane %v672_v4, 7  ;;  %v680_v14 = vshrl.u32 %v5514_v43, 16  ;;  %v652_v16 = vsel %vm5527_vm10, %v644_v59, %v651_v6  ;;  %v683_v19 = vshll.u32 %v5514_v43, 16  ;;  %v515_v42 = vld [vmem:[%s5499_s23 + $0x40] sm:$0xff] }
  0x22   : > { %v969_v17 = vsel %vm5492_vm6, %v660_v8, %v968_v3  ;;  %v670_v21 = vrot.slane %v665_v1, 4  ;;  %v1243_v23 = vld [vmem:[#allocation2 + $0x8] sm:$0x1]  ;;  %964 = vst.msk [vmem:[#allocation2 + $0x10] sm:$0xf] %vm958_vm3, %v652_v16  ;;  %v669_v25 = vsel %vm5527_vm10, %v661_v9, %v668_v11  ;;  %v966_v26 = vsel %vm5462_vm4, %v653_v12, %v965_v10 }
  0x23   : > { %v1241_v24 = vld [vmem:[#allocation2] sm:$0xf]  ;;  %970 = vst [vmem:[#allocation2 + $0x18] sm:$0xf] %v969_v17  ;;  %v677_v27 = vor.u32 %v675_v5, %v674_v13  ;;  %v678_v28 = vrot.slane %v674_v13, 4  ;;  %v1312_v29 = vshll.u32 %v1243_v23, 16  ;;  %v5556_v36 = vpack.c.bf16 %v514_v15, %v514_v15 }
  0x24   : > { %v1293_v30 = vshrl.u32 %v1241_v24, 16  ;;  %v1296_v31 = vshll.u32 %v1241_v24, 16  ;;  %971 = vst.msk [vmem:[#allocation2 + $0x1c] sm:$0xf] %vm958_vm3, %v669_v25  ;;  %967 = vst [vmem:[#allocation2 + $0x14] sm:$0x1] %v966_v26  ;;  %v973_v35 = vsel %vm5462_vm4, %v670_v21, %v972_v22  ;;  %v5579_v1 = vpack.c.bf16 %v515_v42, %v515_v42 }
  0x25   : > { %v682_v32 = vrot.slane %v680_v14, 7  ;;  %v976_v34 = vsel %vm5492_vm6, %v677_v27, %v975_v20  ;;  %v689_v37 = vshrl.u32 %v5516_v44, 16  ;;  %v1314_v38 = vrot.slane %v1312_v29, 5  ;;  %974 = vst [vmem:[#allocation2 + $0x20] sm:$0x1] %v973_v35 }
  0x26   : > { %v1295_v39 = vrot.slane %v1293_v30, 4  ;;  %v1298_v40 = vrot.slane %v1296_v31, 5  ;;  %977 = vst [vmem:[#allocation2 + $0x24] sm:$0xf] %v976_v34  ;;  %v692_v45 = vshll.u32 %v5516_v44, 16  ;;  %v697_v47 = vshrl.u32 %v5556_v36, 16 }
  0x27   : > { %v685_v41 = vor.u32 %v683_v19, %v682_v32  ;;  %v5560_v43 = vrot.slane %v689_v37, 7  ;;  %v700_v48 = vshll.u32 %v5556_v36, 16  ;;  %v1315_v50 = vsel %vm5548_vm11, %v1310_v62, %v1314_v38  ;;  %v982_v38 = vld [vmem:[#allocation2 + $0x30] sm:$0xf] }
  0x28   : > { %v1299_v51 = vor.u32 %v1298_v40, %v1295_v39  ;;  %v1244_v52 = vld [vmem:[#allocation2 + $0xc] sm:$0xf]  ;;  %v687_v54 = vrot.slane %v682_v32, 4  ;;  %1678 = vrot.lane.b32.xlu0 %v1315_v50, %s5404_s24  ;;  %v5575_v61 = vrot.slane %v697_v47, 7  ;;  %vm1901_vm12 = vcmask 1042432  }
  0x29   : > { %v686_v53 = vsel %vm5527_vm10, %v678_v28, %v685_v41  ;;  %v1317_v55 = vshrl.u32 %v1244_v52, 16  ;;  %v1320_v56 = vshll.u32 %v1244_v52, 16  ;;  %v5572_v44 = vor.u32 %v692_v45, %v5560_v43  ;;  %v1245_v59 = vld [vmem:[#allocation2 + $0x10] sm:$0xf] }
  0x2a   : > { %978 = vst.msk [vmem:[#allocation2 + $0x28] sm:$0xf] %vm958_vm3, %v686_v53  ;;  %v695_v57 = vrot.slane %v5560_v43, 4  ;;  %v1300_v58 = vrot.slane %v1299_v51, 4  ;;  %v1247_v60 = vld [vmem:[#allocation2 + $0x18] sm:$0xf]  ;;  %v980_v62 = vsel %vm5462_vm4, %v687_v54, %v979_v49  ;;  %v702_v50 = vor.u32 %v700_v48, %v5575_v61 }
  0x2b   : > { %v1319_v3 = vrot.slane %v1317_v55, 4  ;;  %v1322_v4 = vrot.slane %v1320_v56, 5  ;;  %v1326_v5 = vshll.u32 %v1245_v59, 16  ;;  %v1330_v6 = vshrl.u32 %v1245_v59, 16  ;;  %v1248_v7 = vld [vmem:[#allocation2 + $0x1c] sm:$0xf] }
  0x2c   : > { %981 = vst [vmem:[#allocation2 + $0x2c] sm:$0x1] %v980_v62  ;;  %v1305_v8 = vsel %vm5548_vm11, %v1300_v58, %v5520_v46  ;;  %v1341_v9 = vshrl.u32 %v1247_v60, 16  ;;  %v1344_v10 = vshll.u32 %v1247_v60, 16  ;;  %v1350_v11 = vshll.u32 %v1248_v7, 16  ;;  %v516_v51 = vld [vmem:[%s5499_s23 + $0x48] sm:$0xff] }
  0x2d   : > { %v1246_v12 = vld [vmem:[#allocation2 + $0x14] sm:$0x1]  ;;  %1676 = vrot.lane.b32.xlu0 %v1305_v8, %s5404_s24  ;;  %v1323_v13 = vor.u32 %v1322_v4, %v1319_v3  ;;  %v1328_v14 = vrot.slane %v1326_v5, 5  ;;  %v1332_v15 = vrot.slane %v1330_v6, 4  ;;  %v1354_v16 = vshrl.u32 %v1248_v7, 16  ;;  %v518_v6 = vld [vmem:[%s5499_s23 + $0x58] sm:$0xff] }
  0x2e   : > { %v1250_v17 = vld [vmem:[#allocation2 + $0x24] sm:$0xf]  ;;  %v1343_v19 = vrot.slane %v1341_v9, 4  ;;  %v1346_v20 = vrot.slane %v1344_v10, 5  ;;  %v1352_v21 = vrot.slane %v1350_v11, 5  ;;  %v1336_v22 = vshll.u32 %v1246_v12, 16 }
  0x2f   : > { %v1249_v23 = vld [vmem:[#allocation2 + $0x20] sm:$0x1]  ;;  %v1324_v24 = vrot.slane %v1323_v13, 4  ;;  %v1333_v25 = vor.u32 %v1332_v15, %v1328_v14  ;;  %v1365_v26 = vshrl.u32 %v1250_v17, 16  ;;  %v1368_v46 = vshll.u32 %v1250_v17, 16  ;;  %v517_v5 = vld [vmem:[%s5499_s23 + $0x50] sm:$0xff] }
  0x30   : > { %v1347_v27 = vor.u32 %v1346_v20, %v1343_v19  ;;  %v1338_v28 = vrot.slane %v1336_v22, 5  ;;  %v1356_v30 = vrot.slane %v1354_v16, 4  ;;  %v1360_v31 = vshll.u32 %v1249_v23, 16  ;;  %v465_v56 = vld [vmem:[#allocation2 + $0x38] sm:$0x1] }
  0x31   : > { %v1251_v29 = vld [vmem:[#allocation2 + $0x28] sm:$0xf]  ;;  %v1329_v32 = vsel %vm5548_vm11, %v1324_v24, %v1328_v14  ;;  %v1334_v34 = vrot.slane %v1333_v25, 4  ;;  %v1367_v35 = vrot.slane %v1365_v26, 4  ;;  %v1370_v37 = vrot.slane %v1368_v46, 5 }
  0x32   : > { %1680 = vrot.lane.b32.xlu1 %v1329_v32, %s5404_s24  ;;  %v1348_v39 = vrot.slane %v1347_v27, 4  ;;  %v1374_v40 = vshll.u32 %v1251_v29, 16  ;;  %v1378_v41 = vshrl.u32 %v1251_v29, 16  ;;  %v1357_v42 = vor.u32 %v1356_v30, %v1352_v21  ;;  %v415_v4 = vld [vmem:[#allocation2 + $0x48] sm:$0x1]  ;;  %v519_v32 = vld [vmem:[%s5499_s23 + $0x60] sm:$0xff] }
  0x33   : > { %v1252_v43 = vld [vmem:[#allocation2 + $0x2c] sm:$0x1]  ;;  %v1339_v45 = vsel %vm5548_vm11, %v1334_v34, %v1338_v28  ;;  %v1371_v47 = vor.u32 %v1370_v37, %v1367_v35  ;;  %v1362_v49 = vrot.slane %v1360_v31, 5  ;;  %v983_v55 = vsel %vm5492_vm6, %v5572_v44, %v982_v38  ;;  %v468_v10 = vld [vmem:[#allocation2 + $0x44] sm:$0x1] }
  0x34   : > { %v1353_v52 = vsel %vm5548_vm11, %v1348_v39, %v1352_v21  ;;  %v1376_v53 = vrot.slane %v1374_v40, 5  ;;  %v1358_v54 = vrot.slane %v1357_v42, 4  ;;  %v703_v36 = vsel %vm5527_vm10, %v695_v57, %v702_v50  ;;  %984 = vst [vmem:[#allocation2 + $0x30] sm:$0xf] %v983_v55  ;;  %v989_v15 = vld [vmem:[#allocation2 + $0x3c] sm:$0xf] }
  0x35   : > { %1684 = vrot.lane.b32.xlu0 %v1353_v52, %s5404_s24  ;;  %v1372_v58 = vrot.slane %v1371_v47, 4  ;;  %v1380_v48 = vrot.slane %v1378_v41, 4  ;;  %v1384_v59 = vshll.u32 %v1252_v43, 16  ;;  %985 = vst.msk [vmem:[#allocation2 + $0x34] sm:$0xf] %vm958_vm3, %v703_v36  ;;  %v5233_v62 = vpack.c.bf16 %v516_v51, %v516_v51 }
  0x36   : > { %1682 = vrot.lane.b32.xlu1 %v1339_v45, %s5404_s24  ;;  %v1363_v60 = vsel %vm5548_vm11, %v1358_v54, %v1362_v49  ;;  %v706_v44 = vshrl.u32 %v5579_v1, 16  ;;  %v709_v3 = vshll.u32 %v5579_v1, 16  ;;  %v466_v9 = vsel %vm5467_vm5, 0, %v465_v56  ;;  %v418_v46 = vld [vmem:[#allocation2 + $0x54] sm:$0x1]  ;;  %v520_v45 = vld [vmem:[%s5499_s23 + $0x68] sm:$0xff] }
  0x37   : > { %v1377_v57 = vsel %vm5548_vm11, %v1372_v58, %v1376_v53  ;;  %v1381_v7 = vor.u32 %v1380_v48, %v1376_v53  ;;  %v1386_v8 = vrot.slane %v1384_v59, 5  ;;  %v714_v12 = vshrl.u32 %v5233_v62, 16  ;;  %467 = vst [vmem:[#allocation2 + $0x38] sm:$0x1] %v466_v9  ;;  %v471_v47 = vld [vmem:[#allocation2 + $0x50] sm:$0x1] }
  0x38   : > { %v708_v11 = vrot.slane %v706_v44, 7  ;;  %v717_v13 = vshll.u32 %v5233_v62, 16  ;;  %v704_v14 = vrot.slane %v5575_v61, 4  ;;  %v416_v16 = vsel %vm5462_vm4, 0, %v415_v4  ;;  %v421_v44 = vld [vmem:[#allocation2 + $0x60] sm:$0x1] }
  0x39   : > { %1688 = vrot.lane.b32.xlu0 %v1377_v57, %s5404_s24  ;;  %v1382_v1 = vrot.slane %v1381_v7, 4  ;;  %v5234_v17 = vpack.c.bf16 %v517_v5, %v517_v5  ;;  %v5235_v19 = vpack.c.bf16 %v518_v6, %v518_v6  ;;  %v716_v22 = vrot.slane %v714_v12, 7  ;;  %417 = vst [vmem:[#allocation2 + $0x48] sm:$0x1] %v416_v16  ;;  %v521_v7 = vld [vmem:[%s5499_s23 + $0x70] sm:$0xff]  ;;  %v522_v12 = vld [vmem:[%s5499_s23 + $0x78] sm:$0xff] }
  0x3a   : > { %1686 = vrot.lane.b32.xlu1 %v1363_v60, %s5404_s24  ;;  %v711_v20 = vor.u32 %v709_v3, %v708_v11  ;;  %v712_v21 = vrot.slane %v708_v11, 4  ;;  %v469_v23 = vsel %vm5467_vm5, 0, %v468_v10  ;;  %v419_v43 = vsel %vm5462_vm4, 0, %v418_v46 }
  0x3b   : > { %v1387_v61 = vsel %vm5548_vm11, %v1382_v1, %v1386_v8  ;;  %v723_v24 = vshrl.u32 %v5234_v17, 16  ;;  %v726_v25 = vshll.u32 %v5234_v17, 16  ;;  %v731_v26 = vshrl.u32 %v5235_v19, 16  ;;  %470 = vst [vmem:[#allocation2 + $0x44] sm:$0x1] %v469_v23 }
  0x3c   : > { %v1253_v27 = vld [vmem:[#allocation2 + $0x30] sm:$0xf]  ;;  %v719_v28 = vor.u32 %v717_v13, %v716_v22  ;;  %v990_v29 = vsel %vm5492_vm6, %v711_v20, %v989_v15  ;;  %v734_v30 = vshll.u32 %v5235_v19, 16  ;;  %v721_v31 = vrot.slane %v716_v22, 4  ;;  %v1254_v34 = vld [vmem:[#allocation2 + $0x34] sm:$0xf] }
  0x3d   : > { %v1389_v35 = vshrl.u32 %v1253_v27, 16  ;;  %v1392_v37 = vshll.u32 %v1253_v27, 16  ;;  %991 = vst [vmem:[#allocation2 + $0x3c] sm:$0xf] %v990_v29  ;;  %v725_v38 = vrot.slane %v723_v24, 7  ;;  %v5626_v39 = vrot.slane %v731_v26, 7 }
  0x3e   : > { %v1398_v40 = vshll.u32 %v1254_v34, 16  ;;  %v1402_v41 = vshrl.u32 %v1254_v34, 16  ;;  %1690 = vrot.lane.b32.xlu1 %v1387_v61, %s5404_s24  ;;  %v720_v42 = vsel %vm5527_vm10, %v712_v21, %v719_v28  ;;  %v986_v51 = vld [vmem:[#allocation2 + $0x38] sm:$0x1]  ;;  %420 = vst [vmem:[#allocation2 + $0x54] sm:$0x1] %v419_v43  ;;  %v5236_v59 = vpack.c.bf16 %v519_v32, %v519_v32 }
  0x3f   : > { %v1391_v49 = vrot.slane %v1389_v35, 4  ;;  %v1394_v50 = vrot.slane %v1392_v37, 5  ;;  %992 = vst.msk [vmem:[#allocation2 + $0x40] sm:$0xf] %vm958_vm3, %v720_v42  ;;  %v728_v52 = vor.u32 %v726_v25, %v725_v38  ;;  %v729_v53 = vrot.slane %v725_v38, 4 }
  0x40   : > { %v1400_v54 = vrot.slane %v1398_v40, 5  ;;  %v987_v55 = vsel %vm5462_vm4, %v704_v14, %v986_v51  ;;  %v1404_v56 = vrot.slane %v1402_v41, 4  ;;  %v736_v58 = vor.u32 %v734_v30, %v5626_v39  ;;  %v996_v48 = vld [vmem:[#allocation2 + $0x48] sm:$0xf]  ;;  %v474_v13 = vld [vmem:[#allocation2 + $0x5c] sm:$0x1] }
  0x41   : > { %v1395_v36 = vor.u32 %v1394_v50, %v1391_v49  ;;  %988 = vst [vmem:[#allocation2 + $0x38] sm:$0x1] %v987_v55  ;;  %v5237_v60 = vpack.c.bf16 %v520_v45, %v520_v45  ;;  %v472_v62 = vsel %vm5467_vm5, 0, %v471_v47  ;;  %v997_v5 = vsel %vm5492_vm6, %v728_v52, %v996_v48 }
  0x42   : > { %v1405_v3 = vor.u32 %v1404_v56, %v1400_v54  ;;  %v737_v4 = vsel %vm5527_vm10, %v729_v53, %v736_v58  ;;  %v993_v6 = vld [vmem:[#allocation2 + $0x44] sm:$0x1]  ;;  %473 = vst [vmem:[#allocation2 + $0x50] sm:$0x1] %v472_v62  ;;  %v738_v57 = vrot.slane %v5626_v39, 4  ;;  %v740_v10 = vshrl.u32 %v5236_v59, 16 }
  0x43   : > { %v1396_v8 = vrot.slane %v1395_v36, 4  ;;  %998 = vst [vmem:[#allocation2 + $0x48] sm:$0xf] %v997_v5  ;;  %999 = vst.msk [vmem:[#allocation2 + $0x4c] sm:$0xf] %vm958_vm3, %v737_v4  ;;  %v994_v9 = vsel %vm5462_vm4, %v721_v31, %v993_v6  ;;  %v743_v11 = vshll.u32 %v5236_v59, 16  ;;  %v5238_v24 = vpack.c.bf16 %v521_v7, %v521_v7 }
  0x44   : > { %v1256_v14 = vld [vmem:[#allocation2 + $0x3c] sm:$0xf]  ;;  %v1406_v1 = vrot.slane %v1405_v3, 4  ;;  %995 = vst [vmem:[#allocation2 + $0x44] sm:$0x1] %v994_v9  ;;  %v748_v15 = vshrl.u32 %v5237_v60, 16  ;;  %v5657_v25 = vpack.c.bf16 %v522_v12, %v522_v12 }
  0x45   : > { %v751_v16 = vshll.u32 %v5237_v60, 16  ;;  %v422_v17 = vsel %vm5462_vm4, 0, %v421_v44  ;;  %v1401_v19 = vsel %vm5548_vm11, %v1396_v8, %v1400_v54  ;;  %v1413_v20 = vshrl.u32 %v1256_v14, 16  ;;  %v1003_v30 = vld [vmem:[#allocation2 + $0x54] sm:$0xf]  ;;  %v523_v4 = vld [vmem:[%s5499_s23 + $0x80] sm:$0xff] }
  0x46   : > { %v1416_v21 = vshll.u32 %v1256_v14, 16  ;;  %v742_v22 = vrot.slane %v740_v10, 7  ;;  %423 = vst [vmem:[#allocation2 + $0x60] sm:$0x1] %v422_v17  ;;  %1692 = vrot.lane.b32.xlu0 %v1401_v19, %s5404_s24  ;;  %v1257_v23 = vld [vmem:[#allocation2 + $0x40] sm:$0xf] }
  0x47   : > { %v5655_v61 = vrot.slane %v748_v15, 7  ;;  %v475_v26 = vsel %vm5467_vm5, 0, %v474_v13  ;;  %v1415_v46 = vrot.slane %v1413_v20, 4  ;;  %v1422_v28 = vshll.u32 %v1257_v23, 16  ;;  %v524_v5 = vld [vmem:[%s5499_s23 + $0x88] sm:$0xff] }
  0x48   : > { %v1418_v27 = vrot.slane %v1416_v21, 5  ;;  %v1426_v29 = vshrl.u32 %v1257_v23, 16  ;;  %476 = vst [vmem:[#allocation2 + $0x5c] sm:$0x1] %v475_v26  ;;  %v1255_v31 = vld [vmem:[#allocation2 + $0x38] sm:$0x1]  ;;  %v745_v32 = vor.u32 %v743_v11, %v742_v22 }
  0x49   : > { %v746_v34 = vrot.slane %v742_v22, 4  ;;  %v753_v35 = vor.u32 %v751_v16, %v5655_v61  ;;  %v757_v37 = vshrl.u32 %v5238_v24, 16  ;;  %v1424_v39 = vrot.slane %v1422_v28, 5  ;;  %v1000_v42 = vld [vmem:[#allocation2 + $0x50] sm:$0x1] }
  0x4a   : > { %v1419_v38 = vor.u32 %v1418_v27, %v1415_v46  ;;  %v1408_v40 = vshll.u32 %v1255_v31, 16  ;;  %v1428_v41 = vrot.slane %v1426_v29, 4  ;;  %v1259_v43 = vld [vmem:[#allocation2 + $0x48] sm:$0xf]  ;;  %v1260_v45 = vld [vmem:[#allocation2 + $0x4c] sm:$0xf]  ;;  %v1004_v49 = vsel %vm5492_vm6, %v745_v32, %v1003_v30 }
  0x4b   : > { %v754_v47 = vsel %vm5527_vm10, %v746_v34, %v753_v35  ;;  %v1001_v50 = vsel %vm5462_vm4, %v738_v57, %v1000_v42  ;;  %v5668_v51 = vrot.slane %v757_v37, 7  ;;  %v1437_v54 = vshrl.u32 %v1259_v43, 16  ;;  %v1258_v56 = vld [vmem:[#allocation2 + $0x44] sm:$0x1]  ;;  %1005 = vst [vmem:[#allocation2 + $0x54] sm:$0xf] %v1004_v49 }
  0x4c   : > { %v1420_v52 = vrot.slane %v1419_v38, 4  ;;  %v1410_v53 = vrot.slane %v1408_v40, 5  ;;  %v1440_v55 = vshll.u32 %v1259_v43, 16  ;;  %1006 = vst.msk [vmem:[#allocation2 + $0x58] sm:$0xf] %vm958_vm3, %v754_v47  ;;  %v1446_v58 = vshll.u32 %v1260_v45, 16 }
  0x4d   : > { %1002 = vst [vmem:[#allocation2 + $0x50] sm:$0x1] %v1001_v50  ;;  %v1450_v36 = vshrl.u32 %v1260_v45, 16  ;;  %v1429_v48 = vor.u32 %v1428_v41, %v1424_v39  ;;  %v1432_v59 = vshll.u32 %v1258_v56, 16  ;;  %v1439_v44 = vrot.slane %v1437_v54, 4 }
  0x4e   : > { %v1425_v60 = vsel %vm5548_vm11, %v1420_v52, %v1424_v39  ;;  %v1411_v62 = vsel %vm5548_vm11, %v1406_v1, %v1410_v53  ;;  %v1442_v3 = vrot.slane %v1440_v55, 5  ;;  %v1448_v6 = vrot.slane %v1446_v58, 5  ;;  %v424_v9 = vld [vmem:[#allocation2 + $0x6c] sm:$0x1]  ;;  %v525_v1 = vld [vmem:[%s5499_s23 + $0x90] sm:$0xff]  ;;  %v526_v58 = vld [vmem:[%s5499_s23 + $0x98] sm:$0xff] }
  0x4f   : > { %1696 = vrot.lane.b32.xlu0 %v1425_v60, %s5404_s24  ;;  %1694 = vrot.lane.b32.xlu1 %v1411_v62, %s5404_s24  ;;  %v1430_v57 = vrot.slane %v1429_v48, 4  ;;  %v1434_v7 = vrot.slane %v1432_v59, 5  ;;  %v1452_v8 = vrot.slane %v1450_v36, 4  ;;  %v760_v11 = vshll.u32 %v5238_v24, 16  ;;  %v1007_v14 = vld [vmem:[#allocation2 + $0x5c] sm:$0x1] }
  0x50   : > { %v1443_v10 = vor.u32 %v1442_v3, %v1439_v44  ;;  %v763_v12 = vrot.slane %v5668_v51, 4  ;;  %v765_v13 = vshrl.u32 %v5657_v25, 16  ;;  %v768_v17 = vshll.u32 %v5657_v25, 16  ;;  %v1010_v23 = vld [vmem:[#allocation2 + $0x60] sm:$0xf] }
  0x51   : > { %v1435_v15 = vsel %vm5548_vm11, %v1430_v57, %v1434_v7  ;;  %v1453_v16 = vor.u32 %v1452_v8, %v1448_v6  ;;  %v755_v19 = vrot.slane %v5655_v61, 4  ;;  %v762_v21 = vor.u32 %v760_v11, %v5668_v51  ;;  %v477_v45 = vld [vmem:[#allocation2 + $0x68] sm:$0x1]  ;;  %v427_v52 = vld [vmem:[#allocation2 + $0x78] sm:$0x1] }
  0x52   : > { %v1444_v20 = vrot.slane %v1443_v10, 4  ;;  %v5687_v22 = vrot.slane %v765_v13, 7  ;;  %v425_v24 = vsel %vm5462_vm4, 0, %v424_v9  ;;  %v1262_v26 = vld [vmem:[#allocation2 + $0x54] sm:$0xf]  ;;  %v5240_v25 = vpack.c.bf16 %v523_v4, %v523_v4 }
  0x53   : > { %1698 = vrot.lane.b32.xlu1 %v1435_v15, %s5404_s24  ;;  %v1263_v46 = vld [vmem:[#allocation2 + $0x58] sm:$0xf]  ;;  %v1008_v28 = vsel %vm5462_vm4, %v755_v19, %v1007_v14  ;;  %426 = vst [vmem:[#allocation2 + $0x6c] sm:$0x1] %v425_v24  ;;  %v5241_v61 = vpack.c.bf16 %v524_v5, %v524_v5  ;;  %v5694_v29 = vpack.c.bf16 %v525_v1, %v525_v1  ;;  %v1461_v31 = vshrl.u32 %v1262_v26, 16 }
  0x54   : > { %v1261_v27 = vld [vmem:[#allocation2 + $0x50] sm:$0x1]  ;;  %v1449_v30 = vsel %vm5548_vm11, %v1444_v20, %v1448_v6  ;;  %v1464_v32 = vshll.u32 %v1262_v26, 16  ;;  %v1470_v34 = vshll.u32 %v1263_v46, 16  ;;  %1009 = vst [vmem:[#allocation2 + $0x5c] sm:$0x1] %v1008_v28  ;;  %v770_v39 = vor.u32 %v768_v17, %v5687_v22 }
  0x55   : > { %1700 = vrot.lane.b32.xlu0 %v1449_v30, %s5404_s24  ;;  %v1474_v35 = vshrl.u32 %v1263_v46, 16  ;;  %v1454_v37 = vrot.slane %v1453_v16, 4  ;;  %v1456_v38 = vshll.u32 %v1261_v27, 16  ;;  %v1463_v40 = vrot.slane %v1461_v31, 4  ;;  %v480_v10 = vld [vmem:[#allocation2 + $0x74] sm:$0x1] }
  0x56   : > { %v1466_v41 = vrot.slane %v1464_v32, 5  ;;  %v1472_v42 = vrot.slane %v1470_v34, 5  ;;  %v1011_v43 = vsel %vm5492_vm6, %v762_v21, %v1010_v23  ;;  %v771_v49 = vsel %vm5527_vm10, %v763_v12, %v770_v39  ;;  %v1178_v1 = vld [vmem:[#allocation2 + $0x4] sm:$0xf]  ;;  %v1177_v15 = vld [vmem:[#allocation2] sm:$0xf] }
  0x57   : > { %v1458_v47 = vrot.slane %v1456_v38, 5  ;;  %1012 = vst [vmem:[#allocation2 + $0x60] sm:$0xf] %v1011_v43  ;;  %v1476_v50 = vrot.slane %v1474_v35, 4  ;;  %v774_v51 = vshrl.u32 %v5240_v25, 16  ;;  %v777_v54 = vshll.u32 %v5240_v25, 16 }
  0x58   : > { %v1467_v53 = vor.u32 %v1466_v41, %v1463_v40  ;;  %1013 = vst.msk [vmem:[#allocation2 + $0x64] sm:$0xf] %vm958_vm3, %v771_v49  ;;  %v782_v55 = vshrl.u32 %v5241_v61, 16  ;;  %v785_v56 = vshll.u32 %v5241_v61, 16  ;;  %v478_v60 = vsel %vm5467_vm5, 0, %v477_v45  ;;  %v527_v28 = vld [vmem:[%s5499_s23 + $0xa0] sm:$0xff] }
  0x59   : > { %v1459_v36 = vsel %vm5548_vm11, %v1454_v37, %v1458_v47  ;;  %v1477_v48 = vor.u32 %v1476_v50, %v1472_v42  ;;  %v776_v59 = vrot.slane %v774_v51, 7  ;;  %479 = vst [vmem:[#allocation2 + $0x68] sm:$0x1] %v478_v60  ;;  %v772_v4 = vrot.slane %v5687_v22, 4  ;;  %v430_v21 = vld [vmem:[#allocation2 + $0x84] sm:$0x1] }
  0x5a   : > { %v1468_v62 = vrot.slane %v1467_v53, 4  ;;  %1702 = vrot.lane.b32.xlu1 %v1459_v36, %s5404_s24  ;;  %v5711_v44 = vrot.slane %v782_v55, 7  ;;  %v1017_v3 = vld [vmem:[#allocation2 + $0x6c] sm:$0xf]  ;;  %v428_v5 = vsel %vm5462_vm4, 0, %v427_v52  ;;  %v5243_v9 = vpack.c.bf16 %v526_v58, %v526_v58 }
  0x5b   : > { %v1264_v6 = vld [vmem:[#allocation2 + $0x5c] sm:$0x1]  ;;  %v1478_v57 = vrot.slane %v1477_v48, 4  ;;  %v779_v7 = vor.u32 %v777_v54, %v776_v59  ;;  %v780_v8 = vrot.slane %v776_v59, 4  ;;  %429 = vst [vmem:[#allocation2 + $0x78] sm:$0x1] %v428_v5  ;;  %v5244_v58 = vpack.c.bf16 %v527_v28, %v527_v28 }
  0x5c   : > { %v1473_v11 = vsel %vm5548_vm11, %v1468_v62, %v1472_v42  ;;  %v1480_v12 = vshll.u32 %v1264_v6, 16  ;;  %v787_v13 = vor.u32 %v785_v56, %v5711_v44  ;;  %v791_v14 = vshrl.u32 %v5694_v29, 16  ;;  %1210 = vst.msk [vmem:[#allocation3 + $0x4] sm:$0xf] %vm958_vm3, %v1178_v1  ;;  %1209 = vst.msk [vmem:[#allocation3] sm:$0xf] %vm958_vm3, %v1177_v15 }
  0x5d   : > { %1704 = vrot.lane.b32.xlu0 %v1473_v11, %s5404_s24  ;;  %v1018_v16 = vsel %vm5492_vm6, %v779_v7, %v1017_v3  ;;  %v794_v17 = vshll.u32 %v5694_v29, 16  ;;  %v799_v19 = vshrl.u32 %v5243_v9, 16  ;;  %v802_v20 = vshll.u32 %v5243_v9, 16  ;;  %v1179_v22 = vld [vmem:[#allocation2 + $0xc] sm:$0xf]  ;;  %v529_v9 = vld [vmem:[%s5499_s23 + $0xb0] sm:$0xff] }
  0x5e   : > { %v1265_v23 = vld [vmem:[#allocation2 + $0x60] sm:$0xf]  ;;  %v1482_v24 = vrot.slane %v1480_v12, 5  ;;  %v788_v26 = vsel %vm5527_vm10, %v780_v8, %v787_v13  ;;  %1019 = vst [vmem:[#allocation2 + $0x6c] sm:$0xf] %v1018_v16  ;;  %v793_v46 = vrot.slane %v791_v14, 7 }
  0x5f   : > { %v481_v27 = vsel %vm5467_vm5, 0, %v480_v10  ;;  %1211 = vst.msk [vmem:[#allocation3 + $0x8] sm:$0xf] %vm958_vm3, %v1179_v22  ;;  %v1266_v25 = vld [vmem:[#allocation2 + $0x64] sm:$0xf]  ;;  %v1485_v61 = vshrl.u32 %v1265_v23, 16 }
  0x60   : > { %v1488_v29 = vshll.u32 %v1265_v23, 16  ;;  %1020 = vst.msk [vmem:[#allocation2 + $0x70] sm:$0xf] %vm958_vm3, %v788_v26  ;;  %v5733_v30 = vrot.slane %v799_v19, 7  ;;  %482 = vst [vmem:[#allocation2 + $0x74] sm:$0x1] %v481_v27  ;;  %v1483_v35 = vsel %vm5548_vm11, %v1478_v57, %v1482_v24  ;;  %v796_v37 = vor.u32 %v794_v17, %v793_v46 }
  0x61   : > { %v789_v31 = vrot.slane %v5711_v44, 4  ;;  %v1494_v32 = vshll.u32 %v1266_v25, 16  ;;  %v1498_v34 = vshrl.u32 %v1266_v25, 16  ;;  %v483_v38 = vld [vmem:[#allocation2 + $0x80] sm:$0x1]  ;;  %v1487_v40 = vrot.slane %v1485_v61, 4  ;;  %1706 = vrot.lane.b32.xlu1 %v1483_v35, %s5404_s24 }
  0x62   : > { %v433_v39 = vld [vmem:[#allocation2 + $0x90] sm:$0x1]  ;;  %v1490_v41 = vrot.slane %v1488_v29, 5  ;;  %v1014_v42 = vld [vmem:[#allocation2 + $0x68] sm:$0x1]  ;;  %v797_v43 = vrot.slane %v793_v46, 4  ;;  %v804_v45 = vor.u32 %v802_v20, %v5733_v30  ;;  %v5246_v35 = vpack.c.bf16 %v529_v9, %v529_v9 }
  0x63   : > { %v528_v47 = vld [vmem:[%s5499_s23 + $0xa8] sm:$0xff]  ;;  %v1496_v49 = vrot.slane %v1494_v32, 5  ;;  %v1015_v50 = vsel %vm5462_vm4, %v772_v4, %v1014_v42  ;;  %v1500_v51 = vrot.slane %v1498_v34, 4  ;;  %v1024_v52 = vld [vmem:[#allocation2 + $0x78] sm:$0xf]  ;;  %v431_v53 = vsel %vm5462_vm4, 0, %v430_v21 }
  0x64   : > { %v1491_v54 = vor.u32 %v1490_v41, %v1487_v40  ;;  %1016 = vst [vmem:[#allocation2 + $0x68] sm:$0x1] %v1015_v50  ;;  %v805_v55 = vsel %vm5527_vm10, %v797_v43, %v804_v45  ;;  %v1025_v56 = vsel %vm5492_vm6, %v796_v37, %v1024_v52  ;;  %432 = vst [vmem:[#allocation2 + $0x84] sm:$0x1] %v431_v53  ;;  %v1181_v36 = vld [vmem:[#allocation2 + $0x18] sm:$0xf] }
  0x65   : > { %v1180_v48 = vld [vmem:[#allocation2 + $0x10] sm:$0xf]  ;;  %v1183_v59 = vld [vmem:[#allocation2 + $0x24] sm:$0xf]  ;;  %v1501_v60 = vor.u32 %v1500_v51, %v1496_v49  ;;  %1026 = vst [vmem:[#allocation2 + $0x78] sm:$0xf] %v1025_v56  ;;  %v5245_v62 = vpack.c.bf16 %v528_v47, %v528_v47 }
  0x66   : > { %1027 = vst.msk [vmem:[#allocation2 + $0x7c] sm:$0xf] %vm958_vm3, %v805_v55  ;;  %v484_v44 = vsel %vm5467_vm5, 0, %v483_v38  ;;  %v806_v3 = vrot.slane %v5733_v30, 4  ;;  %1213 = vst.msk [vmem:[#allocation3 + $0x10] sm:$0xf] %vm958_vm3, %v1181_v36 }
  0x67   : > { %1212 = vst.msk [vmem:[#allocation3 + $0xc] sm:$0xf] %vm958_vm3, %v1180_v48  ;;  %1215 = vst.msk [vmem:[#allocation3 + $0x18] sm:$0xf] %vm958_vm3, %v1183_v59  ;;  %v1182_v4 = vld [vmem:[#allocation2 + $0x1c] sm:$0xf] }
  0x68   : > { %v1492_v5 = vrot.slane %v1491_v54, 4  ;;  %v1268_v6 = vld [vmem:[#allocation2 + $0x6c] sm:$0xf]  ;;  %v808_v57 = vshrl.u32 %v5244_v58, 16  ;;  %v811_v7 = vshll.u32 %v5244_v58, 16  ;;  %v434_v8 = vsel %vm5462_vm4, 0, %v433_v39 }
  0x69   : > { %485 = vst [vmem:[#allocation2 + $0x80] sm:$0x1] %v484_v44  ;;  %1214 = vst.msk [vmem:[#allocation3 + $0x14] sm:$0xf] %vm958_vm3, %v1182_v4  ;;  %v1269_v10 = vld [vmem:[#allocation2 + $0x70] sm:$0xf] }
  0x6a   : > { %v1509_v11 = vshrl.u32 %v1268_v6, 16  ;;  %v1512_v12 = vshll.u32 %v1268_v6, 16  ;;  %v1502_v13 = vrot.slane %v1501_v60, 4  ;;  %v816_v14 = vshrl.u32 %v5245_v62, 16  ;;  %435 = vst [vmem:[#allocation2 + $0x90] sm:$0x1] %v434_v8 }
  0x6b   : > { %v1497_v1 = vsel %vm5548_vm11, %v1492_v5, %v1496_v49  ;;  %v1518_v15 = vshll.u32 %v1269_v10, 16  ;;  %v1522_v16 = vshrl.u32 %v1269_v10, 16  ;;  %v1021_v17 = vld [vmem:[#allocation2 + $0x74] sm:$0x1]  ;;  %v810_v19 = vrot.slane %v808_v57, 7  ;;  %v530_v20 = vld [vmem:[%s5499_s23 + $0xb8] sm:$0xff] }
  0x6c   : > { %1708 = vrot.lane.b32.xlu0 %v1497_v1, %s5404_s24  ;;  %v1511_v21 = vrot.slane %v1509_v11, 4  ;;  %v1514_v22 = vrot.slane %v1512_v12, 5  ;;  %v1022_v23 = vsel %vm5462_vm4, %v789_v31, %v1021_v17  ;;  %v5766_v24 = vrot.slane %v816_v14, 7  ;;  %v486_v26 = vld [vmem:[#allocation2 + $0x8c] sm:$0x1]  ;;  %v531_v4 = vld [vmem:[%s5499_s23 + $0xc0] sm:$0xff] }
  0x6d   : > { %v1520_v46 = vrot.slane %v1518_v15, 5  ;;  %1023 = vst [vmem:[#allocation2 + $0x74] sm:$0x1] %v1022_v23  ;;  %v1524_v27 = vrot.slane %v1522_v16, 4  ;;  %v813_v28 = vor.u32 %v811_v7, %v810_v19  ;;  %v814_v25 = vrot.slane %v810_v19, 4  ;;  %v532_v9 = vld [vmem:[%s5499_s23 + $0xc8] sm:$0xff] }
  0x6e   : > { %v1515_v61 = vor.u32 %v1514_v22, %v1511_v21  ;;  %v1267_v29 = vld [vmem:[#allocation2 + $0x68] sm:$0x1]  ;;  %v819_v32 = vshll.u32 %v5245_v62, 16  ;;  %v1031_v34 = vld [vmem:[#allocation2 + $0x84] sm:$0xf]  ;;  %v5768_v37 = vpack.c.bf16 %v530_v20, %v530_v20  ;;  %v487_v42 = vsel %vm5467_vm5, 0, %v486_v26 }
  0x6f   : > { %v1504_v38 = vshll.u32 %v1267_v29, 16  ;;  %v1271_v39 = vld [vmem:[#allocation2 + $0x78] sm:$0xf]  ;;  %v1272_v40 = vld [vmem:[#allocation2 + $0x7c] sm:$0xf]  ;;  %v1525_v41 = vor.u32 %v1524_v27, %v1520_v46  ;;  %v1032_v31 = vsel %vm5492_vm6, %v813_v28, %v1031_v34  ;;  %v825_v57 = vshrl.u32 %v5246_v35, 16 }
  0x70   : > { %v1516_v43 = vrot.slane %v1515_v61, 4  ;;  %v1533_v45 = vshrl.u32 %v1271_v39, 16  ;;  %v1536_v47 = vshll.u32 %v1271_v39, 16  ;;  %v1542_v49 = vshll.u32 %v1272_v40, 16  ;;  %1033 = vst [vmem:[#allocation2 + $0x84] sm:$0xf] %v1032_v31 }
  0x71   : > { %v1028_v50 = vld [vmem:[#allocation2 + $0x80] sm:$0x1]  ;;  %488 = vst [vmem:[#allocation2 + $0x8c] sm:$0x1] %v487_v42  ;;  %v1506_v51 = vrot.slane %v1504_v38, 5  ;;  %v1546_v52 = vshrl.u32 %v1272_v40, 16  ;;  %v821_v54 = vor.u32 %v819_v32, %v5766_v24  ;;  %v5248_v22 = vpack.c.bf16 %v531_v4, %v531_v4 }
  0x72   : > { %v1526_v53 = vrot.slane %v1525_v41, 4  ;;  %v1521_v55 = vsel %vm5548_vm11, %v1516_v43, %v1520_v46  ;;  %v1535_v56 = vrot.slane %v1533_v45, 4  ;;  %v1538_v58 = vrot.slane %v1536_v47, 5  ;;  %v436_v44 = vld [vmem:[#allocation2 + $0x9c] sm:$0x1]  ;;  %v533_v28 = vld [vmem:[%s5499_s23 + $0xd0] sm:$0xff] }
  0x73   : > { %v1544_v36 = vrot.slane %v1542_v49, 5  ;;  %1712 = vrot.lane.b32.xlu0 %v1521_v55, %s5404_s24  ;;  %v1507_v48 = vsel %vm5548_vm11, %v1502_v13, %v1506_v51  ;;  %v822_v59 = vsel %vm5527_vm10, %v814_v25, %v821_v54  ;;  %v1029_v60 = vsel %vm5462_vm4, %v806_v3, %v1028_v50  ;;  %v1038_v3 = vld [vmem:[#allocation2 + $0x90] sm:$0xf]  ;;  %v1184_v25 = vld [vmem:[#allocation2 + $0x28] sm:$0xf] }
  0x74   : > { %v1548_v62 = vrot.slane %v1546_v52, 4  ;;  %1710 = vrot.lane.b32.xlu1 %v1507_v48, %s5404_s24  ;;  %v1539_v5 = vor.u32 %v1538_v58, %v1535_v56  ;;  %v1270_v6 = vld [vmem:[#allocation2 + $0x74] sm:$0x1]  ;;  %1034 = vst.msk [vmem:[#allocation2 + $0x88] sm:$0xf] %vm958_vm3, %v822_v59  ;;  %v828_v7 = vshll.u32 %v5246_v35, 16  ;;  %v5249_v23 = vpack.c.bf16 %v532_v9, %v532_v9 }
  0x75   : > { %1030 = vst [vmem:[#allocation2 + $0x80] sm:$0x1] %v1029_v60  ;;  %v833_v8 = vshrl.u32 %v5768_v37, 16  ;;  %v1528_v10 = vshll.u32 %v1270_v6, 16  ;;  %v836_v11 = vshll.u32 %v5768_v37, 16  ;;  %v823_v12 = vrot.slane %v5766_v24, 4 }
  0x76   : > { %v1549_v30 = vor.u32 %v1548_v62, %v1544_v36  ;;  %v1540_v13 = vrot.slane %v1539_v5, 4  ;;  %v827_v14 = vrot.slane %v825_v57, 7  ;;  %v437_v15 = vsel %vm5462_vm4, 0, %v436_v44  ;;  %v1185_v16 = vld [vmem:[#allocation2 + $0x30] sm:$0xf]  ;;  %v534_v48 = vld [vmem:[%s5499_s23 + $0xd8] sm:$0xff] }
  0x77   : > { %v5793_v1 = vrot.slane %v833_v8, 7  ;;  %v1530_v17 = vrot.slane %v1528_v10, 5  ;;  %v1274_v19 = vld [vmem:[#allocation2 + $0x84] sm:$0xf]  ;;  %438 = vst [vmem:[#allocation2 + $0x9c] sm:$0x1] %v437_v15  ;;  %v5815_v49 = vpack.c.bf16 %v533_v28, %v533_v28  ;;  %v5251_v15 = vpack.c.bf16 %v534_v48, %v534_v48 }
  0x78   : > { %v5797_v20 = vrot.slane %v1549_v30, 4  ;;  %v1035_v21 = vld [vmem:[#allocation2 + $0x8c] sm:$0x1]  ;;  %1217 = vst.msk [vmem:[#allocation3 + $0x20] sm:$0xf] %vm958_vm3, %v1185_v16  ;;  %v1545_v24 = vsel %vm5548_vm11, %v1540_v13, %v1544_v36  ;;  %v1557_v26 = vshrl.u32 %v1274_v19, 16  ;;  %v830_v27 = vor.u32 %v828_v7, %v827_v14 }
  0x79   : > { %v1560_v46 = vshll.u32 %v1274_v19, 16  ;;  %1716 = vrot.lane.b32.xlu0 %v1545_v24, %s5404_s24  ;;  %v1531_v61 = vsel %vm5548_vm11, %v1526_v53, %v1530_v17  ;;  %v831_v29 = vrot.slane %v827_v14, 4  ;;  %v838_v32 = vor.u32 %v836_v11, %v5793_v1  ;;  %v489_v35 = vld [vmem:[#allocation2 + $0x98] sm:$0x1]  ;;  %1216 = vst.msk [vmem:[#allocation3 + $0x1c] sm:$0xf] %vm958_vm3, %v1184_v25 }
  0x7a   : > { %v1036_v34 = vsel %vm5462_vm4, %v823_v12, %v1035_v21  ;;  %1714 = vrot.lane.b32.xlu1 %v1531_v61, %s5404_s24  ;;  %v1559_v37 = vrot.slane %v1557_v26, 4  ;;  %v1039_v39 = vsel %vm5492_vm6, %v830_v27, %v1038_v3  ;;  %v842_v40 = vshrl.u32 %v5248_v22, 16  ;;  %v1187_v41 = vld [vmem:[#allocation2 + $0x3c] sm:$0xf]  ;;  %v439_v54 = vld [vmem:[#allocation2 + $0xa8] sm:$0x1] }
  0x7b   : > { %v1562_v38 = vrot.slane %v1560_v46, 5  ;;  %1037 = vst [vmem:[#allocation2 + $0x8c] sm:$0x1] %v1036_v34  ;;  %v1275_v31 = vld [vmem:[#allocation2 + $0x88] sm:$0xf]  ;;  %v839_v43 = vsel %vm5527_vm10, %v831_v29, %v838_v32  ;;  %v845_v45 = vshll.u32 %v5248_v22, 16 }
  0x7c   : > { %v1273_v42 = vld [vmem:[#allocation2 + $0x80] sm:$0x1]  ;;  %1040 = vst [vmem:[#allocation2 + $0x90] sm:$0xf] %v1039_v39  ;;  %v850_v47 = vshrl.u32 %v5249_v23, 16  ;;  %v1566_v51 = vshll.u32 %v1275_v31, 16 }
  0x7d   : > { %1219 = vst.msk [vmem:[#allocation3 + $0x28] sm:$0xf] %vm958_vm3, %v1187_v41  ;;  %v1563_v50 = vor.u32 %v1562_v38, %v1559_v37  ;;  %v1570_v52 = vshrl.u32 %v1275_v31, 16  ;;  %v1552_v53 = vshll.u32 %v1273_v42, 16  ;;  %1041 = vst.msk [vmem:[#allocation2 + $0x94] sm:$0xf] %vm958_vm3, %v839_v43 }
  0x7e   : > { %v844_v55 = vrot.slane %v842_v40, 7  ;;  %v5819_v56 = vrot.slane %v850_v47, 7  ;;  %v853_v58 = vshll.u32 %v5249_v23, 16  ;;  %v490_v36 = vsel %vm5467_vm5, 0, %v489_v35  ;;  %v1045_v4 = vld [vmem:[#allocation2 + $0x9c] sm:$0xf] }
  0x7f   : > { %v1564_v59 = vrot.slane %v1563_v50, 4  ;;  %v1568_v60 = vrot.slane %v1566_v51, 5  ;;  %v1554_v62 = vrot.slane %v1552_v53, 5  ;;  %v1572_v44 = vrot.slane %v1570_v52, 4  ;;  %491 = vst [vmem:[#allocation2 + $0x98] sm:$0x1] %v490_v36 }
  0x80   : > { %v847_v5 = vor.u32 %v845_v45, %v844_v55  ;;  %v848_v6 = vrot.slane %v844_v55, 4  ;;  %v855_v57 = vor.u32 %v853_v58, %v5819_v56  ;;  %v840_v7 = vrot.slane %v5793_v1, 4  ;;  %v492_v8 = vld [vmem:[#allocation2 + $0xa4] sm:$0x1]  ;;  %v1186_v9 = vld [vmem:[#allocation2 + $0x34] sm:$0xf] }
  0x81   : > { %v1569_v10 = vsel %vm5548_vm11, %v1564_v59, %v1568_v60  ;;  %v1555_v30 = vsel %vm5548_vm11, %v5797_v20, %v1554_v62  ;;  %v1573_v11 = vor.u32 %v1572_v44, %v1568_v60  ;;  %v440_v3 = vsel %vm5462_vm4, 0, %v439_v54  ;;  %1218 = vst.msk [vmem:[#allocation3 + $0x24] sm:$0xf] %vm958_vm3, %v1186_v9  ;;  %v1189_v12 = vld [vmem:[#allocation2 + $0x48] sm:$0xf]  ;;  %v535_v41 = vld [vmem:[%s5499_s23 + $0xe0] sm:$0xff] }
  0x82   : > { %1720 = vrot.lane.b32.xlu0 %v1569_v10, %s5404_s24  ;;  %1718 = vrot.lane.b32.xlu1 %v1555_v30, %s5404_s24  ;;  %v1276_v13 = vld [vmem:[#allocation2 + $0x8c] sm:$0x1]  ;;  %v856_v14 = vsel %vm5527_vm10, %v848_v6, %v855_v57  ;;  %v1046_v1 = vsel %vm5492_vm6, %v847_v5, %v1045_v4  ;;  %441 = vst [vmem:[#allocation2 + $0xa8] sm:$0x1] %v440_v3  ;;  %v859_v16 = vshrl.u32 %v5815_v49, 16  ;;  %v862_v21 = vshll.u32 %v5815_v49, 16 }
  0x83   : > { %1221 = vst.msk [vmem:[#allocation3 + $0x30] sm:$0xf] %vm958_vm3, %v1189_v12  ;;  %v1277_v17 = vld [vmem:[#allocation2 + $0x90] sm:$0xf]  ;;  %v1574_v19 = vrot.slane %v1573_v11, 4  ;;  %v1576_v20 = vshll.u32 %v1276_v13, 16  ;;  %v5252_v55 = vpack.c.bf16 %v535_v41, %v535_v41 }
  0x84   : > { %1047 = vst [vmem:[#allocation2 + $0x9c] sm:$0xf] %v1046_v1  ;;  %1048 = vst.msk [vmem:[#allocation2 + $0xa0] sm:$0xf] %vm958_vm3, %v856_v14  ;;  %v493_v22 = vsel %vm5467_vm5, 0, %v492_v8  ;;  %v1581_v26 = vshrl.u32 %v1277_v17, 16 }
  0x85   : > { %v442_v23 = vld [vmem:[#allocation2 + $0xb4] sm:$0x1]  ;;  %v1584_v46 = vshll.u32 %v1277_v17, 16  ;;  %v861_v27 = vrot.slane %v859_v16, 7  ;;  %v867_v28 = vshrl.u32 %v5251_v15, 16  ;;  %v1578_v29 = vrot.slane %v1576_v20, 5 }
  0x86   : > { %v1278_v24 = vld [vmem:[#allocation2 + $0x94] sm:$0xf]  ;;  %494 = vst [vmem:[#allocation2 + $0xa4] sm:$0x1] %v493_v22  ;;  %v870_v32 = vshll.u32 %v5251_v15, 16  ;;  %v1583_v35 = vrot.slane %v1581_v26, 4 }
  0x87   : > { %v1590_v25 = vshll.u32 %v1278_v24, 16  ;;  %v1594_v61 = vshrl.u32 %v1278_v24, 16  ;;  %v495_v34 = vld [vmem:[#allocation2 + $0xb0] sm:$0x1]  ;;  %v1586_v37 = vrot.slane %v1584_v46, 5  ;;  %v864_v39 = vor.u32 %v862_v21, %v861_v27  ;;  %v536_v47 = vld [vmem:[%s5499_s23 + $0xe8] sm:$0xff] }
  0x88   : > { %v1042_v38 = vld [vmem:[#allocation2 + $0x98] sm:$0x1]  ;;  %v865_v40 = vrot.slane %v861_v27, 4  ;;  %v1579_v42 = vsel %vm5548_vm11, %v1574_v19, %v1578_v29  ;;  %v1188_v49 = vld [vmem:[#allocation2 + $0x40] sm:$0xf]  ;;  %v5853_v51 = vrot.slane %v867_v28, 7 }
  0x89   : > { %v1592_v31 = vrot.slane %v1590_v25, 5  ;;  %v1043_v43 = vsel %vm5462_vm4, %v840_v7, %v1042_v38  ;;  %v1596_v45 = vrot.slane %v1594_v61, 4  ;;  %v1587_v50 = vor.u32 %v1586_v37, %v1583_v35  ;;  %1722 = vrot.lane.b32.xlu1 %v1579_v42, %s5404_s24  ;;  %1220 = vst.msk [vmem:[#allocation3 + $0x2c] sm:$0xf] %vm958_vm3, %v1188_v49  ;;  %v1052_v54 = vld [vmem:[#allocation2 + $0xa8] sm:$0xf] }
  0x8a   : > { %1044 = vst [vmem:[#allocation2 + $0x98] sm:$0x1] %v1043_v43  ;;  %v857_v52 = vrot.slane %v5819_v56, 4  ;;  %v443_v53 = vsel %vm5462_vm4, 0, %v442_v23  ;;  %v496_v58 = vsel %vm5467_vm5, 0, %v495_v34  ;;  %v872_v60 = vor.u32 %v870_v32, %v5853_v51 }
  0x8b   : > { %444 = vst [vmem:[#allocation2 + $0xb4] sm:$0x1] %v443_v53  ;;  %v1588_v36 = vrot.slane %v1587_v50, 4  ;;  %v1280_v48 = vld [vmem:[#allocation2 + $0x9c] sm:$0xf]  ;;  %v1053_v62 = vsel %vm5492_vm6, %v864_v39, %v1052_v54  ;;  %v5253_v56 = vpack.c.bf16 %v536_v47, %v536_v47  ;;  %v1597_v8 = vor.u32 %v1596_v45, %v1592_v31 }
  0x8c   : > { %v1281_v59 = vld [vmem:[#allocation2 + $0xa0] sm:$0xf]  ;;  %497 = vst [vmem:[#allocation2 + $0xb0] sm:$0x1] %v496_v58  ;;  %v1605_v44 = vshrl.u32 %v1280_v48, 16  ;;  %v1608_v4 = vshll.u32 %v1280_v48, 16  ;;  %v873_v9 = vsel %vm5527_vm10, %v865_v40, %v872_v60 }
  0x8d   : > { %v1614_v5 = vshll.u32 %v1281_v59, 16  ;;  %v1618_v6 = vshrl.u32 %v1281_v59, 16  ;;  %1054 = vst [vmem:[#allocation2 + $0xa8] sm:$0xf] %v1053_v62  ;;  %v1049_v57 = vld [vmem:[#allocation2 + $0xa4] sm:$0x1]  ;;  %v1593_v7 = vsel %vm5548_vm11, %v1588_v36, %v1592_v31 }
  0x8e   : > { %v1050_v10 = vsel %vm5462_vm4, %v857_v52, %v1049_v57  ;;  %v498_v30 = vld [vmem:[#allocation2 + $0xbc] sm:$0x1]  ;;  %1724 = vrot.lane.b32.xlu0 %v1593_v7, %s5404_s24  ;;  %v1607_v11 = vrot.slane %v1605_v44, 4  ;;  %v1610_v3 = vrot.slane %v1608_v4, 5  ;;  %1055 = vst.msk [vmem:[#allocation2 + $0xac] sm:$0xf] %vm958_vm3, %v873_v9 }
  0x8f   : > { %v1616_v12 = vrot.slane %v1614_v5, 5  ;;  %1051 = vst [vmem:[#allocation2 + $0xa4] sm:$0x1] %v1050_v10  ;;  %v1620_v13 = vrot.slane %v1618_v6, 4  ;;  %v1191_v14 = vld [vmem:[#allocation2 + $0x54] sm:$0xf] }
  0x90   : > { %v876_v1 = vshrl.u32 %v5252_v55, 16  ;;  %v879_v15 = vshll.u32 %v5252_v55, 16  ;;  %v884_v16 = vshrl.u32 %v5253_v56, 16  ;;  %v887_v17 = vshll.u32 %v5253_v56, 16  ;;  %1223 = vst.msk [vmem:[#allocation3 + $0x38] sm:$0xf] %vm958_vm3, %v1191_v14 }
  0x91   : > { %v1190_v19 = vld [vmem:[#allocation2 + $0x4c] sm:$0xf]  ;;  %v1611_v20 = vor.u32 %v1610_v3, %v1607_v11  ;;  %v1279_v21 = vld [vmem:[#allocation2 + $0x98] sm:$0x1]  ;;  %v874_v22 = vrot.slane %v5853_v51, 4  ;;  %v1598_v23 = vrot.slane %v1597_v8, 4  ;;  %v1621_v28 = vor.u32 %v1620_v13, %v1616_v12 }
  0x92   : > { %1222 = vst.msk [vmem:[#allocation3 + $0x34] sm:$0xf] %vm958_vm3, %v1190_v19  ;;  %v1600_v24 = vshll.u32 %v1279_v21, 16  ;;  %v878_v26 = vrot.slane %v876_v1, 7  ;;  %v886_v46 = vrot.slane %v884_v16, 7  ;;  %v499_v29 = vsel %vm5467_vm5, 0, %v498_v30 }
  0x93   : > { %v1612_v27 = vrot.slane %v1611_v20, 4  ;;  %v1059_v25 = vld [vmem:[#allocation2 + $0xb4] sm:$0xf]  ;;  %v1056_v61 = vld [vmem:[#allocation2 + $0xb0] sm:$0x1]  ;;  %v1622_v54 = vrot.slane %v1621_v28, 4 }
  0x94   : > { %v1602_v32 = vrot.slane %v1600_v24, 5  ;;  %v1283_v34 = vld [vmem:[#allocation2 + $0xa8] sm:$0xf]  ;;  %v881_v35 = vor.u32 %v879_v15, %v878_v26  ;;  %v882_v37 = vrot.slane %v878_v26, 4  ;;  %v889_v38 = vor.u32 %v887_v17, %v886_v46  ;;  %500 = vst [vmem:[#allocation2 + $0xbc] sm:$0x1] %v499_v29 }
  0x95   : > { %v1617_v39 = vsel %vm5548_vm11, %v1612_v27, %v1616_v12  ;;  %v1629_v40 = vshrl.u32 %v1283_v34, 16  ;;  %v1632_v41 = vshll.u32 %v1283_v34, 16  ;;  %v1057_v31 = vsel %vm5462_vm4, %v874_v22, %v1056_v61  ;;  %v1284_v43 = vld [vmem:[#allocation2 + $0xac] sm:$0xf]  ;;  %v1193_v36 = vld [vmem:[#allocation2 + $0x60] sm:$0xf] }
  0x96   : > { %1728 = vrot.lane.b32.xlu0 %v1617_v39, %s5404_s24  ;;  %v1603_v42 = vsel %vm5548_vm11, %v1598_v23, %v1602_v32  ;;  %v1282_v45 = vld [vmem:[#allocation2 + $0xa4] sm:$0x1]  ;;  %v890_v47 = vsel %vm5527_vm10, %v882_v37, %v889_v38  ;;  %v1060_v49 = vsel %vm5492_vm6, %v881_v35, %v1059_v25  ;;  %1058 = vst [vmem:[#allocation2 + $0xb0] sm:$0x1] %v1057_v31  ;;  %v1638_v52 = vshll.u32 %v1284_v43, 16 }
  0x97   : > { %1726 = vrot.lane.b32.xlu1 %v1603_v42, %s5404_s24  ;;  %v1631_v50 = vrot.slane %v1629_v40, 4  ;;  %v1634_v51 = vrot.slane %v1632_v41, 5  ;;  %v1642_v53 = vshrl.u32 %v1284_v43, 16  ;;  %1061 = vst [vmem:[#allocation2 + $0xb4] sm:$0xf] %v1060_v49  ;;  %v1624_v55 = vshll.u32 %v1282_v45, 16 }
  0x98   : > { %1062 = vst.msk [vmem:[#allocation2 + $0xb8] sm:$0xf] %vm958_vm3, %v890_v47  ;;  %v891_v58 = vrot.slane %v886_v46, 4  ;;  %v1640_v59 = vrot.slane %v1638_v52, 5  ;;  %1225 = vst.msk [vmem:[#allocation3 + $0x40] sm:$0xf] %vm958_vm3, %v1193_v36 }
  0x99   : > { %v1635_v48 = vor.u32 %v1634_v51, %v1631_v50  ;;  %v1644_v60 = vrot.slane %v1642_v53, 4  ;;  %v1192_v62 = vld [vmem:[#allocation2 + $0x58] sm:$0xf]  ;;  %v1626_v56 = vrot.slane %v1624_v55, 5  ;;  %v1195_v7 = vld [vmem:[#allocation2 + $0x6c] sm:$0xf] }
  0x9a   : > { %1224 = vst.msk [vmem:[#allocation3 + $0x3c] sm:$0xf] %vm958_vm3, %v1192_v62  ;;  %1227 = vst.msk [vmem:[#allocation3 + $0x48] sm:$0xf] %vm958_vm3, %v1195_v7  ;;  %v1805_v16 = vld [vmem:[#allocation2] sm:$0xe]  ;;  %v5905_v27 = vpop.permute.xlu0 %1678 }
  0x9b   : > { %v1636_v44 = vrot.slane %v1635_v48, 4  ;;  %v1645_v4 = vor.u32 %v1644_v60, %v1640_v59  ;;  %v1063_v5 = vld [vmem:[#allocation2 + $0xbc] sm:$0x1]  ;;  %v1627_v6 = vsel %vm5548_vm11, %v1622_v54, %v1626_v56  ;;  %v1194_v22 = vld [vmem:[#allocation2 + $0x64] sm:$0xf]  ;;  %vm1902_vm13 = vcmask 1046532  }
  0x9c   : > { %v1064_v57 = vsel %vm5462_vm4, %v891_v58, %v1063_v5  ;;  %1730 = vrot.lane.b32.xlu1 %v1627_v6, %s5404_s24  ;;  %v1806_v24 = vld [vmem:[#allocation2 + $0x4] sm:$0xf]  ;;  %1226 = vst.msk [vmem:[#allocation3 + $0x44] sm:$0xf] %vm958_vm3, %v1194_v22  ;;  %v1197_v28 = vld [vmem:[#allocation2 + $0x78] sm:$0xf]  ;;  %vm5910_vm14 = vmor %vm1901_vm12, %vm1902_vm13 }
  0x9d   : > { %v1641_v8 = vsel %vm5548_vm11, %v1636_v44, %v1640_v59  ;;  %v1285_v9 = vld [vmem:[#allocation2 + $0xb0] sm:$0x1]  ;;  %1065 = vst [vmem:[#allocation2 + $0xbc] sm:$0x1] %v1064_v57  ;;  %v1646_v11 = vrot.slane %v1645_v4, 4  ;;  %v5101_v61 = vrot.slane %v1805_v16, 9 }
  0x9e   : > { %1732 = vrot.lane.b32.xlu0 %v1641_v8, %s5404_s24  ;;  %v1286_v10 = vld [vmem:[#allocation2 + $0xb4] sm:$0xf]  ;;  %v1648_v3 = vshll.u32 %v1285_v9, 16  ;;  %v1196_v25 = vld [vmem:[#allocation2 + $0x70] sm:$0xf]  ;;  %v1906_v35 = vrot.slane %v1806_v24, 5 }
  0x9f   : > { %v1287_v30 = vld [vmem:[#allocation2 + $0xb8] sm:$0xf]  ;;  %v1653_v12 = vshrl.u32 %v1286_v10, 16  ;;  %v1656_v13 = vshll.u32 %v1286_v10, 16  ;;  %v1807_v32 = vld [vmem:[#allocation2 + $0x8] sm:$0x1]  ;;  %v1677_v55 = vpop.permute.xlu0 %1676 }
  0xa0   : > { %v1662_v14 = vshll.u32 %v1287_v30, 16  ;;  %v1666_v1 = vshrl.u32 %v1287_v30, 16  ;;  %v1650_v15 = vrot.slane %v1648_v3, 5  ;;  %1229 = vst.msk [vmem:[#allocation3 + $0x50] sm:$0xf] %vm958_vm3, %v1197_v28  ;;  %v1908_v43 = vrot.slane %v1906_v35, 4 }
  0xa1   : > { %v1655_v17 = vrot.slane %v1653_v12, 4  ;;  %v1658_v19 = vrot.slane %v1656_v13, 5  ;;  %1228 = vst.msk [vmem:[#allocation3 + $0x4c] sm:$0xf] %vm958_vm3, %v1196_v25  ;;  %v1808_v40 = vld [vmem:[#allocation2 + $0xc] sm:$0xe]  ;;  %v1907_v51 = vsel %vm5910_vm14, %v5101_v61, %v1906_v35 }
  0xa2   : > { %v1664_v20 = vrot.slane %v1662_v14, 5  ;;  %v1668_v21 = vrot.slane %v1666_v1, 4  ;;  %v1651_v23 = vsel %vm5548_vm11, %v1646_v11, %v1650_v15  ;;  %v1809_v41 = vld [vmem:[#allocation2 + $0x10] sm:$0xf]  ;;  %v1909_v45 = vrot.slane %v1807_v32, 5  ;;  %v538_v25 = vld [vmem:[%s5499_s23 + $0xf8] sm:$0xff] }
  0xa3   : > { %v1659_v26 = vor.u32 %v1658_v19, %v1655_v17  ;;  %1734 = vrot.lane.b32.xlu1 %v1651_v23, %s5404_s24  ;;  %v1810_v47 = vld [vmem:[#allocation2 + $0x14] sm:$0x1]  ;;  %v1199_v49 = vld [vmem:[#allocation2 + $0x84] sm:$0xf]  ;;  %v1198_v50 = vld [vmem:[#allocation2 + $0x7c] sm:$0xf] }
  0xa4   : > { %v1669_v46 = vor.u32 %v1668_v21, %v1664_v20  ;;  %v1288_v29 = vld [vmem:[#allocation2 + $0xbc] sm:$0x1]  ;;  %v5102_v53 = vrot.slane %v1808_v40, 9  ;;  %v1913_v54 = vrot.slane %v1809_v41, 5  ;;  %1231 = vst.msk [vmem:[#allocation3 + $0x58] sm:$0xf] %vm958_vm3, %v1199_v49  ;;  %v1910_v59 = vsel %vm5910_vm14, %v1908_v43, %v1909_v45  ;;  %v1681_v4 = vpop.permute.xlu1 %1680 }
  0xa5   : > { %v1660_v34 = vrot.slane %v1659_v26, 4  ;;  %v1672_v38 = vshll.u32 %v1288_v29, 16  ;;  %1230 = vst.msk [vmem:[#allocation3 + $0x54] sm:$0xf] %vm958_vm3, %v1198_v50  ;;  %v1811_v58 = vld [vmem:[#allocation2 + $0x18] sm:$0xe] }
  0xa6   : > { %v1670_v37 = vrot.slane %v1669_v46, 4  ;;  %v1812_v36 = vld [vmem:[#allocation2 + $0x1c] sm:$0xf]  ;;  %v1201_v48 = vld [vmem:[#allocation2 + $0x90] sm:$0xf]  ;;  %v1915_v60 = vrot.slane %v1913_v54, 4  ;;  %v1914_v5 = vsel %vm5910_vm14, %v5102_v53, %v1913_v54 }
  0xa7   : > { %v1665_v31 = vsel %vm5548_vm11, %v1660_v34, %v1664_v20  ;;  %v1674_v42 = vrot.slane %v1672_v38, 5  ;;  %v1916_v62 = vrot.slane %v1810_v47, 5  ;;  %1233 = vst.msk [vmem:[#allocation3 + $0x60] sm:$0xf] %vm958_vm3, %v1201_v48  ;;  %v1200_v56 = vld [vmem:[#allocation2 + $0x88] sm:$0xf]  ;;  %v1685_v12 = vpop.permute.xlu0 %1684 }
  0xa8   : > { %1736 = vrot.lane.b32.xlu0 %v1665_v31, %s5404_s24  ;;  %v1813_v44 = vld [vmem:[#allocation2 + $0x20] sm:$0x1]  ;;  %1232 = vst.msk [vmem:[#allocation3 + $0x5c] sm:$0xf] %vm958_vm3, %v1200_v56  ;;  %v5103_v6 = vrot.slane %v1811_v58, 9  ;;  %v1920_v57 = vrot.slane %v1812_v36, 5  ;;  %v1683_v14 = vpop.permute.xlu1 %1682  ;;  %v5255_v31 = vpack.c.bf16 %v538_v25, %v538_v25 }
  0xa9   : > { %v1675_v52 = vsel %vm5548_vm11, %v1670_v37, %v1674_v42  ;;  %v1203_v7 = vld [vmem:[#allocation2 + $0x9c] sm:$0xf]  ;;  %v1814_v8 = vld [vmem:[#allocation2 + $0x24] sm:$0xe]  ;;  %v1815_v9 = vld [vmem:[#allocation2 + $0x28] sm:$0xf]  ;;  %v1917_v30 = vsel %vm5910_vm14, %v1915_v60, %v1916_v62 }
  0xaa   : > { %1738 = vrot.lane.b32.xlu1 %v1675_v52, %s5404_s24  ;;  %1235 = vst.msk [vmem:[#allocation3 + $0x68] sm:$0xf] %vm958_vm3, %v1203_v7  ;;  %v1202_v10 = vld [vmem:[#allocation2 + $0x94] sm:$0xf]  ;;  %v1922_v11 = vrot.slane %v1920_v57, 4  ;;  %v1923_v3 = vrot.slane %v1813_v44, 5  ;;  %v1921_v16 = vsel %vm5910_vm14, %v5103_v6, %v1920_v57 }
  0xab   : > { %1234 = vst.msk [vmem:[#allocation3 + $0x64] sm:$0xf] %vm958_vm3, %v1202_v10  ;;  %v1816_v13 = vld [vmem:[#allocation2 + $0x2c] sm:$0x1]  ;;  %v1205_v1 = vld [vmem:[#allocation2 + $0xa8] sm:$0xf]  ;;  %v1689_v46 = vpop.permute.xlu0 %1688 }
  0xac   : > { %2016 = vrot.lane.b32.xlu0 %v1907_v51, %s5405_s25  ;;  %v537_v15 = vld [vmem:[%s5499_s23 + $0xf0] sm:$0xff]  ;;  %v5104_v17 = vrot.slane %v1814_v8, 9  ;;  %v1927_v19 = vrot.slane %v1815_v9, 5  ;;  %vm1772_vm15 = vcmask 60448   ;;  %1237 = vst.msk [vmem:[#allocation3 + $0x70] sm:$0xf] %vm958_vm3, %v1205_v1  ;;  %v1924_v23 = vsel %vm5910_vm14, %v1922_v11, %v1923_v3  ;;  %v1687_v61 = vpop.permute.xlu1 %1686 }
  0xad   : > { %v1204_v20 = vld [vmem:[#allocation2 + $0xa0] sm:$0xf]  ;;  %v1817_v21 = vld [vmem:[#allocation2 + $0x30] sm:$0xe]  ;;  %v1818_v22 = vld [vmem:[#allocation2 + $0x34] sm:$0xf]  ;;  %v5254_v28 = vpack.c.bf16 %v537_v15, %v537_v15 }
  0xae   : > { %2018 = vrot.lane.b32.xlu1 %v1910_v59, %s5405_s25  ;;  %1774 = vst.msk [vmem:[#allocation3 + $0x4] sm:$0xf] %vm1772_vm15, %v5905_v27  ;;  %1773 = vst.msk [vmem:[#allocation3] sm:$0xf] %vm1772_vm15, %v1677_v55  ;;  %v1929_v24 = vrot.slane %v1927_v19, 4  ;;  %v1930_v26 = vrot.slane %v1816_v13, 5  ;;  %v1928_v34 = vsel %vm5910_vm14, %v5104_v17, %v1927_v19 }
  0xaf   : > { %1775 = vst.msk [vmem:[#allocation3 + $0x8] sm:$0xf] %vm1772_vm15, %v1681_v4  ;;  %1777 = vst.msk [vmem:[#allocation3 + $0x10] sm:$0xf] %vm1772_vm15, %v1685_v12  ;;  %v1819_v27 = vld [vmem:[#allocation2 + $0x38] sm:$0x1] }
  0xb0   : > { %2020 = vrot.lane.b32.xlu0 %v1914_v5, %s5405_s25  ;;  %1776 = vst.msk [vmem:[#allocation3 + $0xc] sm:$0xf] %vm1772_vm15, %v1683_v14  ;;  %1779 = vst.msk [vmem:[#allocation3 + $0x18] sm:$0xf] %vm1772_vm15, %v1689_v46  ;;  %v1207_v29 = vld [vmem:[#allocation2 + $0xb4] sm:$0xf]  ;;  %v1931_v42 = vsel %vm5910_vm14, %v1929_v24, %v1930_v26  ;;  %v1691_v50 = vpop.permute.xlu1 %1690 }
  0xb1   : > { %1236 = vst.msk [vmem:[#allocation3 + $0x6c] sm:$0xf] %vm958_vm3, %v1204_v20  ;;  %v1206_v32 = vld [vmem:[#allocation2 + $0xac] sm:$0xf]  ;;  %v5105_v35 = vrot.slane %v1817_v21, 9  ;;  %v1934_v37 = vrot.slane %v1818_v22, 5 }
  0xb2   : > { %2022 = vrot.lane.b32.xlu1 %v1917_v30, %s5405_s25  ;;  %1778 = vst.msk [vmem:[#allocation3 + $0x14] sm:$0xf] %vm1772_vm15, %v1687_v61  ;;  %v1820_v38 = vld [vmem:[#allocation2 + $0x3c] sm:$0xe]  ;;  %v1821_v40 = vld [vmem:[#allocation2 + $0x40] sm:$0xf] }
  0xb3   : > { %1239 = vst.msk [vmem:[#allocation3 + $0x78] sm:$0xf] %vm958_vm3, %v1207_v29  ;;  %1238 = vst.msk [vmem:[#allocation3 + $0x74] sm:$0xf] %vm958_vm3, %v1206_v32  ;;  %v1208_v41 = vld [vmem:[#allocation2 + $0xb8] sm:$0xf]  ;;  %v1935_v52 = vsel %vm5910_vm14, %v5105_v35, %v1934_v37 }
  0xb4   : > { %2024 = vrot.lane.b32.xlu0 %v1921_v16, %s5405_s25  ;;  %v1936_v43 = vrot.slane %v1934_v37, 4  ;;  %v1937_v45 = vrot.slane %v1819_v27, 5  ;;  %1240 = vst.msk [vmem:[#allocation3 + $0x7c] sm:$0xf] %vm958_vm3, %v1208_v41  ;;  %v893_v47 = vshrl.u32 %v5254_v28, 16  ;;  %v5106_v53 = vrot.slane %v1820_v38, 9 }
  0xb5   : > { %v1822_v49 = vld [vmem:[#allocation2 + $0x44] sm:$0x1]  ;;  %v445_v51 = vld [vmem:[#allocation2 + $0xc0] sm:$0x1]  ;;  %v1941_v54 = vrot.slane %v1821_v40, 5  ;;  %v896_v59 = vshll.u32 %v5254_v28, 16 }
  0xb6   : > { %2026 = vrot.lane.b32.xlu1 %v1924_v23, %s5405_s25  ;;  %v1823_v55 = vld [vmem:[#allocation2 + $0x48] sm:$0xe]  ;;  %1780 = vst.msk [vmem:[#allocation3 + $0x1c] sm:$0xf] %vm1772_vm15, %v1691_v50  ;;  %v446_v58 = vsel %vm5462_vm4, 0, %v445_v51  ;;  %v895_v48 = vrot.slane %v893_v47, 7  ;;  %v1938_v56 = vsel %vm5910_vm14, %v1936_v43, %v1937_v45 }
  0xb7   : > { %v1824_v36 = vld [vmem:[#allocation2 + $0x4c] sm:$0xf]  ;;  %447 = vst [vmem:[#allocation2 + $0xc0] sm:$0x1] %v446_v58  ;;  %v901_v60 = vshrl.u32 %v5255_v31, 16  ;;  %v904_v62 = vshll.u32 %v5255_v31, 16  ;;  %v1942_v7 = vsel %vm5910_vm14, %v5106_v53, %v1941_v54 }
  0xb8   : > { %2028 = vrot.lane.b32.xlu0 %v1928_v34, %s5405_s25  ;;  %v1943_v44 = vrot.slane %v1941_v54, 4  ;;  %v1944_v4 = vrot.slane %v1822_v49, 5  ;;  %v1825_v5 = vld [vmem:[#allocation2 + $0x50] sm:$0x1]  ;;  %v899_v6 = vrot.slane %v895_v48, 4  ;;  %v5107_v8 = vrot.slane %v1823_v55, 9  ;;  %v1693_v15 = vpop.permute.xlu0 %1692 }
  0xb9   : > { %v5973_v57 = vrot.slane %v901_v60, 7  ;;  %v1948_v9 = vrot.slane %v1824_v36, 5  ;;  %v1826_v10 = vld [vmem:[#allocation2 + $0x54] sm:$0xe]  ;;  %v1827_v30 = vld [vmem:[#allocation2 + $0x58] sm:$0xf]  ;;  %v898_v11 = vor.u32 %v896_v59, %v895_v48 }
  0xba   : > { %2030 = vrot.lane.b32.xlu1 %v1931_v42, %s5405_s25  ;;  %v1945_v12 = vsel %vm5910_vm14, %v1943_v44, %v1944_v4  ;;  %v1951_v14 = vrot.slane %v1825_v5, 5  ;;  %v1828_v1 = vld [vmem:[#allocation2 + $0x5c] sm:$0x1]  ;;  %v5108_v19 = vrot.slane %v1826_v10, 9  ;;  %v1955_v20 = vrot.slane %v1827_v30, 5 }
  0xbb   : > { %v906_v3 = vor.u32 %v904_v62, %v5973_v57  ;;  %v1950_v13 = vrot.slane %v1948_v9, 4  ;;  %v1949_v17 = vsel %vm5910_vm14, %v5107_v8, %v1948_v9  ;;  %1781 = vst.msk [vmem:[#allocation3 + $0x20] sm:$0xf] %vm1772_vm15, %v1693_v15  ;;  %v1829_v22 = vld [vmem:[#allocation2 + $0x60] sm:$0xe]  ;;  %v1958_v46 = vrot.slane %v1828_v1, 5 }
  0xbc   : > { %2032 = vrot.lane.b32.xlu0 %v1935_v52, %s5405_s25  ;;  %v1830_v23 = vld [vmem:[#allocation2 + $0x64] sm:$0xf]  ;;  %v1957_v26 = vrot.slane %v1955_v20, 4  ;;  %v1831_v28 = vld [vmem:[#allocation2 + $0x68] sm:$0x1]  ;;  %v1956_v25 = vsel %vm5910_vm14, %v5108_v19, %v1955_v20  ;;  %v5109_v27 = vrot.slane %v1829_v22, 9 }
  0xbd   : > { %v907_v16 = vsel %vm5527_vm10, %v899_v6, %v906_v3  ;;  %v1952_v63 = vsel %vm5910_vm14, %v1950_v13, %v1951_v14  ;;  %v1962_v61 = vrot.slane %v1830_v23, 5  ;;  %v1832_v29 = vld [vmem:[#allocation2 + $0x6c] sm:$0xe]  ;;  %v1833_v32 = vld [vmem:[#allocation2 + $0x70] sm:$0xf]  ;;  %v1965_v37 = vrot.slane %v1831_v28, 5 }
  0xbe   : > { %2034 = vrot.lane.b32.xlu1 %v1938_v56, %s5405_s25  ;;  %v1066_v21 = vld [vmem:[#allocation2 + $0xc0] sm:$0xf]  ;;  %1069 = vst.msk [vmem:[#allocation2 + $0xc4] sm:$0xf] %vm958_vm3, %v907_v16  ;;  %v1959_v34 = vsel %vm5910_vm14, %v1957_v26, %v1958_v46  ;;  %v1834_v38 = vld [vmem:[#allocation2 + $0x74] sm:$0x1] }
  0xbf   : > { %v1067_v24 = vsel %vm5492_vm6, %v898_v11, %v1066_v21  ;;  %v1964_v35 = vrot.slane %v1962_v61, 4  ;;  %v1963_v31 = vsel %vm5910_vm14, %v5109_v27, %v1962_v61  ;;  %v5110_v42 = vrot.slane %v1832_v29, 9  ;;  %v1835_v45 = vld [vmem:[#allocation2 + $0x78] sm:$0xe]  ;;  %v1836_v47 = vld [vmem:[#allocation2 + $0x7c] sm:$0xf] }
  0xc0   : > { %2036 = vrot.lane.b32.xlu0 %v1942_v7, %s5405_s25  ;;  %1068 = vst [vmem:[#allocation2 + $0xc0] sm:$0xf] %v1067_v24  ;;  %v1969_v43 = vrot.slane %v1833_v32, 5  ;;  %v1972_v51 = vrot.slane %v1834_v38, 5  ;;  %v1837_v52 = vld [vmem:[#allocation2 + $0x80] sm:$0x1] }
  0xc1   : > { %v1697_v40 = vpop.permute.xlu0 %1696  ;;  %v1695_v41 = vpop.permute.xlu1 %1694  ;;  %v1966_v49 = vsel %vm5910_vm14, %v1964_v35, %v1965_v37  ;;  %v5111_v55 = vrot.slane %v1835_v45, 9  ;;  %v1976_v58 = vrot.slane %v1836_v47, 5  ;;  %v1838_v36 = vld [vmem:[#allocation2 + $0x84] sm:$0xe]  ;;  %v1839_v48 = vld [vmem:[#allocation2 + $0x88] sm:$0xf] }
  0xc2   : > { %2038 = vrot.lane.b32.xlu1 %v1945_v12, %s5405_s25  ;;  %1783 = vst.msk [vmem:[#allocation3 + $0x28] sm:$0xf] %vm1772_vm15, %v1697_v40  ;;  %1782 = vst.msk [vmem:[#allocation3 + $0x24] sm:$0xf] %vm1772_vm15, %v1695_v41  ;;  %v1971_v50 = vrot.slane %v1969_v43, 4  ;;  %v1970_v54 = vsel %vm5910_vm14, %v5110_v42, %v1969_v43  ;;  %v1979_v56 = vrot.slane %v1837_v52, 5 }
  0xc3   : > { %v1978_v62 = vrot.slane %v1976_v58, 4  ;;  %v1840_v44 = vld [vmem:[#allocation2 + $0x8c] sm:$0x1]  ;;  %v1977_v4 = vsel %vm5910_vm14, %v5111_v55, %v1976_v58  ;;  %v5112_v5 = vrot.slane %v1838_v36, 9  ;;  %v1983_v6 = vrot.slane %v1839_v48, 5 }
  0xc4   : > { %2040 = vrot.lane.b32.xlu0 %v1949_v17, %s5405_s25  ;;  %v1973_v60 = vsel %vm5910_vm14, %v1971_v50, %v1972_v51  ;;  %v1841_v7 = vld [vmem:[#allocation2 + $0x90] sm:$0xe]  ;;  %v1842_v8 = vld [vmem:[#allocation2 + $0x94] sm:$0xf]  ;;  %v1986_v30 = vrot.slane %v1840_v44, 5  ;;  %vm2112_vm0 = vcmask 93248  }
  0xc5   : > { %v1699_v53 = vpop.permute.xlu1 %1698  ;;  %v1980_v9 = vsel %vm5910_vm14, %v1978_v62, %v1979_v56  ;;  %v1985_v10 = vrot.slane %v1983_v6, 4  ;;  %v1843_v3 = vld [vmem:[#allocation2 + $0x98] sm:$0x1]  ;;  %v1984_v12 = vsel %vm5910_vm14, %v5112_v5, %v1983_v6  ;;  %v5113_v13 = vrot.slane %v1841_v7, 9  ;;  %v1844_v1 = vld [vmem:[#allocation2 + $0x9c] sm:$0xe] }
  0xc6   : > { %2042 = vrot.lane.b32.xlu1 %v1952_v63, %s5405_s25  ;;  %1784 = vst.msk [vmem:[#allocation3 + $0x2c] sm:$0xf] %vm1772_vm15, %v1699_v53  ;;  %v1990_v14 = vrot.slane %v1842_v8, 5  ;;  %v1845_v15 = vld [vmem:[#allocation2 + $0xa0] sm:$0xf]  ;;  %v1993_v20 = vrot.slane %v1843_v3, 5 }
  0xc7   : > { %v1701_v59 = vpop.permute.xlu0 %1700  ;;  %v1987_v17 = vsel %vm5910_vm14, %v1985_v10, %v1986_v30  ;;  %v1846_v21 = vld [vmem:[#allocation2 + $0xa4] sm:$0x1]  ;;  %v5114_v23 = vrot.slane %v1844_v1, 9  ;;  %v1997_v24 = vrot.slane %v1845_v15, 5  ;;  %v1847_v63 = vld [vmem:[#allocation2 + $0xa8] sm:$0xe] }
  0xc8   : > { %2044 = vrot.lane.b32.xlu0 %v1956_v25, %s5405_s25  ;;  %1785 = vst.msk [vmem:[#allocation3 + $0x30] sm:$0xf] %vm1772_vm15, %v1701_v59  ;;  %v1992_v19 = vrot.slane %v1990_v14, 4  ;;  %v1991_v22 = vsel %vm5910_vm14, %v5113_v13, %v1990_v14  ;;  %v1848_v26 = vld [vmem:[#allocation2 + $0xac] sm:$0xf]  ;;  %v2000_v27 = vrot.slane %v1846_v21, 5 }
  0xc9   : > { %v1999_v25 = vrot.slane %v1997_v24, 4  ;;  %v1849_v61 = vld [vmem:[#allocation2 + $0xb0] sm:$0x1]  ;;  %v1998_v29 = vsel %vm5910_vm14, %v5114_v23, %v1997_v24  ;;  %v5115_v32 = vrot.slane %v1847_v63, 9  ;;  %v1850_v35 = vld [vmem:[#allocation2 + $0xb4] sm:$0xe] }
  0xca   : > { %2046 = vrot.lane.b32.xlu1 %v1959_v34, %s5405_s25  ;;  %v1994_v28 = vsel %vm5910_vm14, %v1992_v19, %v1993_v20  ;;  %v2004_v34 = vrot.slane %v1848_v26, 5  ;;  %v1851_v37 = vld [vmem:[#allocation2 + $0xb8] sm:$0xf]  ;;  %v2007_v41 = vrot.slane %v1849_v61, 5  ;;  %v5116_v43 = vrot.slane %v1850_v35, 9 }
  0xcb   : > { %v2001_v38 = vsel %vm5910_vm14, %v1999_v25, %v2000_v27  ;;  %v2011_v45 = vrot.slane %v1851_v37, 5  ;;  %v2145_v55 = vld [vmem:[#allocation2 + $0xc] sm:$0xf]  ;;  %v2146_v36 = vld [vmem:[#allocation2 + $0x10] sm:$0xf]  ;;  %vm2305_vm1 = vcmask 126048  }
  0xcc   : > { %2048 = vrot.lane.b32.xlu0 %v1963_v31, %s5405_s25  ;;  %v1703_v11 = vpop.permute.xlu1 %1702  ;;  %v2006_v40 = vrot.slane %v2004_v34, 4  ;;  %v1852_v31 = vld [vmem:[#allocation2 + $0xbc] sm:$0x1]  ;;  %v2005_v42 = vsel %vm5910_vm14, %v5115_v32, %v2004_v34  ;;  %v2147_v48 = vld [vmem:[#allocation2 + $0x18] sm:$0xf]  ;;  %vm4519_vm2 = vcmask 1041408  }
  0xcd   : > { %1786 = vst.msk [vmem:[#allocation3 + $0x34] sm:$0xf] %vm1772_vm15, %v1703_v11  ;;  %v2013_v50 = vrot.slane %v2011_v45, 4  ;;  %v2014_v51 = vrot.slane %v1852_v31, 5  ;;  %v2012_v52 = vsel %vm5910_vm14, %v5116_v43, %v2011_v45  ;;  %v2149_v56 = vld [vmem:[#allocation2 + $0x24] sm:$0xf] }
  0xce   : > { %2050 = vrot.lane.b32.xlu1 %v1966_v49, %s5405_s25  ;;  %v2008_v49 = vsel %vm5910_vm14, %v2006_v40, %v2007_v41  ;;  %v2150_v44 = vld [vmem:[#allocation2 + $0x28] sm:$0xf]  ;;  %v2152_v7 = vld [vmem:[#allocation2 + $0x34] sm:$0xf]  ;;  %v2153_v8 = vld [vmem:[#allocation2 + $0x3c] sm:$0xf] }
  0xcf   : > { %v1705_v16 = vpop.permute.xlu0 %1704  ;;  %v2015_v53 = vsel %vm5910_vm14, %v2013_v50, %v2014_v51  ;;  %v2155_v30 = vld [vmem:[#allocation2 + $0x48] sm:$0xf]  ;;  %v2156_v11 = vld [vmem:[#allocation2 + $0x4c] sm:$0xf]  ;;  %v2157_v3 = vld [vmem:[#allocation2 + $0x54] sm:$0xf] }
  0xd0   : > { %2052 = vrot.lane.b32.xlu0 %v1970_v54, %s5405_s25  ;;  %1787 = vst.msk [vmem:[#allocation3 + $0x38] sm:$0xf] %vm1772_vm15, %v1705_v16  ;;  %v2158_v13 = vld [vmem:[#allocation2 + $0x58] sm:$0xf]  ;;  %v2159_v14 = vld [vmem:[#allocation2 + $0x60] sm:$0xf] }
  0xd1   : > { %v2160_v1 = vld [vmem:[#allocation2 + $0x64] sm:$0xf]  ;;  %v2161_v16 = vld [vmem:[#allocation2 + $0x6c] sm:$0xf]  ;;  %v2162_v19 = vld [vmem:[#allocation2 + $0x70] sm:$0xf] }
  0xd2   : > { %2054 = vrot.lane.b32.xlu1 %v1973_v60, %s5405_s25  ;;  %v2148_v60 = vld [vmem:[#allocation2 + $0x1c] sm:$0xf]  ;;  %v2163_v20 = vld [vmem:[#allocation2 + $0x78] sm:$0xf]  ;;  %v2165_v24 = vld [vmem:[#allocation2 + $0x84] sm:$0xf] }
  0xd3   : > { %v1707_v46 = vpop.permute.xlu1 %1706  ;;  %v2164_v21 = vld [vmem:[#allocation2 + $0x7c] sm:$0xf]  ;;  %v2166_v63 = vld [vmem:[#allocation2 + $0x88] sm:$0xf]  ;;  %v2338_v26 = vld [vmem:[#allocation2 + $0xc] sm:$0xf] }
  0xd4   : > { %2056 = vrot.lane.b32.xlu0 %v1977_v4, %s5405_s25  ;;  %1788 = vst.msk [vmem:[#allocation3 + $0x3c] sm:$0xf] %vm1772_vm15, %v1707_v46  ;;  %v2151_v4 = vld [vmem:[#allocation2 + $0x30] sm:$0xf]  ;;  %v2168_v27 = vld [vmem:[#allocation2 + $0x94] sm:$0xf] }
  0xd5   : > { %v2167_v46 = vld [vmem:[#allocation2 + $0x90] sm:$0xf]  ;;  %v2387_v61 = vshrl.u32 %v2338_v26, 16  ;;  %v2341_v35 = vld [vmem:[#allocation2 + $0x18] sm:$0xf]  ;;  %vm2866_vm3 = vcmask 158848  }
  0xd6   : > { %2058 = vrot.lane.b32.xlu1 %v1980_v9, %s5405_s25  ;;  %v2154_v9 = vld [vmem:[#allocation2 + $0x40] sm:$0xf]  ;;  %v2339_v25 = vld [vmem:[#allocation2 + $0x10] sm:$0xf]  ;;  %v2169_v37 = vld [vmem:[#allocation2 + $0x9c] sm:$0xf] }
  0xd7   : > { %v2396_v32 = vshll.u32 %v2339_v25, 16  ;;  %v2400_v34 = vshrl.u32 %v2339_v25, 16  ;;  %v2170_v40 = vld [vmem:[#allocation2 + $0xa0] sm:$0xf]  ;;  %v2389_v41 = vrot.slane %v2387_v61, 4  ;;  %v2411_v43 = vshrl.u32 %v2341_v35, 16 }
  0xd8   : > { %2060 = vrot.lane.b32.xlu0 %v1984_v12, %s5405_s25  ;;  %v2414_v45 = vshll.u32 %v2341_v35, 16  ;;  %v2171_v51 = vld [vmem:[#allocation2 + $0xa8] sm:$0xf]  ;;  %v2351_v61 = vld [vmem:[#allocation2 + $0x40] sm:$0xf]  ;;  %vm3203_vm7 = vcmask 191648  }
  0xd9   : > { %v2402_v50 = vrot.slane %v2400_v34, 4  ;;  %vm4470_vm8 = vcmask 293888   ;;  %vm4718_vm9 = vcmask 64512  }
  0xda   : > { %2062 = vrot.lane.b32.xlu1 %v1987_v17, %s5405_s25 }
  0xdc   : > { %2064 = vrot.lane.b32.xlu0 %v1991_v22, %s5405_s25 }
  0xde   : > { %2066 = vrot.lane.b32.xlu1 %v1994_v28, %s5405_s25  ;;  %v1709_v47 = vpop.permute.xlu0 %1708 }
  0xdf   : > { %1789 = vst.msk [vmem:[#allocation3 + $0x40] sm:$0xf] %vm1772_vm15, %v1709_v47 }
  0xe0   : > { %2068 = vrot.lane.b32.xlu0 %v1998_v29, %s5405_s25  ;;  %v2390_v29 = vshll.u32 %v2338_v26, 16 }
  0xe2   : > { %2070 = vrot.lane.b32.xlu1 %v2001_v38, %s5405_s25  ;;  %v2392_v31 = vrot.slane %v2390_v29, 5  ;;  %v2176_v29 = vld [vmem:[#allocation2 + $0xc4] sm:$0xf] }
  0xe4   : > { %2072 = vrot.lane.b32.xlu0 %v2005_v42, %s5405_s25  ;;  %v2342_v42 = vld [vmem:[#allocation2 + $0x1c] sm:$0xf] }
  0xe5   : > { %v1713_v54 = vpop.permute.xlu0 %1712 }
  0xe6   : > { %2074 = vrot.lane.b32.xlu1 %v2008_v49, %s5405_s25  ;;  %1791 = vst.msk [vmem:[#allocation3 + $0x48] sm:$0xf] %vm1772_vm15, %v1713_v54  ;;  %v1711_v58 = vpop.permute.xlu1 %1710  ;;  %v6096_v49 = vrot.slane %v2396_v32, 5 }
  0xe7   : > { %1790 = vst.msk [vmem:[#allocation3 + $0x44] sm:$0xf] %vm1772_vm15, %v1711_v58  ;;  %v2424_v58 = vshrl.u32 %v2342_v42, 16 }
  0xe8   : > { %2076 = vrot.lane.b32.xlu0 %v2012_v52, %s5405_s25  ;;  %v2340_v52 = vld [vmem:[#allocation2 + $0x14] sm:$0x1] }
  0xea   : > { %2078 = vrot.lane.b32.xlu1 %v2015_v53, %s5405_s25  ;;  %v2344_v53 = vld [vmem:[#allocation2 + $0x24] sm:$0xf] }
  0xeb   : > { %v1717_v59 = vpop.permute.xlu0 %1716 }
  0xec   : > { %2209 = vrot.lane.b32.xlu0 %v2145_v55, %s5406_s26  ;;  %1793 = vst.msk [vmem:[#allocation3 + $0x50] sm:$0xf] %vm1772_vm15, %v1717_v59  ;;  %v1715_v62 = vpop.permute.xlu1 %1714  ;;  %v2420_v55 = vshll.u32 %v2342_v42, 16  ;;  %v2413_v59 = vrot.slane %v2411_v43, 4  ;;  %v2346_v43 = vld [vmem:[#allocation2 + $0x2c] sm:$0x1] }
  0xed   : > { %1792 = vst.msk [vmem:[#allocation3 + $0x4c] sm:$0xf] %vm1772_vm15, %v1715_v62 }
  0xee   : > { %2211 = vrot.lane.b32.xlu1 %v2146_v36, %s5406_s26  ;;  %v2172_v36 = vld [vmem:[#allocation2 + $0xac] sm:$0xf] }
  0xf0   : > { %2213 = vrot.lane.b32.xlu0 %v2147_v48, %s5406_s26  ;;  %v2393_v48 = vor.u32 %v2392_v31, %v2389_v41 }
  0xf2   : > { %2215 = vrot.lane.b32.xlu1 %v2148_v60, %s5406_s26  ;;  %v2416_v60 = vrot.slane %v2414_v45, 5 }
  0xf4   : > { %2217 = vrot.lane.b32.xlu0 %v2149_v56, %s5406_s26  ;;  %v1721_v5 = vpop.permute.xlu0 %1720  ;;  %v1719_v6 = vpop.permute.xlu1 %1718  ;;  %v2403_v56 = vor.u32 %v2402_v50, %v6096_v49 }
  0xf5   : > { %1795 = vst.msk [vmem:[#allocation3 + $0x58] sm:$0xf] %vm1772_vm15, %v1721_v5  ;;  %1794 = vst.msk [vmem:[#allocation3 + $0x54] sm:$0xf] %vm1772_vm15, %v1719_v6  ;;  %v2435_v5 = vshrl.u32 %v2344_v53, 16  ;;  %v2438_v6 = vshll.u32 %v2344_v53, 16 }
  0xf6   : > { %2219 = vrot.lane.b32.xlu1 %v2150_v44, %s5406_s26  ;;  %v2406_v44 = vshll.u32 %v2340_v52, 16  ;;  %v2353_v52 = vld [vmem:[#allocation2 + $0x48] sm:$0xf] }
  0xf8   : > { %2221 = vrot.lane.b32.xlu0 %v2151_v4, %s5406_s26  ;;  %v2345_v4 = vld [vmem:[#allocation2 + $0x28] sm:$0xf] }
  0xfa   : > { %2223 = vrot.lane.b32.xlu1 %v2152_v7, %s5406_s26  ;;  %v2173_v7 = vld [vmem:[#allocation2 + $0xb4] sm:$0xf] }
  0xfb   : > { %v1723_v10 = vpop.permute.xlu1 %1722 }
  0xfc   : > { %2225 = vrot.lane.b32.xlu0 %v2153_v8, %s5406_s26  ;;  %1796 = vst.msk [vmem:[#allocation3 + $0x5c] sm:$0xf] %vm1772_vm15, %v1723_v10  ;;  %v2174_v8 = vld [vmem:[#allocation2 + $0xb8] sm:$0xf]  ;;  %v6105_v10 = vrot.slane %v2420_v55, 5 }
  0xfe   : > { %2227 = vrot.lane.b32.xlu1 %v2154_v9, %s5406_s26 }
 0x100   : > { %2229 = vrot.lane.b32.xlu0 %v2155_v30, %s5406_s26  ;;  %v1725_v12 = vpop.permute.xlu0 %1724  ;;  %v2426_v30 = vrot.slane %v2424_v58, 4  ;;  %v2496_v58 = vshrl.u32 %v2351_v61, 16 }
 0x101   : > { %1797 = vst.msk [vmem:[#allocation3 + $0x60] sm:$0xf] %vm1772_vm15, %v1725_v12  ;;  %v2394_v12 = vrot.slane %v2393_v48, 4 }
 0x102   : > { %2231 = vrot.lane.b32.xlu1 %v2156_v11, %s5406_s26  ;;  %v2347_v11 = vld [vmem:[#allocation2 + $0x30] sm:$0xf]  ;;  %v2427_v25 = vor.u32 %v2426_v30, %v6105_v10 }
 0x104   : > { %2233 = vrot.lane.b32.xlu0 %v2157_v3, %s5406_s26  ;;  %v2348_v3 = vld [vmem:[#allocation2 + $0x34] sm:$0xf] }
 0x105   : > { %v2468_v26 = vshll.u32 %v2348_v3, 16 }
 0x106   : > { %2235 = vrot.lane.b32.xlu1 %v2158_v13, %s5406_s26  ;;  %v2417_v13 = vor.u32 %v2416_v60, %v2413_v59  ;;  %v2454_v59 = vshll.u32 %v2346_v43, 16 }
 0x107   : > { %v6122_v50 = vrot.slane %v2468_v26, 5 }
 0x108   : > { %2237 = vrot.lane.b32.xlu0 %v2159_v14, %s5406_s26  ;;  %v1729_v15 = vpop.permute.xlu0 %1728  ;;  %v2444_v14 = vshll.u32 %v2345_v4, 16  ;;  %v2418_v41 = vrot.slane %v2417_v13, 4 }
 0x109   : > { %1799 = vst.msk [vmem:[#allocation3 + $0x68] sm:$0xf] %vm1772_vm15, %v1729_v15  ;;  %v1727_v17 = vpop.permute.xlu1 %1726  ;;  %v2343_v15 = vld [vmem:[#allocation2 + $0x20] sm:$0x1] }
 0x10a   : > { %2239 = vrot.lane.b32.xlu1 %v2160_v1, %s5406_s26  ;;  %1798 = vst.msk [vmem:[#allocation3 + $0x64] sm:$0xf] %vm1772_vm15, %v1727_v17  ;;  %v2448_v1 = vshrl.u32 %v2345_v4, 16  ;;  %v2404_v17 = vrot.slane %v2403_v56, 4  ;;  %v6113_v32 = vrot.slane %v2444_v14, 5  ;;  %v2423_v4 = vsel %vm5548_vm11, %v2418_v41, %v6105_v10 }
 0x10b   : > { %v2354_v56 = vld [vmem:[#allocation2 + $0x4c] sm:$0xf] }
 0x10c   : > { %2241 = vrot.lane.b32.xlu0 %v2161_v16, %s5406_s26  ;;  %v2450_v34 = vrot.slane %v2448_v1, 4  ;;  %v2516_v13 = vshll.u32 %v2354_v56, 16  ;;  %v2520_v14 = vshrl.u32 %v2354_v56, 16  ;;  %v2498_v1 = vrot.slane %v2496_v58, 4 }
 0x10e   : > { %2243 = vrot.lane.b32.xlu1 %v2162_v19, %s5406_s26  ;;  %v1731_v22 = vpop.permute.xlu1 %1730  ;;  %v2408_v19 = vrot.slane %v2406_v44, 5  ;;  %v2451_v48 = vor.u32 %v2450_v34, %v6113_v32 }
 0x10f   : > { %1800 = vst.msk [vmem:[#allocation3 + $0x6c] sm:$0xf] %vm1772_vm15, %v1731_v22  ;;  %v2350_v22 = vld [vmem:[#allocation2 + $0x3c] sm:$0xf] }
 0x110   : > { %2245 = vrot.lane.b32.xlu0 %v2163_v20, %s5406_s26  ;;  %v1733_v23 = vpop.permute.xlu0 %1732  ;;  %v2437_v20 = vrot.slane %v2435_v5, 4  ;;  %v2483_v35 = vshrl.u32 %v2350_v22, 16  ;;  %v2409_v31 = vsel %vm5548_vm11, %v2404_v17, %v2408_v19  ;;  %v2507_v5 = vshrl.u32 %v2353_v52, 16  ;;  %v2352_v19 = vld [vmem:[#allocation2 + $0x44] sm:$0x1] }
 0x111   : > { %1801 = vst.msk [vmem:[#allocation3 + $0x70] sm:$0xf] %vm1772_vm15, %v1733_v23  ;;  %v2175_v23 = vld [vmem:[#allocation2 + $0xc0] sm:$0xf]  ;;  %v2502_v34 = vshll.u32 %v2352_v19, 16 }
 0x112   : > { %2247 = vrot.lane.b32.xlu1 %v2164_v21, %s5406_s26  ;;  %v2440_v21 = vrot.slane %v2438_v6, 5  ;;  %v2485_v60 = vrot.slane %v2483_v35, 4  ;;  %v2510_v6 = vshll.u32 %v2353_v52, 16  ;;  %v2522_v35 = vrot.slane %v2520_v14, 4 }
 0x114   : > { %2249 = vrot.lane.b32.xlu0 %v2165_v24, %s5406_s26  ;;  %v2459_v24 = vshrl.u32 %v2347_v11, 16  ;;  %v2441_v42 = vor.u32 %v2440_v21, %v2437_v20  ;;  %v2509_v21 = vrot.slane %v2507_v5, 4 }
 0x115   : > { %v1735_v28 = vpop.permute.xlu1 %1734 }
 0x116   : > { %2251 = vrot.lane.b32.xlu1 %v2166_v63, %s5406_s26  ;;  %1802 = vst.msk [vmem:[#allocation3 + $0x74] sm:$0xf] %vm1772_vm15, %v1735_v28  ;;  %v2462_v63 = vshll.u32 %v2347_v11, 16  ;;  %v2461_v45 = vrot.slane %v2459_v24, 4  ;;  %v2356_v11 = vld [vmem:[#allocation2 + $0x54] sm:$0xf] }
 0x117   : > { %v2534_v24 = vshll.u32 %v2356_v11, 16 }
 0x118   : > { %2253 = vrot.lane.b32.xlu0 %v2167_v46, %s5406_s26  ;;  %v2472_v46 = vshrl.u32 %v2348_v3, 16 }
 0x11a   : > { %v1737_v38 = vpop.permute.xlu0 %1736  ;;  %2255 = vrot.lane.b32.xlu1 %v2168_v27, %s5406_s26  ;;  %v2430_v27 = vshll.u32 %v2343_v15, 16  ;;  %v2452_v15 = vrot.slane %v2451_v48, 4  ;;  %v2504_v48 = vrot.slane %v2502_v34, 5 }
 0x11b   : > { %1803 = vst.msk [vmem:[#allocation3 + $0x78] sm:$0xf] %vm1772_vm15, %v1737_v38 }
 0x11c   : > { %2257 = vrot.lane.b32.xlu0 %v2169_v37, %s5406_s26  ;;  %v1739_v47 = vpop.permute.xlu1 %1738  ;;  %v2486_v37 = vshll.u32 %v2350_v22, 16  ;;  %v2432_v55 = vrot.slane %v2430_v27, 5  ;;  %v2512_v22 = vrot.slane %v2510_v6, 5 }
 0x11d   : > { %1804 = vst.msk [vmem:[#allocation3 + $0x7c] sm:$0xf] %vm1772_vm15, %v1739_v47  ;;  %v2464_v47 = vrot.slane %v2462_v63, 5  ;;  %v2362_v63 = vld [vmem:[#allocation2 + $0x6c] sm:$0xf] }
 0x11e   : > { %v2017_v54 = vpop.permute.xlu0 %2016  ;;  %2259 = vrot.lane.b32.xlu1 %v2170_v40, %s5406_s26  ;;  %v2399_v40 = vsel %vm5548_vm11, %v2394_v12, %v6096_v49  ;;  %v2492_v49 = vshll.u32 %v2351_v61, 16  ;;  %v6145_v61 = vrot.slane %v2516_v13, 5  ;;  %v2582_v41 = vshll.u32 %v2362_v63, 16 }
 0x11f   : > { %2113 = vst.msk [vmem:[#allocation3] sm:$0xf] %vm2112_vm0, %v2017_v54  ;;  %v2428_v54 = vrot.slane %v2427_v25, 4  ;;  %v2513_v43 = vor.u32 %v2512_v22, %v2509_v21 }
 0x120   : > { %2261 = vrot.lane.b32.xlu0 %v2171_v51, %s5406_s26  ;;  %v2019_v62 = vpop.permute.xlu1 %2018  ;;  %v2474_v51 = vrot.slane %v2472_v46, 4  ;;  %v6134_v12 = vrot.slane %v2492_v49, 5 }
 0x121   : > { %2114 = vst.msk [vmem:[#allocation3 + $0x4] sm:$0xf] %vm2112_vm0, %v2019_v62  ;;  %v2488_v62 = vrot.slane %v2486_v37, 5  ;;  %v2433_v10 = vsel %vm5548_vm11, %v2428_v54, %v2432_v55  ;;  %v2363_v37 = vld [vmem:[#allocation2 + $0x70] sm:$0xf] }
 0x122   : > { %v2021_v9 = vpop.permute.xlu0 %2020  ;;  %2263 = vrot.lane.b32.xlu1 %v2172_v36, %s5406_s26  ;;  %v2349_v36 = vld [vmem:[#allocation2 + $0x38] sm:$0x1]  ;;  %v2588_v55 = vshll.u32 %v2363_v37, 16  ;;  %v2592_v49 = vshrl.u32 %v2363_v37, 16 }
 0x123   : > { %2115 = vst.msk [vmem:[#allocation3 + $0x8] sm:$0xf] %vm2112_vm0, %v2021_v9  ;;  %v2475_v9 = vor.u32 %v2474_v51, %v6122_v50  ;;  %v2478_v30 = vshll.u32 %v2349_v36, 16  ;;  %v2489_v17 = vor.u32 %v2488_v62, %v2485_v60  ;;  %v2365_v51 = vld [vmem:[#allocation2 + $0x78] sm:$0xf] }
 0x124   : > { %2265 = vrot.lane.b32.xlu0 %v2173_v7, %s5406_s26  ;;  %v2023_v16 = vpop.permute.xlu1 %2022  ;;  %v2442_v7 = vrot.slane %v2441_v42, 4  ;;  %v2357_v54 = vld [vmem:[#allocation2 + $0x58] sm:$0xf]  ;;  %v2366_v62 = vld [vmem:[#allocation2 + $0x7c] sm:$0xf] }
 0x125   : > { %2116 = vst.msk [vmem:[#allocation3 + $0xc] sm:$0xf] %vm2112_vm0, %v2023_v16  ;;  %v2456_v16 = vrot.slane %v2454_v59, 5  ;;  %v2480_v25 = vrot.slane %v2478_v30, 5  ;;  %v2490_v42 = vrot.slane %v2489_v17, 4  ;;  %v2523_v59 = vor.u32 %v2522_v35, %v6145_v61 }
 0x126   : > { %v2025_v28 = vpop.permute.xlu0 %2024  ;;  %2267 = vrot.lane.b32.xlu1 %v2174_v8, %s5406_s26  ;;  %v2465_v8 = vor.u32 %v2464_v47, %v2461_v45  ;;  %v2447_v26 = vsel %vm5548_vm11, %v2442_v7, %v6113_v32  ;;  %v2579_v32 = vshrl.u32 %v2362_v63, 16  ;;  %v2536_v47 = vrot.slane %v2534_v24, 5  ;;  %v2364_v30 = vld [vmem:[#allocation2 + $0x74] sm:$0x1] }
 0x127   : > { %2117 = vst.msk [vmem:[#allocation3 + $0x10] sm:$0xf] %vm2112_vm0, %v2025_v28  ;;  %v2476_v28 = vrot.slane %v2475_v9, 4  ;;  %v2495_v6 = vsel %vm5548_vm11, %v2490_v42, %v6134_v12  ;;  %v2514_v7 = vrot.slane %v2513_v43, 4  ;;  %v2540_v9 = vshll.u32 %v2357_v54, 16 }
 0x128   : > { %2269 = vrot.lane.b32.xlu0 %v2175_v23, %s5406_s26  ;;  %v2027_v38 = vpop.permute.xlu1 %2026  ;;  %v2531_v23 = vshrl.u32 %v2356_v11, 16  ;;  %v2466_v46 = vrot.slane %v2465_v8, 4  ;;  %v2581_v56 = vrot.slane %v2579_v32, 4  ;;  %v2590_v11 = vrot.slane %v2588_v55, 5 }
 0x129   : > { %2118 = vst.msk [vmem:[#allocation3 + $0x14] sm:$0xf] %vm2112_vm0, %v2027_v38  ;;  %v2457_v38 = vsel %vm5548_vm11, %v2452_v15, %v2456_v16  ;;  %v2612_v13 = vshll.u32 %v2366_v62, 16  ;;  %v2616_v14 = vshrl.u32 %v2366_v62, 16  ;;  %v2519_v21 = vsel %vm5548_vm11, %v2514_v7, %v6145_v61 }
 0x12a   : > { %v2029_v53 = vpop.permute.xlu0 %2028  ;;  %2271 = vrot.lane.b32.xlu1 %v2176_v29, %s5406_s26  ;;  %v2499_v29 = vor.u32 %v2498_v1, %v6134_v12  ;;  %v2533_v45 = vrot.slane %v2531_v23, 4  ;;  %v2471_v52 = vsel %vm5548_vm11, %v2466_v46, %v6122_v50  ;;  %v2603_v50 = vshrl.u32 %v2365_v51, 16 }
 0x12b   : > { %2119 = vst.msk [vmem:[#allocation3 + $0x18] sm:$0xf] %vm2112_vm0, %v2029_v53  ;;  %v2481_v53 = vsel %vm5548_vm11, %v2476_v28, %v2480_v25  ;;  %v2524_v12 = vrot.slane %v2523_v59, 4  ;;  %v6174_v22 = vrot.slane %v2540_v9, 5  ;;  %v2598_v23 = vshll.u32 %v2364_v30, 16 }
 0x12c   : > { %2770 = vrot.lane.b32.xlu0 %v2399_v40, %s5407_s27  ;;  %v2031_v44 = vpop.permute.xlu1 %2030  ;;  %v2355_v40 = vld [vmem:[#allocation2 + $0x50] sm:$0x1]  ;;  %v2500_v36 = vrot.slane %v2499_v29, 4  ;;  %v2537_v8 = vor.u32 %v2536_v47, %v2533_v45  ;;  %v2605_v17 = vrot.slane %v2603_v50, 4  ;;  %v2618_v46 = vrot.slane %v2616_v14, 4 }
 0x12d   : > { %2120 = vst.msk [vmem:[#allocation3 + $0x1c] sm:$0xf] %vm2112_vm0, %v2031_v44  ;;  %v2526_v60 = vshll.u32 %v2355_v40, 16  ;;  %v2584_v44 = vrot.slane %v2582_v41, 5  ;;  %v2367_v25 = vld [vmem:[#allocation2 + $0x80] sm:$0x1] }
 0x12e   : > { %v2033_v3 = vpop.permute.xlu0 %2032  ;;  %2772 = vrot.lane.b32.xlu1 %v2409_v31, %s5407_s27  ;;  %v2538_v24 = vrot.slane %v2537_v8, 4  ;;  %v2600_v35 = vrot.slane %v2598_v23, 5  ;;  %v2622_v32 = vshll.u32 %v2367_v25, 16  ;;  %v2899_v47 = vld [vmem:[#allocation2 + $0xc] sm:$0xe] }
 0x12f   : > { %2121 = vst.msk [vmem:[#allocation3 + $0x20] sm:$0xf] %vm2112_vm0, %v2033_v3  ;;  %v2594_v3 = vrot.slane %v2592_v49, 4  ;;  %v2528_v15 = vrot.slane %v2526_v60, 5  ;;  %v2585_v16 = vor.u32 %v2584_v44, %v2581_v56  ;;  %v2901_v49 = vld [vmem:[#allocation2 + $0x14] sm:$0x1] }
 0x130   : > { %2774 = vrot.lane.b32.xlu0 %v2423_v4, %s5407_s27  ;;  %v2035_v20 = vpop.permute.xlu1 %2034  ;;  %v2606_v4 = vshll.u32 %v2365_v51, 16  ;;  %v2543_v37 = vsel %vm5548_vm11, %v2538_v24, %v6174_v22  ;;  %v2923_v60 = vld [vmem:[#allocation2 + $0x6c] sm:$0xe]  ;;  %v3000_v44 = vrot.slane %v2901_v49, 5  ;;  %v2902_v30 = vld [vmem:[#allocation2 + $0x18] sm:$0xe] }
 0x131   : > { %2122 = vst.msk [vmem:[#allocation3 + $0x24] sm:$0xf] %vm2112_vm0, %v2035_v20  ;;  %v2595_v63 = vor.u32 %v2594_v3, %v2590_v11  ;;  %v2586_v29 = vrot.slane %v2585_v16, 4  ;;  %v5125_v8 = vrot.slane %v2923_v60, 9  ;;  %v5118_v16 = vrot.slane %v2902_v30, 9 }
 0x132   : > { %v2037_v27 = vpop.permute.xlu0 %2036  ;;  %2776 = vrot.lane.b32.xlu1 %v2433_v10, %s5407_s27  ;;  %v2505_v10 = vsel %vm5548_vm11, %v2500_v36, %v2504_v48  ;;  %v2608_v19 = vrot.slane %v2606_v4, 5  ;;  %v5117_v48 = vrot.slane %v2899_v47, 9 }
 0x133   : > { %2123 = vst.msk [vmem:[#allocation3 + $0x28] sm:$0xf] %vm2112_vm0, %v2037_v27  ;;  %v2529_v27 = vsel %vm5548_vm11, %v2524_v12, %v2528_v15  ;;  %v2591_v42 = vsel %vm5548_vm11, %v2586_v29, %v2590_v11  ;;  %v2927_v15 = vld [vmem:[#allocation2 + $0x7c] sm:$0xf] }
 0x134   : > { %2778 = vrot.lane.b32.xlu0 %v2447_v26, %s5407_s27  ;;  %v2039_v31 = vpop.permute.xlu1 %2038  ;;  %v2614_v26 = vrot.slane %v2612_v13, 5  ;;  %v2609_v61 = vor.u32 %v2608_v19, %v2605_v17  ;;  %v2926_v19 = vld [vmem:[#allocation2 + $0x78] sm:$0xe]  ;;  %v3060_v24 = vrot.slane %v2927_v15, 5 }
 0x135   : > { %2124 = vst.msk [vmem:[#allocation3 + $0x2c] sm:$0xf] %vm2112_vm0, %v2039_v31  ;;  %v2900_v31 = vld [vmem:[#allocation2 + $0x10] sm:$0xf] }
 0x136   : > { %v2041_v58 = vpop.permute.xlu0 %2040  ;;  %2780 = vrot.lane.b32.xlu1 %v2457_v38, %s5407_s27  ;;  %v2596_v38 = vrot.slane %v2595_v63, 4  ;;  %v2619_v40 = vor.u32 %v2618_v46, %v2614_v26  ;;  %v2610_v43 = vrot.slane %v2609_v61, 4  ;;  %v2997_v54 = vrot.slane %v2900_v31, 5 }
 0x137   : > { %2125 = vst.msk [vmem:[#allocation3 + $0x30] sm:$0xf] %vm2112_vm0, %v2041_v58  ;;  %v2924_v58 = vld [vmem:[#allocation2 + $0x70] sm:$0xf]  ;;  %v3062_v29 = vrot.slane %v3060_v24, 4 }
 0x138   : > { %2782 = vrot.lane.b32.xlu0 %v2471_v52, %s5407_s27  ;;  %v2043_v5 = vpop.permute.xlu1 %2042  ;;  %v2601_v51 = vsel %vm5548_vm11, %v2596_v38, %v2600_v35  ;;  %v2620_v52 = vrot.slane %v2619_v40, 4  ;;  %v2615_v36 = vsel %vm5548_vm11, %v2610_v43, %v2614_v26  ;;  %v2999_v56 = vrot.slane %v2997_v54, 4  ;;  %v2928_v26 = vld [vmem:[#allocation2 + $0x80] sm:$0x1]  ;;  %v3237_v43 = vld [vmem:[#allocation2 + $0x18] sm:$0xf] }
 0x139   : > { %2126 = vst.msk [vmem:[#allocation3 + $0x34] sm:$0xf] %vm2112_vm0, %v2043_v5  ;;  %v3053_v50 = vrot.slane %v2924_v58, 5  ;;  %v2925_v5 = vld [vmem:[#allocation2 + $0x74] sm:$0x1]  ;;  %v2998_v7 = vsel %vm5910_vm14, %v5117_v48, %v2997_v54  ;;  %v3063_v61 = vrot.slane %v2928_v26, 5 }
 0x13a   : > { %v2045_v1 = vpop.permute.xlu0 %2044  ;;  %2784 = vrot.lane.b32.xlu1 %v2481_v53, %s5407_s27  ;;  %v2624_v53 = vrot.slane %v2622_v32, 5  ;;  %v3001_v11 = vsel %vm5910_vm14, %v2999_v56, %v3000_v44  ;;  %v3056_v13 = vrot.slane %v2925_v5, 5  ;;  %v3431_v32 = vld [vmem:[#allocation2 + $0x1c] sm:$0xf] }
 0x13b   : > { %2127 = vst.msk [vmem:[#allocation3 + $0x38] sm:$0xf] %vm2112_vm0, %v2045_v1  ;;  %v3055_v3 = vrot.slane %v3053_v50, 4  ;;  %v3054_v12 = vsel %vm5910_vm14, %v5125_v8, %v3053_v50  ;;  %v3064_v40 = vsel %vm5910_vm14, %v3062_v29, %v3063_v61  ;;  %v3455_v54 = vld [vmem:[#allocation2 + $0x7c] sm:$0xf] }
 0x13c   : > { %2786 = vrot.lane.b32.xlu0 %v2495_v6, %s5407_s27  ;;  %v2047_v20 = vpop.permute.xlu1 %2046  ;;  %v2625_v62 = vsel %vm5548_vm11, %v2620_v52, %v2624_v53  ;;  %v2903_v6 = vld [vmem:[#allocation2 + $0x1c] sm:$0xf]  ;;  %v3492_v52 = vshrl.u32 %v3431_v32, 16  ;;  %v3680_v44 = vshll.u32 %v3455_v54, 16  ;;  %v3684_v50 = vshrl.u32 %v3455_v54, 16 }
 0x13d   : > { %2128 = vst.msk [vmem:[#allocation3 + $0x3c] sm:$0xf] %vm2112_vm0, %v2047_v20  ;;  %v3004_v14 = vrot.slane %v2903_v6, 5  ;;  %v3057_v20 = vsel %vm5910_vm14, %v3055_v3, %v3056_v13  ;;  %v3238_v53 = vld [vmem:[#allocation2 + $0x1c] sm:$0xf] }
 0x13e   : > { %v2049_v28 = vpop.permute.xlu0 %2048  ;;  %2788 = vrot.lane.b32.xlu1 %v2505_v10, %s5407_s27  ;;  %v2904_v10 = vld [vmem:[#allocation2 + $0x20] sm:$0x1]  ;;  %v3494_v56 = vrot.slane %v3492_v52, 4  ;;  %v3254_v5 = vld [vmem:[#allocation2 + $0x7c] sm:$0xf] }
 0x13f   : > { %2129 = vst.msk [vmem:[#allocation3 + $0x40] sm:$0xf] %vm2112_vm0, %v2049_v28  ;;  %v3007_v23 = vrot.slane %v2904_v10, 5  ;;  %v3005_v46 = vsel %vm5910_vm14, %v5118_v16, %v3004_v14  ;;  %v5126_v28 = vrot.slane %v2926_v19, 9  ;;  %v3432_v6 = vld [vmem:[#allocation2 + $0x20] sm:$0x1] }
 0x140   : > { %2790 = vrot.lane.b32.xlu0 %v2519_v21, %s5407_s27  ;;  %v2051_v34 = vpop.permute.xlu1 %2050  ;;  %v3006_v21 = vrot.slane %v3004_v14, 4  ;;  %v3239_v3 = vld [vmem:[#allocation2 + $0x24] sm:$0xf]  ;;  %v3498_v15 = vshll.u32 %v3432_v6, 16  ;;  %v3686_v16 = vrot.slane %v3684_v50, 4 }
 0x141   : > { %2130 = vst.msk [vmem:[#allocation3 + $0x44] sm:$0xf] %vm2112_vm0, %v2051_v34  ;;  %v3061_v35 = vsel %vm5910_vm14, %v5126_v28, %v3060_v24  ;;  %v3240_v19 = vld [vmem:[#allocation2 + $0x28] sm:$0xf]  ;;  %v3255_v28 = vld [vmem:[#allocation2 + $0x84] sm:$0xf] }
 0x142   : > { %v2053_v41 = vpop.permute.xlu0 %2052  ;;  %2792 = vrot.lane.b32.xlu1 %v2529_v27, %s5407_s27  ;;  %v3008_v27 = vsel %vm5910_vm14, %v3006_v21, %v3007_v23  ;;  %v3459_v50 = vld [vmem:[#allocation2 + $0x8c] sm:$0x1] }
 0x143   : > { %2131 = vst.msk [vmem:[#allocation3 + $0x48] sm:$0xf] %vm2112_vm0, %v2053_v41 }
 0x144   : > { %2794 = vrot.lane.b32.xlu0 %v2543_v37, %s5407_s27  ;;  %v2055_v45 = vpop.permute.xlu1 %2054  ;;  %v3430_v37 = vld [vmem:[#allocation2 + $0x18] sm:$0xf] }
 0x145   : > { %2132 = vst.msk [vmem:[#allocation3 + $0x4c] sm:$0xf] %vm2112_vm0, %v2055_v45  ;;  %v3479_v31 = vshrl.u32 %v3430_v37, 16  ;;  %v3454_v45 = vld [vmem:[#allocation2 + $0x78] sm:$0xf] }
 0x146   : > { %v2057_v55 = vpop.permute.xlu0 %2056  ;;  %2802 = vrot.lane.b32.xlu1 %v2591_v42, %s5407_s27  ;;  %v3482_v42 = vshll.u32 %v3430_v37, 16  ;;  %v3674_v48 = vshll.u32 %v3454_v45, 16  ;;  %v3500_v37 = vrot.slane %v3498_v15, 5 }
 0x147   : > { %2133 = vst.msk [vmem:[#allocation3 + $0x50] sm:$0xf] %vm2112_vm0, %v2057_v55  ;;  %v3481_v49 = vrot.slane %v3479_v31, 4 }
 0x148   : > { %2804 = vrot.lane.b32.xlu0 %v2601_v51, %s5407_s27  ;;  %v2059_v59 = vpop.permute.xlu1 %2058  ;;  %v3488_v51 = vshll.u32 %v3431_v32, 16  ;;  %v3484_v58 = vrot.slane %v3482_v42, 5  ;;  %v3676_v30 = vrot.slane %v3674_v48, 5  ;;  %v3256_v32 = vld [vmem:[#allocation2 + $0x88] sm:$0xf] }
 0x149   : > { %2134 = vst.msk [vmem:[#allocation3 + $0x54] sm:$0xf] %vm2112_vm0, %v2059_v59  ;;  %v3253_v59 = vld [vmem:[#allocation2 + $0x78] sm:$0xf] }
 0x14a   : > { %v2061_v4 = vpop.permute.xlu0 %2060  ;;  %2806 = vrot.lane.b32.xlu1 %v2615_v36, %s5407_s27  ;;  %v3671_v36 = vshrl.u32 %v3454_v45, 16  ;;  %v3485_v8 = vor.u32 %v3484_v58, %v3481_v49 }
 0x14b   : > { %2135 = vst.msk [vmem:[#allocation3 + $0x58] sm:$0xf] %vm2112_vm0, %v2061_v4  ;;  %v3433_v4 = vld [vmem:[#allocation2 + $0x24] sm:$0xf] }
 0x14c   : > { %2808 = vrot.lane.b32.xlu0 %v2625_v62, %s5407_s27  ;;  %v2063_v9 = vpop.permute.xlu1 %2062  ;;  %v6241_v62 = vrot.slane %v3488_v51, 5  ;;  %v3503_v13 = vshrl.u32 %v3433_v4, 16  ;;  %v3506_v14 = vshll.u32 %v3433_v4, 16  ;;  %v3435_v51 = vld [vmem:[#allocation2 + $0x2c] sm:$0x1] }
 0x14d   : > { %2136 = vst.msk [vmem:[#allocation3 + $0x5c] sm:$0xf] %vm2112_vm0, %v2063_v9  ;;  %v3673_v9 = vrot.slane %v3671_v36, 4 }
 0x14e   : > { %v2065_v1 = vpop.permute.xlu0 %2064  ;;  %3107 = vrot.lane.b32.xlu1 %v2998_v7, %s5408_s28  ;;  %v3495_v10 = vor.u32 %v3494_v56, %v6241_v62 }
 0x14f   : > { %2137 = vst.msk [vmem:[#allocation3 + $0x60] sm:$0xf] %vm2112_vm0, %v2065_v1  ;;  %v3677_v26 = vor.u32 %v3676_v30, %v3673_v9 }
 0x150   : > { %3109 = vrot.lane.b32.xlu0 %v3001_v11, %s5408_s28  ;;  %v2067_v17 = vpop.permute.xlu1 %2066  ;;  %v3434_v11 = vld [vmem:[#allocation2 + $0x28] sm:$0xf] }
 0x151   : > { %2138 = vst.msk [vmem:[#allocation3 + $0x64] sm:$0xf] %vm2112_vm0, %v2067_v17  ;;  %v3457_v17 = vld [vmem:[#allocation2 + $0x84] sm:$0xf]  ;;  %v3512_v21 = vshll.u32 %v3434_v11, 16  ;;  %v3516_v23 = vshrl.u32 %v3434_v11, 16 }
 0x152   : > { %v2069_v63 = vpop.permute.xlu0 %2068  ;;  %3139 = vrot.lane.b32.xlu1 %v3054_v12, %s5408_s28  ;;  %v6248_v12 = vrot.slane %v3680_v44, 5  ;;  %v3695_v29 = vshrl.u32 %v3457_v17, 16  ;;  %v3698_v61 = vshll.u32 %v3457_v17, 16  ;;  %v3678_v52 = vrot.slane %v3677_v26, 4 }
 0x153   : > { %2139 = vst.msk [vmem:[#allocation3 + $0x68] sm:$0xf] %vm2112_vm0, %v2069_v63  ;;  %v3486_v63 = vrot.slane %v3485_v8, 4  ;;  %v3518_v31 = vrot.slane %v3516_v23, 4 }
 0x154   : > { %3141 = vrot.lane.b32.xlu0 %v3057_v20, %s5408_s28  ;;  %v2071_v25 = vpop.permute.xlu1 %2070  ;;  %v3456_v20 = vld [vmem:[#allocation2 + $0x80] sm:$0x1]  ;;  %v3697_v54 = vrot.slane %v3695_v29, 4  ;;  %v3683_v4 = vsel %vm5548_vm11, %v3678_v52, %v6248_v12  ;;  %v2368_v29 = vld [vmem:[#allocation2 + $0x84] sm:$0xf] }
 0x155   : > { %2140 = vst.msk [vmem:[#allocation3 + $0x6c] sm:$0xf] %vm2112_vm0, %v2071_v25  ;;  %v3505_v25 = vrot.slane %v3503_v13, 4 }
 0x156   : > { %v2073_v34 = vpop.permute.xlu0 %2072  ;;  %3111 = vrot.lane.b32.xlu1 %v3005_v46, %s5408_s28  ;;  %v3458_v46 = vld [vmem:[#allocation2 + $0x88] sm:$0xf] }
 0x157   : > { %2141 = vst.msk [vmem:[#allocation3 + $0x70] sm:$0xf] %vm2112_vm0, %v2073_v34  ;;  %v3704_v42 = vshll.u32 %v3458_v46, 16 }
 0x158   : > { %3113 = vrot.lane.b32.xlu0 %v3008_v27, %s5408_s28  ;;  %v2075_v38 = vpop.permute.xlu1 %2074  ;;  %v3508_v27 = vrot.slane %v3506_v14, 5  ;;  %v3992_v14 = vld [vmem:[#allocation2 + $0x1c] sm:$0xf] }
 0x159   : > { %2142 = vst.msk [vmem:[#allocation3 + $0x74] sm:$0xf] %vm2112_vm0, %v2075_v38  ;;  %v3687_v38 = vor.u32 %v3686_v16, %v6248_v12  ;;  %v3991_v12 = vld [vmem:[#allocation2 + $0x18] sm:$0xe] }
 0x15a   : > { %v2077_v41 = vpop.permute.xlu0 %2076  ;;  %3143 = vrot.lane.b32.xlu1 %v3061_v35, %s5408_s28  ;;  %v3496_v35 = vrot.slane %v3495_v10, 4 }
 0x15b   : > { %2143 = vst.msk [vmem:[#allocation3 + $0x78] sm:$0xf] %vm2112_vm0, %v2077_v41  ;;  %v3514_v41 = vrot.slane %v3512_v21, 5  ;;  %v3688_v36 = vrot.slane %v3687_v38, 4  ;;  %v4016_v21 = vld [vmem:[#allocation2 + $0x7c] sm:$0xf] }
 0x15c   : > { %3145 = vrot.lane.b32.xlu0 %v3064_v40, %s5408_s28  ;;  %v2079_v47 = vpop.permute.xlu1 %2078  ;;  %v3690_v40 = vshll.u32 %v3456_v20, 16  ;;  %v3501_v58 = vsel %vm5548_vm11, %v3496_v35, %v3500_v37  ;;  %v4089_v20 = vrot.slane %v3992_v14, 5  ;;  %v4017_v38 = vld [vmem:[#allocation2 + $0x80] sm:$0x1]  ;;  %v4018_v14 = vld [vmem:[#allocation2 + $0x84] sm:$0xe] }
 0x15d   : > { %2144 = vst.msk [vmem:[#allocation3 + $0x7c] sm:$0xf] %vm2112_vm0, %v2079_v47  ;;  %v3491_v47 = vsel %vm5548_vm11, %v3486_v63, %v6241_v62  ;;  %v3706_v62 = vrot.slane %v3704_v42, 5  ;;  %v5359_v63 = vld [vmem:[%s7133_s3 + $0x10] ss:$0 sps:$4 sm:$0x33]  }
 0x15e   : > { %v2210_v55 = vpop.permute.xlu0 %2209  ;;  %3301 = vrot.lane.b32.xlu1 %v3237_v43, %s5409_s29  ;;  %v3708_v43 = vshrl.u32 %v3458_v46, 16  ;;  %v3692_v48 = vrot.slane %v3690_v40, 5  ;;  %v5133_v46 = vrot.slane %v3991_v12, 9  ;;  %5323 = vmatprep.subr.msk.bf16.mxu0 %vm4519_vm2, %v5359_v63  ;;  %v4091_v35 = vrot.slane %v4089_v20, 4  ;;  %v3995_v40 = vld [vmem:[#allocation2 + $0x28] sm:$0xf] }
 0x15f   : > { %2306 = vst.msk [vmem:[#allocation3] sm:$0xf] %vm2305_vm1, %v2210_v55  ;;  %v3700_v55 = vrot.slane %v3698_v61, 5  ;;  %v4521_v61 = vsel %vm4519_vm2, %v5359_v63, 0  ;;  %5324 = vmatprep.subr.msk.bf16.mxu1 %vm4519_vm2, %v5359_v63  ;;  %v5360_v42 = vld [vmem:[%s7133_s3 + $0x8] sm:$0xff]  }
 0x160   : > { %3303 = vrot.lane.b32.xlu0 %v3238_v53, %s5409_s29  ;;  %v2212_v60 = vpop.permute.xlu1 %2211  ;;  %v3509_v53 = vor.u32 %v3508_v27, %v3505_v25  ;;  %v3710_v56 = vrot.slane %v3708_v43, 4  ;;  %v3693_v8 = vsel %vm5548_vm11, %v3688_v36, %v3692_v48  ;;  %v4145_v27 = vrot.slane %v4016_v21, 5  ;;  %5280 = vmatpush3.bf16.msra.mxu0 %v4521_v61  ;;  %v3996_v36 = vld [vmem:[#allocation2 + $0x2c] sm:$0x1]  ;;  %v4019_v48 = vld [vmem:[#allocation2 + $0x88] sm:$0xf] }
 0x161   : > { %2307 = vst.msk [vmem:[#allocation3 + $0x4] sm:$0xf] %vm2305_vm1, %v2212_v60  ;;  %v3522_v60 = vshll.u32 %v3435_v51, 16  ;;  %v3701_v6 = vor.u32 %v3700_v55, %v3697_v54  ;;  %5320 = vmatpush3.bf16.msra.mxu1 %v4521_v61  ;;  %v4090_v43 = vsel %vm5910_vm14, %v5133_v46, %v4089_v20  ;;  %v2630_v51 = vshll.u32 %v2368_v29, 16  ;;  %5281 = vmatprep.subr.bf16.mxu0 %v5360_v42  ;;  %v2370_v20 = vld [vmem:[#allocation2 + $0x8c] sm:$0x1] }
 0x162   : > { %v2214_v7 = vpop.permute.xlu0 %2213  ;;  %3333 = vrot.lane.b32.xlu1 %v3253_v59, %s5409_s29  ;;  %v3519_v59 = vor.u32 %v3518_v31, %v3514_v41  ;;  %v3711_v11 = vor.u32 %v3710_v56, %v3706_v62  ;;  %v2369_v31 = vld [vmem:[#allocation2 + $0x88] sm:$0xf]  ;;  %v4148_v54 = vrot.slane %v4017_v38, 5  ;;  %v4096_v55 = vrot.slane %v3995_v40, 5  ;;  %5318 = vmatprep.subr.bf16.mxu1 %v5360_v42 }
 0x163   : > { %2308 = vst.msk [vmem:[#allocation3 + $0x8] sm:$0xf] %vm2305_vm1, %v2214_v7  ;;  %v3524_v30 = vrot.slane %v3522_v60, 5  ;;  %v3702_v10 = vrot.slane %v3701_v6, 4  ;;  %v2640_v60 = vshrl.u32 %v2369_v31, 16  ;;  %v2632_v6 = vrot.slane %v2630_v51, 5 }
 0x164   : > { %3335 = vrot.lane.b32.xlu0 %v3254_v5, %s5409_s29  ;;  %v2216_v1 = vpop.permute.xlu1 %2215  ;;  %v3510_v5 = vrot.slane %v3509_v53, 4  ;;  %v3520_v9 = vrot.slane %v3519_v59, 4  ;;  %v3712_v17 = vrot.slane %v3711_v11, 4  ;;  %v4147_v53 = vrot.slane %v4145_v27, 4  ;;  %5282 = vmatpush3.bf16.msra.mxu0 %v5360_v42  ;;  %v2906_v51 = vld [vmem:[#allocation2 + $0x28] sm:$0xf] }
 0x165   : > { %2309 = vst.msk [vmem:[#allocation3 + $0xc] sm:$0xf] %vm2305_vm1, %v2216_v1  ;;  %v3707_v26 = vsel %vm5548_vm11, %v3702_v10, %v3706_v62  ;;  %v2636_v59 = vshll.u32 %v2369_v31, 16  ;;  %5321 = vmatpush3.bf16.msra.mxu1 %v5360_v42  ;;  %v4098_v11 = vrot.slane %v4096_v55, 4  ;;  %v5142_v21 = vrot.slane %v4018_v14, 9 }
 0x166   : > { %v2218_v24 = vpop.permute.xlu0 %2217  ;;  %3305 = vrot.lane.b32.xlu1 %v3239_v3, %s5409_s29  ;;  %v3714_v3 = vshll.u32 %v3459_v50, 16  ;;  %v3515_v1 = vsel %vm5548_vm11, %v3510_v5, %v3514_v41  ;;  %v3525_v16 = vsel %vm5548_vm11, %v3520_v9, %v3524_v30  ;;  %v2372_v50 = vld [vmem:[#allocation2 + $0x94] sm:$0xf]  ;;  %v4149_v30 = vsel %vm5910_vm14, %v4147_v53, %v4148_v54 }
 0x167   : > { %2310 = vst.msk [vmem:[#allocation3 + $0x10] sm:$0xf] %vm2305_vm1, %v2218_v24  ;;  %v3993_v24 = vld [vmem:[#allocation2 + $0x20] sm:$0x1]  ;;  %v2638_v10 = vrot.slane %v2636_v59, 5  ;;  %v2660_v12 = vshll.u32 %v2372_v50, 16 }
 0x168   : > { %3307 = vrot.lane.b32.xlu0 %v3240_v19, %s5409_s29  ;;  %v2220_v34 = vpop.permute.xlu1 %2219  ;;  %v3716_v19 = vrot.slane %v3714_v3, 5  ;;  %v4092_v37 = vrot.slane %v3993_v24, 5  ;;  %v4099_v3 = vrot.slane %v3996_v36, 5 }
 0x169   : > { %2311 = vst.msk [vmem:[#allocation3 + $0x14] sm:$0xf] %vm2305_vm1, %v2220_v34  ;;  %v2662_v61 = vrot.slane %v2660_v12, 5  ;;  %v501_v12 = vld [vmem:[#allocation2 + $0xc8] sm:$0x1] }
 0x16a   : > { %v2222_v45 = vpop.permute.xlu0 %2221  ;;  %3337 = vrot.lane.b32.xlu1 %v3255_v28, %s5409_s29  ;;  %v4015_v28 = vld [vmem:[#allocation2 + $0x78] sm:$0xe]  ;;  %v3717_v34 = vsel %vm5548_vm11, %v3712_v17, %v3716_v19  ;;  %v4100_v46 = vsel %vm5910_vm14, %v4098_v11, %v4099_v3  ;;  %v2931_v11 = vld [vmem:[#allocation2 + $0x8c] sm:$0x1]  ;;  %v2909_v3 = vld [vmem:[#allocation2 + $0x34] sm:$0xf] }
 0x16b   : > { %2312 = vst.msk [vmem:[#allocation3 + $0x18] sm:$0xf] %vm2305_vm1, %v2222_v45  ;;  %v5141_v41 = vrot.slane %v4015_v28, 9  ;;  %v3994_v45 = vld [vmem:[#allocation2 + $0x24] sm:$0xe] }
 0x16c   : > { %3339 = vrot.lane.b32.xlu0 %v3256_v32, %s5409_s29  ;;  %v2224_v49 = vpop.permute.xlu1 %2223 }
 0x16d   : > { %2313 = vst.msk [vmem:[#allocation3 + $0x1c] sm:$0xf] %vm2305_vm1, %v2224_v49  ;;  %v2371_v49 = vld [vmem:[#allocation2 + $0x90] sm:$0xf]  ;;  %v4146_v56 = vsel %vm5910_vm14, %v5141_v41, %v4145_v27 }
 0x16e   : > { %v2226_v44 = vpop.permute.xlu0 %2225  ;;  %3862 = vrot.lane.b32.xlu1 %v3491_v47, %s5410_s30  ;;  %v2627_v47 = vshrl.u32 %v2368_v29, 16  ;;  %v2646_v29 = vshll.u32 %v2370_v20, 16  ;;  %v502_v20 = vsel %vm5467_vm5, 0, %v501_v12 }
 0x16f   : > { %2314 = vst.msk [vmem:[#allocation3 + $0x20] sm:$0xf] %vm2305_vm1, %v2226_v44  ;;  %v5134_v44 = vrot.slane %v3994_v45, 9  ;;  %503 = vst [vmem:[#allocation2 + $0xc8] sm:$0x1] %v502_v20 }
 0x170   : > { %3864 = vrot.lane.b32.xlu0 %v3501_v58, %s5410_s30  ;;  %v2228_v7 = vpop.permute.xlu1 %2227  ;;  %v4093_v58 = vsel %vm5910_vm14, %v4091_v35, %v4092_v37  ;;  %v2629_v5 = vrot.slane %v2627_v47, 4  ;;  %v2373_v37 = vld [vmem:[#allocation2 + $0x98] sm:$0x1]  ;;  %v3243_v20 = vld [vmem:[#allocation2 + $0x3c] sm:$0xf] }
 0x171   : > { %2315 = vst.msk [vmem:[#allocation3 + $0x24] sm:$0xf] %vm2305_vm1, %v2228_v7  ;;  %v2651_v7 = vshrl.u32 %v2371_v49, 16  ;;  %v4097_v19 = vsel %vm5910_vm14, %v5134_v44, %v4096_v55  ;;  %v2670_v47 = vshll.u32 %v2373_v37, 16  ;;  %v908_v37 = vrot.slane %v5973_v57, 4 }
 0x172   : > { %v2230_v13 = vpop.permute.xlu0 %2229  ;;  %3894 = vrot.lane.b32.xlu1 %v3683_v4, %s5410_s30  ;;  %v5362_v4 = vld [vmem:[%s7133_s3] sm:$0xff]  }
 0x173   : > { %2316 = vst.msk [vmem:[#allocation3 + $0x28] sm:$0xf] %vm2305_vm1, %v2230_v13  ;;  %v4152_v13 = vrot.slane %v4019_v48, 5  ;;  %5283 = vmatprep.subr.bf16.mxu0 %v5362_v4  ;;  %5319 = vmatprep.subr.bf16.mxu1 %v5362_v4  ;;  %v2653_v24 = vrot.slane %v2651_v7, 4  ;;  %v2672_v59 = vrot.slane %v2670_v47, 5 }
 0x174   : > { %3896 = vrot.lane.b32.xlu0 %v3693_v8, %s5410_s30  ;;  %v2232_v15 = vpop.permute.xlu1 %2231  ;;  %v2654_v8 = vshll.u32 %v2371_v49, 16  ;;  %5284 = vmatpush3.bf16.msra.mxu0 %v5362_v4  ;;  %v3011_v49 = vrot.slane %v2906_v51, 5  ;;  %v2929_v7 = vld [vmem:[#allocation2 + $0x84] sm:$0xe]  ;;  %v3436_v47 = vld [vmem:[#allocation2 + $0x30] sm:$0xf] }
 0x175   : > { %2317 = vst.msk [vmem:[#allocation3 + $0x2c] sm:$0xf] %vm2305_vm1, %v2232_v15  ;;  %v2642_v15 = vrot.slane %v2640_v60, 4  ;;  %5322 = vmatpush3.bf16.msra.mxu1 %v5362_v4  ;;  %v4154_v28 = vrot.slane %v4152_v13, 4  ;;  %v4153_v38 = vsel %vm5910_vm14, %v5142_v21, %v4152_v13  ;;  %v2907_v60 = vld [vmem:[#allocation2 + $0x2c] sm:$0x1] }
 0x176   : > { %v2234_v23 = vpop.permute.xlu0 %2233  ;;  %3866 = vrot.lane.b32.xlu1 %v3515_v1, %s5410_s30  ;;  %v4020_v1 = vld [vmem:[#allocation2 + $0x8c] sm:$0x1]  ;;  %v2656_v63 = vrot.slane %v2654_v8, 5  ;;  %v5127_v14 = vrot.slane %v2929_v7, 9 }
 0x177   : > { %2318 = vst.msk [vmem:[#allocation3 + $0x30] sm:$0xf] %vm2305_vm1, %v2234_v23  ;;  %v2633_v23 = vor.u32 %v2632_v6, %v2629_v5  ;;  %v2643_v27 = vor.u32 %v2642_v15, %v2638_v10  ;;  %v3013_v5 = vrot.slane %v3011_v49, 4  ;;  %v3014_v6 = vrot.slane %v2907_v60, 5  ;;  %v2908_v15 = vld [vmem:[#allocation2 + $0x30] sm:$0xe] }
 0x178   : > { %3868 = vrot.lane.b32.xlu0 %v3525_v16, %s5410_s30  ;;  %v2236_v25 = vpop.permute.xlu1 %2235  ;;  %v2664_v16 = vshrl.u32 %v2372_v50, 16 }
 0x179   : > { %2319 = vst.msk [vmem:[#allocation3 + $0x34] sm:$0xf] %vm2305_vm1, %v2236_v25  ;;  %v4155_v25 = vrot.slane %v4020_v1, 5  ;;  %v2634_v40 = vrot.slane %v2633_v23, 4  ;;  %v2644_v42 = vrot.slane %v2643_v27, 4 }
 0x17a   : > { %v2238_v32 = vpop.permute.xlu0 %2237  ;;  %3898 = vrot.lane.b32.xlu1 %v3707_v26, %s5410_s30  ;;  %v2910_v23 = vld [vmem:[#allocation2 + $0x38] sm:$0x1] }
 0x17b   : > { %2320 = vst.msk [vmem:[#allocation3 + $0x38] sm:$0xf] %vm2305_vm1, %v2238_v32  ;;  %v2657_v32 = vor.u32 %v2656_v63, %v2653_v24  ;;  %v4156_v31 = vsel %vm5910_vm14, %v4154_v28, %v4155_v25  ;;  %v2639_v53 = vsel %vm5548_vm11, %v2634_v40, %v2638_v10  ;;  %v3015_v10 = vsel %vm5910_vm14, %v3013_v5, %v3014_v6  ;;  %v2933_v24 = vld [vmem:[#allocation2 + $0x94] sm:$0xf]  ;;  %v2932_v28 = vld [vmem:[#allocation2 + $0x90] sm:$0xe] }
 0x17c   : > { %3900 = vrot.lane.b32.xlu0 %v3717_v34, %s5410_s30  ;;  %v2240_v52 = vpop.permute.xlu1 %2239  ;;  %v2666_v34 = vrot.slane %v2664_v16, 4  ;;  %v5128_v40 = vrot.slane %v2932_v28, 9  ;;  %v3461_v5 = vld [vmem:[#allocation2 + $0x94] sm:$0xf] }
 0x17d   : > { %2321 = vst.msk [vmem:[#allocation3 + $0x3c] sm:$0xf] %vm2305_vm1, %v2240_v52  ;;  %v2658_v54 = vrot.slane %v2657_v32, 4 }
 0x17e   : > { %v2242_v62 = vpop.permute.xlu0 %2241  ;;  %4199 = vrot.lane.b32.xlu1 %v4090_v43, %s5411_s10  ;;  %v2648_v43 = vrot.slane %v2646_v29, 5  ;;  %v2667_v45 = vor.u32 %v2666_v34, %v2662_v61  ;;  %v3021_v29 = vrot.slane %v2910_v23, 5 }
 0x17f   : > { %2322 = vst.msk [vmem:[#allocation3 + $0x40] sm:$0xf] %vm2305_vm1, %v2242_v62  ;;  %v2663_v44 = vsel %vm5548_vm11, %v2658_v54, %v2662_v61  ;;  %v3074_v61 = vrot.slane %v2933_v24, 5  ;;  %v3437_v54 = vld [vmem:[#allocation2 + $0x34] sm:$0xf] }
 0x180   : > { %4201 = vrot.lane.b32.xlu0 %v4093_v58, %s5411_s10  ;;  %v2244_v9 = vpop.permute.xlu1 %2243  ;;  %v2905_v58 = vld [vmem:[#allocation2 + $0x24] sm:$0xe]  ;;  %v2649_v36 = vsel %vm5548_vm11, %v2644_v42, %v2648_v43  ;;  %v2668_v48 = vrot.slane %v2667_v45, 4  ;;  %v1070_v43 = vld [vmem:[#allocation2 + $0xc8] sm:$0x1]  ;;  %v3536_v60 = vshll.u32 %v3437_v54, 16 }
 0x181   : > { %2323 = vst.msk [vmem:[#allocation3 + $0x44] sm:$0xf] %vm2305_vm1, %v2244_v9  ;;  %v5119_v50 = vrot.slane %v2905_v58, 9  ;;  %v3075_v57 = vsel %vm5910_vm14, %v5128_v40, %v3074_v61  ;;  %v1071_v51 = vsel %vm5462_vm4, %v908_v37, %v1070_v43  ;;  %v3530_v58 = vshll.u32 %v3436_v47, 16  ;;  %v3462_v37 = vld [vmem:[#allocation2 + $0x98] sm:$0x1] }
 0x182   : > { %v2246_v17 = vpop.permute.xlu0 %2245  ;;  %4231 = vrot.lane.b32.xlu1 %v4146_v56, %s5411_s10  ;;  %v2930_v56 = vld [vmem:[#allocation2 + $0x88] sm:$0xf]  ;;  %v2673_v8 = vsel %vm5548_vm11, %v2668_v48, %v2672_v59  ;;  %1072 = vst [vmem:[#allocation2 + $0xc8] sm:$0x1] %v1071_v51  ;;  %v3460_v48 = vld [vmem:[#allocation2 + $0x90] sm:$0xf] }
 0x183   : > { %2324 = vst.msk [vmem:[#allocation3 + $0x48] sm:$0xf] %vm2305_vm1, %v2246_v17  ;;  %v3067_v9 = vrot.slane %v2930_v56, 5  ;;  %v3012_v13 = vsel %vm5910_vm14, %v5119_v50, %v3011_v49  ;;  %v3070_v17 = vrot.slane %v2931_v11, 5  ;;  %v3527_v49 = vshrl.u32 %v3436_v47, 16 }
 0x184   : > { %4233 = vrot.lane.b32.xlu0 %v4149_v30, %s5411_s10  ;;  %v2248_v26 = vpop.permute.xlu1 %2247  ;;  %v3242_v56 = vld [vmem:[#allocation2 + $0x34] sm:$0xf]  ;;  %v3719_v6 = vshrl.u32 %v3460_v48, 16  ;;  %v3722_v7 = vshll.u32 %v3460_v48, 16  ;;  %v6391_v11 = vrot.slane %v3536_v60, 5 }
 0x185   : > { %2325 = vst.msk [vmem:[#allocation3 + $0x4c] sm:$0xf] %vm2305_vm1, %v2248_v26  ;;  %v3069_v16 = vrot.slane %v3067_v9, 4  ;;  %v3068_v63 = vsel %vm5910_vm14, %v5127_v14, %v3067_v9  ;;  %v5120_v26 = vrot.slane %v2908_v15, 9  ;;  %v3529_v50 = vrot.slane %v3527_v49, 4 }
 0x186   : > { %v2250_v35 = vpop.permute.xlu0 %2249  ;;  %4203 = vrot.lane.b32.xlu1 %v4097_v19, %s5411_s10  ;;  %v3018_v19 = vrot.slane %v2909_v3, 5  ;;  %v3438_v14 = vld [vmem:[#allocation2 + $0x38] sm:$0x1]  ;;  %v3440_v15 = vld [vmem:[#allocation2 + $0x40] sm:$0xf] }
 0x187   : > { %2326 = vst.msk [vmem:[#allocation3 + $0x50] sm:$0xf] %vm2305_vm1, %v2250_v35  ;;  %v3071_v25 = vsel %vm5910_vm14, %v3069_v16, %v3070_v17  ;;  %v2934_v35 = vld [vmem:[#allocation2 + $0x98] sm:$0x1]  ;;  %v3721_v17 = vrot.slane %v3719_v6, 4  ;;  %v3564_v28 = vshrl.u32 %v3440_v15, 16 }
 0x188   : > { %4205 = vrot.lane.b32.xlu0 %v4100_v46, %s5411_s10  ;;  %v2252_v41 = vpop.permute.xlu1 %2251  ;;  %v3020_v27 = vrot.slane %v3018_v19, 4  ;;  %v3077_v42 = vrot.slane %v2934_v35, 5  ;;  %v3464_v40 = vld [vmem:[#allocation2 + $0xa0] sm:$0xf]  ;;  %v3441_v49 = vld [vmem:[#allocation2 + $0x44] sm:$0x1] }
 0x189   : > { %2327 = vst.msk [vmem:[#allocation3 + $0x54] sm:$0xf] %vm2305_vm1, %v2252_v41  ;;  %v3570_v6 = vshll.u32 %v3441_v49, 16 }
 0x18a   : > { %v2254_v52 = vpop.permute.xlu0 %2253  ;;  %4235 = vrot.lane.b32.xlu1 %v4153_v38, %s5411_s10  ;;  %v3019_v38 = vsel %vm5910_vm14, %v5120_v26, %v3018_v19  ;;  %v3022_v41 = vsel %vm5910_vm14, %v3020_v27, %v3021_v29  ;;  %v3724_v19 = vrot.slane %v3722_v7, 5  ;;  %v3546_v26 = vshll.u32 %v3438_v14, 16  ;;  %v3244_v27 = vld [vmem:[#allocation2 + $0x40] sm:$0xf] }
 0x18b   : > { %2328 = vst.msk [vmem:[#allocation3 + $0x58] sm:$0xf] %vm2305_vm1, %v2254_v52 }
 0x18c   : > { %4237 = vrot.lane.b32.xlu0 %v4156_v31, %s5411_s10  ;;  %v2256_v55 = vpop.permute.xlu1 %2255  ;;  %v3076_v31 = vrot.slane %v3074_v61, 4  ;;  %v3548_v51 = vrot.slane %v3546_v26, 5 }
 0x18d   : > { %2329 = vst.msk [vmem:[#allocation3 + $0x5c] sm:$0xf] %vm2305_vm1, %v2256_v55 }
 0x18e   : > { %v2258_v62 = vpop.permute.xlu0 %2257  ;;  %2810 = vrot.lane.b32.xlu1 %v2639_v53, %s5407_s27  ;;  %v3078_v53 = vsel %vm5910_vm14, %v3076_v31, %v3077_v42 }
 0x18f   : > { %2330 = vst.msk [vmem:[#allocation3 + $0x60] sm:$0xf] %vm2305_vm1, %v2258_v62  ;;  %v3540_v62 = vshrl.u32 %v3437_v54, 16 }
 0x190   : > { %2812 = vrot.lane.b32.xlu0 %v2649_v36, %s5407_s27  ;;  %v2260_v4 = vpop.permute.xlu1 %2259  ;;  %v3241_v36 = vld [vmem:[#allocation2 + $0x30] sm:$0xf] }
 0x191   : > { %2331 = vst.msk [vmem:[#allocation3 + $0x64] sm:$0xf] %vm2305_vm1, %v2260_v4  ;;  %v3532_v4 = vrot.slane %v3530_v58, 5  ;;  %v3542_v3 = vrot.slane %v3540_v62, 4  ;;  %v3752_v58 = vshll.u32 %v3464_v40, 16 }
 0x192   : > { %v2262_v30 = vpop.permute.xlu0 %2261  ;;  %2814 = vrot.lane.b32.xlu1 %v2663_v44, %s5407_s27 }
 0x193   : > { %2332 = vst.msk [vmem:[#allocation3 + $0x68] sm:$0xf] %vm2305_vm1, %v2262_v30  ;;  %v3258_v30 = vld [vmem:[#allocation2 + $0x94] sm:$0xf]  ;;  %v3533_v16 = vor.u32 %v3532_v4, %v3529_v50 }
 0x194   : > { %2816 = vrot.lane.b32.xlu0 %v2673_v8, %s5407_s27  ;;  %v2264_v1 = vpop.permute.xlu1 %2263  ;;  %v3257_v8 = vld [vmem:[#allocation2 + $0x90] sm:$0xf] }
 0x195   : > { %2333 = vst.msk [vmem:[#allocation3 + $0x6c] sm:$0xf] %vm2305_vm1, %v2264_v1  ;;  %v3728_v1 = vshll.u32 %v3461_v5, 16  ;;  %v3534_v35 = vrot.slane %v3533_v16, 4 }
 0x196   : > { %v2266_v21 = vpop.permute.xlu0 %2265  ;;  %3115 = vrot.lane.b32.xlu1 %v3012_v13, %s5408_s28  ;;  %v3439_v13 = vld [vmem:[#allocation2 + $0x3c] sm:$0xf] }
 0x197   : > { %2334 = vst.msk [vmem:[#allocation3 + $0x70] sm:$0xf] %vm2305_vm1, %v2266_v21  ;;  %v3551_v21 = vshrl.u32 %v3439_v13, 16  ;;  %v3554_v23 = vshll.u32 %v3439_v13, 16  ;;  %v3730_v29 = vrot.slane %v3728_v1, 5 }
 0x198   : > { %3117 = vrot.lane.b32.xlu0 %v3015_v10, %s5408_s28  ;;  %v2268_v46 = vpop.permute.xlu1 %2267  ;;  %v3732_v10 = vshrl.u32 %v3461_v5, 16 }
 0x199   : > { %2335 = vst.msk [vmem:[#allocation3 + $0x74] sm:$0xf] %vm2305_vm1, %v2268_v46  ;;  %v3560_v46 = vshll.u32 %v3440_v15, 16  ;;  %v3556_v31 = vrot.slane %v3554_v23, 5  ;;  %v3998_v23 = vld [vmem:[#allocation2 + $0x34] sm:$0xf] }
 0x19a   : > { %v2270_v34 = vpop.permute.xlu0 %2269  ;;  %3147 = vrot.lane.b32.xlu1 %v3068_v63, %s5408_s28  ;;  %v3543_v63 = vor.u32 %v3542_v3, %v6391_v11  ;;  %v3734_v61 = vrot.slane %v3732_v10, 4  ;;  %v3465_v3 = vld [vmem:[#allocation2 + $0xa4] sm:$0x1] }
 0x19b   : > { %2336 = vst.msk [vmem:[#allocation3 + $0x78] sm:$0xf] %vm2305_vm1, %v2270_v34 }
 0x19c   : > { %3149 = vrot.lane.b32.xlu0 %v3071_v25, %s5408_s28  ;;  %v2272_v32 = vpop.permute.xlu1 %2271  ;;  %v3463_v25 = vld [vmem:[#allocation2 + $0x9c] sm:$0xf]  ;;  %v3544_v47 = vrot.slane %v3543_v63, 4  ;;  %v3735_v54 = vor.u32 %v3734_v61, %v3730_v29 }
 0x19d   : > { %2337 = vst.msk [vmem:[#allocation3 + $0x7c] sm:$0xf] %vm2305_vm1, %v2272_v32  ;;  %v3259_v32 = vld [vmem:[#allocation2 + $0x9c] sm:$0xf]  ;;  %v3743_v42 = vshrl.u32 %v3463_v25, 16  ;;  %v3746_v43 = vshll.u32 %v3463_v25, 16 }
 0x19e   : > { %v2771_v45 = vpop.permute.xlu0 %2770  ;;  %3119 = vrot.lane.b32.xlu1 %v3019_v38, %s5408_s28  ;;  %v3725_v38 = vor.u32 %v3724_v19, %v3721_v17  ;;  %v3549_v4 = vsel %vm5548_vm11, %v3544_v47, %v3548_v51  ;;  %v3736_v7 = vrot.slane %v3735_v54, 4  ;;  %v3762_v19 = vshll.u32 %v3465_v3, 16 }
 0x19f   : > { %2867 = vst.msk [vmem:[#allocation3] sm:$0xf] %vm2866_vm3, %v2771_v45 }
 0x1a0   : > { %3121 = vrot.lane.b32.xlu0 %v3022_v41, %s5408_s28  ;;  %v2773_v52 = vpop.permute.xlu1 %2772  ;;  %v3553_v41 = vrot.slane %v3551_v21, 4  ;;  %v3726_v60 = vrot.slane %v3725_v38, 4  ;;  %v3764_v61 = vrot.slane %v3762_v19, 5  ;;  %v3999_v38 = vld [vmem:[#allocation2 + $0x38] sm:$0x1] }
 0x1a1   : > { %2868 = vst.msk [vmem:[#allocation3 + $0x4] sm:$0xf] %vm2866_vm3, %v2773_v52  ;;  %v3562_v52 = vrot.slane %v3560_v46, 5  ;;  %v4106_v51 = vrot.slane %v3999_v38, 5 }
 0x1a2   : > { %v2775_v55 = vpop.permute.xlu0 %2774  ;;  %3151 = vrot.lane.b32.xlu1 %v3075_v57, %s5408_s28  ;;  %v3260_v57 = vld [vmem:[#allocation2 + $0xa0] sm:$0xf]  ;;  %v3557_v62 = vor.u32 %v3556_v31, %v3553_v41  ;;  %v3731_v13 = vsel %vm5548_vm11, %v3726_v60, %v3730_v29  ;;  %v4023_v41 = vld [vmem:[#allocation2 + $0x98] sm:$0x1]  ;;  %v4021_v31 = vld [vmem:[#allocation2 + $0x90] sm:$0xe] }
 0x1a3   : > { %2869 = vst.msk [vmem:[#allocation3 + $0x8] sm:$0xf] %vm2866_vm3, %v2775_v55  ;;  %v3738_v55 = vshll.u32 %v3462_v37, 16  ;;  %v5143_v49 = vrot.slane %v4021_v31, 9 }
 0x1a4   : > { %3153 = vrot.lane.b32.xlu0 %v3078_v53, %s5408_s28  ;;  %v2777_v59 = vpop.permute.xlu1 %2776  ;;  %v3566_v53 = vrot.slane %v3564_v28, 4  ;;  %v3558_v14 = vrot.slane %v3557_v62, 4  ;;  %v3997_v28 = vld [vmem:[#allocation2 + $0x30] sm:$0xe] }
 0x1a5   : > { %2870 = vst.msk [vmem:[#allocation3 + $0xc] sm:$0xf] %vm2866_vm3, %v2777_v59  ;;  %v3539_v59 = vsel %vm5548_vm11, %v3534_v35, %v6391_v11 }
 0x1a6   : > { %v2779_v44 = vpop.permute.xlu0 %2778  ;;  %3309 = vrot.lane.b32.xlu1 %v3241_v36, %s5409_s29  ;;  %v3756_v36 = vshrl.u32 %v3464_v40, 16  ;;  %v3567_v5 = vor.u32 %v3566_v53, %v3562_v52  ;;  %v3563_v26 = vsel %vm5548_vm11, %v3558_v14, %v3562_v52  ;;  %v5135_v40 = vrot.slane %v3997_v28, 9 }
 0x1a7   : > { %2871 = vst.msk [vmem:[#allocation3 + $0x10] sm:$0xf] %vm2866_vm3, %v2779_v44  ;;  %v3748_v44 = vrot.slane %v3746_v43, 5  ;;  %v4001_v43 = vld [vmem:[#allocation2 + $0x40] sm:$0xf] }
 0x1a8   : > { %3311 = vrot.lane.b32.xlu0 %v3242_v56, %s5409_s29  ;;  %v2781_v9 = vpop.permute.xlu1 %2780  ;;  %v3745_v56 = vrot.slane %v3743_v42, 4  ;;  %v3568_v15 = vrot.slane %v3567_v5, 4  ;;  %v504_v5 = vld [vmem:[#allocation2 + $0xd4] sm:$0x1] }
 0x1a9   : > { %2872 = vst.msk [vmem:[#allocation3 + $0x14] sm:$0xf] %vm2866_vm3, %v2781_v9  ;;  %v3754_v9 = vrot.slane %v3752_v58, 5  ;;  %v2375_v58 = vld [vmem:[#allocation2 + $0xa0] sm:$0xf] }
 0x1aa   : > { %v2783_v12 = vpop.permute.xlu0 %2782  ;;  %3341 = vrot.lane.b32.xlu1 %v3257_v8, %s5409_s29  ;;  %v3740_v8 = vrot.slane %v3738_v55, 5  ;;  %v3749_v1 = vor.u32 %v3748_v44, %v3745_v56  ;;  %v4162_v55 = vrot.slane %v4023_v41, 5 }
 0x1ab   : > { %2873 = vst.msk [vmem:[#allocation3 + $0x18] sm:$0xf] %vm2866_vm3, %v2783_v12  ;;  %v3572_v12 = vrot.slane %v3570_v6, 5 }
 0x1ac   : > { %3343 = vrot.lane.b32.xlu0 %v3258_v30, %s5409_s29  ;;  %v2785_v24 = vpop.permute.xlu1 %2784  ;;  %v3758_v30 = vrot.slane %v3756_v36, 4  ;;  %v3741_v16 = vsel %vm5548_vm11, %v3736_v7, %v3740_v8  ;;  %v3750_v46 = vrot.slane %v3749_v1, 4  ;;  %v4025_v7 = vld [vmem:[#allocation2 + $0xa0] sm:$0xf]  ;;  %v2684_v8 = vshll.u32 %v2375_v58, 16 }
 0x1ad   : > { %2874 = vst.msk [vmem:[#allocation3 + $0x1c] sm:$0xf] %vm2866_vm3, %v2785_v24  ;;  %v4022_v24 = vld [vmem:[#allocation2 + $0x94] sm:$0xf]  ;;  %v4166_v19 = vrot.slane %v4025_v7, 5 }
 0x1ae   : > { %v2787_v34 = vpop.permute.xlu0 %2786  ;;  %3313 = vrot.lane.b32.xlu1 %v3243_v20, %s5409_s29  ;;  %v3759_v17 = vor.u32 %v3758_v30, %v3754_v9  ;;  %v448_v20 = vld [vmem:[#allocation2 + $0xcc] sm:$0x1]  ;;  %v4159_v35 = vrot.slane %v4022_v24, 5  ;;  %v505_v30 = vsel %vm5467_vm5, 0, %v504_v5  ;;  %vm3397_vm5 = vcmask 224448  }
 0x1af   : > { %2875 = vst.msk [vmem:[#allocation3 + $0x20] sm:$0xf] %vm2866_vm3, %v2787_v34  ;;  %v449_v63 = vsel %vm5462_vm4, 0, %v448_v20  ;;  %v4103_v34 = vrot.slane %v3998_v23, 5  ;;  %506 = vst [vmem:[#allocation2 + $0xd4] sm:$0x1] %v505_v30 }
 0x1b0   : > { %3315 = vrot.lane.b32.xlu0 %v3244_v27, %s5409_s29  ;;  %v2789_v45 = vpop.permute.xlu1 %2788  ;;  %450 = vst [vmem:[#allocation2 + $0xcc] sm:$0x1] %v449_v63  ;;  %v3573_v27 = vsel %vm5548_vm11, %v3568_v15, %v3572_v12  ;;  %v3760_v29 = vrot.slane %v3759_v17, 4  ;;  %v4161_v52 = vrot.slane %v4159_v35, 4  ;;  %v4024_v20 = vld [vmem:[#allocation2 + $0x9c] sm:$0xe] }
 0x1b1   : > { %2876 = vst.msk [vmem:[#allocation3 + $0x24] sm:$0xf] %vm2866_vm3, %v2789_v45  ;;  %v2374_v45 = vld [vmem:[#allocation2 + $0x9c] sm:$0xf]  ;;  %v4105_v47 = vrot.slane %v4103_v34, 4  ;;  %v4104_v54 = vsel %vm5910_vm14, %v5135_v40, %v4103_v34  ;;  %v2686_v23 = vrot.slane %v2684_v8, 5 }
 0x1b2   : > { %v2791_v48 = vpop.permute.xlu0 %2790  ;;  %3345 = vrot.lane.b32.xlu1 %v3259_v32, %s5409_s29  ;;  %v3755_v32 = vsel %vm5548_vm11, %v3750_v46, %v3754_v9  ;;  %v2675_v60 = vshrl.u32 %v2374_v45, 16  ;;  %v2678_v62 = vshll.u32 %v2374_v45, 16  ;;  %v2688_v9 = vshrl.u32 %v2375_v58, 16  ;;  %v2913_v8 = vld [vmem:[#allocation2 + $0x44] sm:$0x1] }
 0x1b3   : > { %2877 = vst.msk [vmem:[#allocation3 + $0x28] sm:$0xf] %vm2866_vm3, %v2791_v48  ;;  %v4110_v48 = vrot.slane %v4001_v43, 5  ;;  %v4107_v6 = vsel %vm5910_vm14, %v4105_v47, %v4106_v51  ;;  %v4163_v2 = vsel %vm5910_vm14, %v4161_v52, %v4162_v55  ;;  %v4168_v38 = vrot.slane %v4166_v19, 4 }
 0x1b4   : > { %3347 = vrot.lane.b32.xlu0 %v3260_v57, %s5409_s29  ;;  %v2793_v50 = vpop.permute.xlu1 %2792  ;;  %v3765_v57 = vsel %vm5548_vm11, %v3760_v29, %v3764_v61  ;;  %v2677_v14 = vrot.slane %v2675_v60, 4  ;;  %v2680_v1 = vrot.slane %v2678_v62, 5  ;;  %v2690_v24 = vrot.slane %v2688_v9, 4  ;;  %v2936_v9 = vld [vmem:[#allocation2 + $0xa0] sm:$0xf] }
 0x1b5   : > { %2878 = vst.msk [vmem:[#allocation3 + $0x2c] sm:$0xf] %vm2866_vm3, %v2793_v50  ;;  %v4002_v50 = vld [vmem:[#allocation2 + $0x44] sm:$0x1] }
 0x1b6   : > { %v2795_v11 = vpop.permute.xlu0 %2794  ;;  %3870 = vrot.lane.b32.xlu1 %v3539_v59, %s5410_s30  ;;  %v4000_v59 = vld [vmem:[#allocation2 + $0x3c] sm:$0xe]  ;;  %v4113_v17 = vrot.slane %v4002_v50, 5  ;;  %v2681_v29 = vor.u32 %v2680_v1, %v2677_v14  ;;  %v1174_v43 = vld [vmem:[#allocation2 + $0xd4] sm:$0x1]  ;;  %v3028_v1 = vrot.slane %v2913_v8, 5 }
 0x1b7   : > { %2879 = vst.msk [vmem:[#allocation3 + $0x30] sm:$0xf] %vm2866_vm3, %v2795_v11  ;;  %v1170_v36 = vld [vmem:[#allocation2 + $0xcc] sm:$0xf]  ;;  %v4160_v11 = vsel %vm5910_vm14, %v5143_v49, %v4159_v35  ;;  %v5136_v3 = vrot.slane %v4000_v59, 9  ;;  %v1175_v47 = vsel %vm5462_vm4, 0, %v1174_v43 }
 0x1b8   : > { %3872 = vrot.lane.b32.xlu0 %v3549_v4, %s5410_s30  ;;  %v2803_v10 = vpop.permute.xlu1 %2802  ;;  %v1171_v56 = vsel %vm5492_vm6, 0, %v1170_v36  ;;  %v2377_v4 = vld [vmem:[#allocation2 + $0xa8] sm:$0xf]  ;;  %v2682_v52 = vrot.slane %v2681_v29, 4  ;;  %1176 = vst [vmem:[#allocation2 + $0xd4] sm:$0x1] %v1175_v47 }
 0x1b9   : > { %2883 = vst.msk [vmem:[#allocation3 + $0x40] sm:$0xf] %vm2866_vm3, %v2803_v10  ;;  %1172 = vst [vmem:[#allocation2 + $0xcc] sm:$0xf] %v1171_v56  ;;  %v2699_v10 = vshrl.u32 %v2377_v4, 16  ;;  %v2702_v15 = vshll.u32 %v2377_v4, 16  ;;  %v4111_v28 = vsel %vm5910_vm14, %v5136_v3, %v4110_v48 }
 0x1ba   : > { %v2805_v21 = vpop.permute.xlu0 %2804  ;;  %3902 = vrot.lane.b32.xlu1 %v3731_v13, %s5410_s30  ;;  %v2378_v13 = vld [vmem:[#allocation2 + $0xac] sm:$0xf]  ;;  %v2912_v59 = vld [vmem:[#allocation2 + $0x40] sm:$0xf]  ;;  %v2687_v60 = vsel %vm5548_vm11, %v2682_v52, %v2686_v23  ;;  %v2935_v3 = vld [vmem:[#allocation2 + $0x9c] sm:$0xe] }
 0x1bb   : > { %2884 = vst.msk [vmem:[#allocation3 + $0x44] sm:$0xf] %vm2866_vm3, %v2805_v21  ;;  %v4026_v21 = vld [vmem:[#allocation2 + $0xa4] sm:$0x1]  ;;  %v2708_v63 = vshll.u32 %v2378_v13, 16  ;;  %v2701_v61 = vrot.slane %v2699_v10, 4 }
 0x1bc   : > { %3904 = vrot.lane.b32.xlu0 %v3741_v16, %s5410_s30  ;;  %v2807_v25 = vpop.permute.xlu1 %2806  ;;  %v4112_v16 = vrot.slane %v4110_v48, 4  ;;  %v2704_v34 = vrot.slane %v2702_v15, 5  ;;  %v4169_v40 = vrot.slane %v4026_v21, 5  ;;  %v3081_v10 = vrot.slane %v2936_v9, 5  ;;  %v3442_v52 = vld [vmem:[#allocation2 + $0x48] sm:$0xf] }
 0x1bd   : > { %2885 = vst.msk [vmem:[#allocation3 + $0x48] sm:$0xf] %vm2866_vm3, %v2807_v25  ;;  %v2376_v25 = vld [vmem:[#allocation2 + $0xa4] sm:$0x1]  ;;  %v2710_v31 = vrot.slane %v2708_v63, 5  ;;  %vm3958_vm4 = vcmask 257248  }
 0x1be   : > { %v2809_v37 = vpop.permute.xlu0 %2808  ;;  %3874 = vrot.lane.b32.xlu1 %v3563_v26, %s5410_s30  ;;  %v2712_v26 = vshrl.u32 %v2378_v13, 16  ;;  %v2694_v41 = vshll.u32 %v2376_v25, 16  ;;  %v4170_v55 = vsel %vm5910_vm14, %v4168_v38, %v4169_v40  ;;  %vm4295_vm6 = vcmask 290048   ;;  %v3261_v8 = vld [vmem:[#allocation2 + $0xa8] sm:$0xf] }
 0x1bf   : > { %2886 = vst.msk [vmem:[#allocation3 + $0x4c] sm:$0xf] %vm2866_vm3, %v2809_v37  ;;  %v4114_v37 = vsel %vm5910_vm14, %v4112_v16, %v4113_v17  ;;  %v5129_v17 = vrot.slane %v2935_v3, 9 }
 0x1c0   : > { %3876 = vrot.lane.b32.xlu0 %v3573_v27, %s5410_s30  ;;  %v3108_v42 = vpop.permute.xlu1 %3107  ;;  %v5144_v27 = vrot.slane %v4024_v20, 9  ;;  %v2696_v58 = vrot.slane %v2694_v41, 5  ;;  %v2914_v20 = vld [vmem:[#allocation2 + $0x48] sm:$0xe] }
 0x1c1   : > { %3204 = vst.msk [vmem:[#allocation3] sm:$0xf] %vm3203_vm7, %v3108_v42  ;;  %v2714_v42 = vrot.slane %v2712_v26, 4  ;;  %v3082_v25 = vsel %vm5910_vm14, %v5129_v17, %v3081_v10  ;;  %v3247_v17 = vld [vmem:[#allocation2 + $0x54] sm:$0xf] }
 0x1c2   : > { %v3110_v53 = vpop.permute.xlu0 %3109  ;;  %3906 = vrot.lane.b32.xlu1 %v3755_v32, %s5410_s30  ;;  %v2691_v32 = vor.u32 %v2690_v24, %v2686_v23  ;;  %v4167_v51 = vsel %vm5910_vm14, %v5144_v27, %v4166_v19  ;;  %v3083_v23 = vrot.slane %v3081_v10, 4  ;;  %v5122_v27 = vrot.slane %v2914_v20, 9 }
 0x1c3   : > { %3205 = vst.msk [vmem:[#allocation3 + $0x4] sm:$0xf] %vm3203_vm7, %v3110_v53  ;;  %v2705_v53 = vor.u32 %v2704_v34, %v2701_v61  ;;  %v2715_v0 = vor.u32 %v2714_v42, %v2710_v31  ;;  %v2938_v61 = vld [vmem:[#allocation2 + $0xa8] sm:$0xe] }
 0x1c4   : > { %3908 = vrot.lane.b32.xlu0 %v3765_v57, %s5410_s30  ;;  %v3140_v44 = vpop.permute.xlu1 %3139  ;;  %v2379_v57 = vld [vmem:[#allocation2 + $0xb0] sm:$0x1]  ;;  %v2692_v49 = vrot.slane %v2691_v32, 4 }
 0x1c5   : > { %3220 = vst.msk [vmem:[#allocation3 + $0x40] sm:$0xf] %vm3203_vm7, %v3140_v44  ;;  %v2718_v36 = vshll.u32 %v2379_v57, 16  ;;  %v2706_v62 = vrot.slane %v2705_v53, 4  ;;  %v2911_v44 = vld [vmem:[#allocation2 + $0x3c] sm:$0xe] }
 0x1c6   : > { %v3142_v18 = vpop.permute.xlu0 %3141  ;;  %4207 = vrot.lane.b32.xlu1 %v4104_v54, %s5411_s10  ;;  %v2697_v50 = vsel %vm5548_vm11, %v2692_v49, %v2696_v58  ;;  %v2716_v4 = vrot.slane %v2715_v0, 4  ;;  %v2940_v32 = vld [vmem:[#allocation2 + $0xb0] sm:$0x1]  ;;  %v3575_v58 = vshrl.u32 %v3442_v52, 16  ;;  %v3578_v0 = vshll.u32 %v3442_v52, 16 }
 0x1c7   : > { %3221 = vst.msk [vmem:[#allocation3 + $0x44] sm:$0xf] %vm3203_vm7, %v3142_v18  ;;  %v2720_v5 = vrot.slane %v2718_v36, 5  ;;  %v2711_v30 = vsel %vm5548_vm11, %v2706_v62, %v2710_v31  ;;  %v5121_v18 = vrot.slane %v2911_v44, 9  ;;  %v5130_v31 = vrot.slane %v2938_v61, 9 }
 0x1c8   : > { %4209 = vrot.lane.b32.xlu0 %v4107_v6, %s5411_s10  ;;  %v3112_v12 = vpop.permute.xlu1 %3111  ;;  %v3025_v6 = vrot.slane %v2912_v59, 5  ;;  %v3091_v57 = vrot.slane %v2940_v32, 5  ;;  %v3245_v36 = vld [vmem:[#allocation2 + $0x48] sm:$0xf]  ;;  %v3467_v44 = vld [vmem:[#allocation2 + $0xac] sm:$0xf] }
 0x1c9   : > { %3206 = vst.msk [vmem:[#allocation3 + $0x8] sm:$0xf] %vm3203_vm7, %v3112_v12  ;;  %v2721_v13 = vsel %vm5548_vm11, %v2716_v4, %v2720_v5  ;;  %v2937_v12 = vld [vmem:[#allocation2 + $0xa4] sm:$0x1]  ;;  %v3577_v4 = vrot.slane %v3575_v58, 4  ;;  %v3580_v5 = vrot.slane %v3578_v0, 5 }
 0x1ca   : > { %v3114_v46 = vpop.permute.xlu0 %3113  ;;  %4239 = vrot.lane.b32.xlu1 %v4160_v11, %s5411_s10  ;;  %v3027_v14 = vrot.slane %v3025_v6, 4  ;;  %v3026_v16 = vsel %vm5910_vm14, %v5121_v18, %v3025_v6  ;;  %v3084_v24 = vrot.slane %v2937_v12, 5  ;;  %v3780_v3 = vshrl.u32 %v3467_v44, 16 }
 0x1cb   : > { %3207 = vst.msk [vmem:[#allocation3 + $0xc] sm:$0xf] %vm3203_vm7, %v3114_v46  ;;  %v2916_v46 = vld [vmem:[#allocation2 + $0x50] sm:$0x1] }
 0x1cc   : > { %4241 = vrot.lane.b32.xlu0 %v4163_v2, %s5411_s10  ;;  %v3144_v35 = vpop.permute.xlu1 %3143  ;;  %v2915_v2 = vld [vmem:[#allocation2 + $0x4c] sm:$0xf]  ;;  %v3029_v21 = vsel %vm5910_vm14, %v3027_v14, %v3028_v1  ;;  %v3085_v34 = vsel %vm5910_vm14, %v3083_v23, %v3084_v24  ;;  %v3444_v1 = vld [vmem:[#allocation2 + $0x50] sm:$0x1] }
 0x1cd   : > { %3222 = vst.msk [vmem:[#allocation3 + $0x48] sm:$0xf] %vm3203_vm7, %v3144_v35  ;;  %v3032_v63 = vrot.slane %v2915_v2, 5  ;;  %v3262_v14 = vld [vmem:[#allocation2 + $0xac] sm:$0xf]  ;;  %v3594_v24 = vshll.u32 %v3444_v1, 16 }
 0x1ce   : > { %v3146_v45 = vpop.permute.xlu0 %3145  ;;  %4211 = vrot.lane.b32.xlu1 %v4111_v28, %s5411_s10  ;;  %v2939_v28 = vld [vmem:[#allocation2 + $0xac] sm:$0xf] }
 0x1cf   : > { %3223 = vst.msk [vmem:[#allocation3 + $0x4c] sm:$0xf] %vm3203_vm7, %v3146_v45  ;;  %v3034_v35 = vrot.slane %v3032_v63, 4  ;;  %v3088_v38 = vrot.slane %v2939_v28, 5  ;;  %v3033_v41 = vsel %vm5910_vm14, %v5122_v27, %v3032_v63  ;;  %v3248_v28 = vld [vmem:[#allocation2 + $0x58] sm:$0xf] }
 0x1d0   : > { %4213 = vrot.lane.b32.xlu0 %v4114_v37, %s5411_s10  ;;  %v3302_v54 = vpop.permute.xlu1 %3301  ;;  %v3035_v37 = vrot.slane %v2916_v46, 5  ;;  %v3469_v46 = vld [vmem:[#allocation2 + $0xb4] sm:$0xf] }
 0x1d1   : > { %3398 = vst.msk [vmem:[#allocation3] sm:$0xf] %vm3397_vm5, %v3302_v54  ;;  %v3090_v45 = vrot.slane %v3088_v38, 4 }
 0x1d2   : > { %v3304_v48 = vpop.permute.xlu0 %3303  ;;  %4243 = vrot.lane.b32.xlu1 %v4167_v51, %s5411_s10  ;;  %v3036_v43 = vsel %vm5910_vm14, %v3034_v35, %v3035_v37  ;;  %v3089_v51 = vsel %vm5910_vm14, %v5130_v31, %v3088_v38  ;;  %v3470_v37 = vld [vmem:[#allocation2 + $0xb8] sm:$0xf]  ;;  %v3263_v38 = vld [vmem:[#allocation2 + $0xb4] sm:$0xf]  ;;  %v3794_v31 = vshll.u32 %v3469_v46, 16 }
 0x1d3   : > { %3399 = vst.msk [vmem:[#allocation3 + $0x4] sm:$0xf] %vm3397_vm5, %v3304_v48  ;;  %v3092_v54 = vsel %vm5910_vm14, %v3090_v45, %v3091_v57  ;;  %v3466_v48 = vld [vmem:[#allocation2 + $0xa8] sm:$0xf]  ;;  %v3596_v45 = vrot.slane %v3594_v24, 5 }
 0x1d4   : > { %4245 = vrot.lane.b32.xlu0 %v4170_v55, %s5411_s10  ;;  %v3334_v56 = vpop.permute.xlu1 %3333  ;;  %v3443_v55 = vld [vmem:[#allocation2 + $0x4c] sm:$0xf]  ;;  %v3767_v6 = vshrl.u32 %v3466_v48, 16  ;;  %v4003_v24 = vld [vmem:[#allocation2 + $0x48] sm:$0xe] }
 0x1d5   : > { %3414 = vst.msk [vmem:[#allocation3 + $0x40] sm:$0xf] %vm3397_vm5, %v3334_v56  ;;  %v3588_v62 = vshrl.u32 %v3443_v55, 16  ;;  %v3246_v56 = vld [vmem:[#allocation2 + $0x4c] sm:$0xf] }
 0x1d6   : > { %v3336_v7 = vpop.permute.xlu0 %3335  ;;  %2818 = vrot.lane.b32.xlu1 %v2687_v60, %s5407_s27  ;;  %v3584_v60 = vshll.u32 %v3443_v55, 16  ;;  %v3769_v12 = vrot.slane %v3767_v6, 4  ;;  %v3804_v55 = vshrl.u32 %v3470_v37, 16 }
 0x1d7   : > { %3415 = vst.msk [vmem:[#allocation3 + $0x44] sm:$0xf] %vm3397_vm5, %v3336_v7  ;;  %v3770_v7 = vshll.u32 %v3466_v48, 16  ;;  %v3590_v18 = vrot.slane %v3588_v62, 4  ;;  %v3796_v62 = vrot.slane %v3794_v31, 5 }
 0x1d8   : > { %2820 = vrot.lane.b32.xlu0 %v2697_v50, %s5407_s27  ;;  %v3306_v11 = vpop.permute.xlu1 %3305 }
 0x1d9   : > { %3400 = vst.msk [vmem:[#allocation3 + $0x8] sm:$0xf] %vm3397_vm5, %v3306_v11  ;;  %v3776_v11 = vshll.u32 %v3467_v44, 16  ;;  %v3772_v2 = vrot.slane %v3770_v7, 5 }
 0x1da   : > { %v3308_v15 = vpop.permute.xlu0 %3307  ;;  %2822 = vrot.lane.b32.xlu1 %v2711_v30, %s5407_s27  ;;  %v6531_v30 = vrot.slane %v3584_v60, 5 }
 0x1db   : > { %3401 = vst.msk [vmem:[#allocation3 + $0xc] sm:$0xf] %vm3397_vm5, %v3308_v15  ;;  %v3581_v15 = vor.u32 %v3580_v5, %v3577_v4  ;;  %v6538_v63 = vrot.slane %v3776_v11, 5  ;;  %v3773_v35 = vor.u32 %v3772_v2, %v3769_v12 }
 0x1dc   : > { %2824 = vrot.lane.b32.xlu0 %v2721_v13, %s5407_s27  ;;  %v3338_v19 = vpop.permute.xlu1 %3337  ;;  %v3445_v13 = vld [vmem:[#allocation2 + $0x54] sm:$0xf]  ;;  %v3591_v23 = vor.u32 %v3590_v18, %v6531_v30  ;;  %v3471_v18 = vld [vmem:[#allocation2 + $0xbc] sm:$0x1] }
 0x1dd   : > { %3416 = vst.msk [vmem:[#allocation3 + $0x48] sm:$0xf] %vm3397_vm5, %v3338_v19  ;;  %v3599_v19 = vshrl.u32 %v3445_v13, 16  ;;  %v3602_v20 = vshll.u32 %v3445_v13, 16  ;;  %v3774_v48 = vrot.slane %v3773_v35, 4  ;;  %v3810_v2 = vshll.u32 %v3471_v18, 16 }
 0x1de   : > { %v3340_v26 = vpop.permute.xlu0 %3339  ;;  %3123 = vrot.lane.b32.xlu1 %v3026_v16, %s5408_s28  ;;  %v3446_v16 = vld [vmem:[#allocation2 + $0x58] sm:$0xf]  ;;  %v5137_v35 = vrot.slane %v4003_v24, 9 }
 0x1df   : > { %3417 = vst.msk [vmem:[#allocation3 + $0x4c] sm:$0xf] %vm3397_vm5, %v3340_v26  ;;  %v3782_v26 = vrot.slane %v3780_v3, 4  ;;  %v3608_v27 = vshll.u32 %v3446_v16, 16  ;;  %v3604_v32 = vrot.slane %v3602_v20, 5  ;;  %v3779_v11 = vsel %vm5548_vm11, %v3774_v48, %v6538_v63 }
 0x1e0   : > { %3125 = vrot.lane.b32.xlu0 %v3029_v21, %s5408_s28  ;;  %v3863_v29 = vpop.permute.xlu1 %3862 }
 0x1e1   : > { %3959 = vst.msk [vmem:[#allocation3] sm:$0xf] %vm3958_vm4, %v3863_v29  ;;  %v3612_v29 = vshrl.u32 %v3446_v16, 16  ;;  %v3783_v57 = vor.u32 %v3782_v26, %v6538_v63  ;;  %v3610_v52 = vrot.slane %v3608_v27, 5 }
 0x1e2   : > { %v3865_v40 = vpop.permute.xlu0 %3864  ;;  %3155 = vrot.lane.b32.xlu1 %v3082_v25, %s5408_s28  ;;  %v3468_v25 = vld [vmem:[#allocation2 + $0xb0] sm:$0x1] }
 0x1e3   : > { %3960 = vst.msk [vmem:[#allocation3 + $0x4] sm:$0xf] %vm3958_vm4, %v3865_v40  ;;  %v3601_v40 = vrot.slane %v3599_v19, 4  ;;  %v4004_v19 = vld [vmem:[#allocation2 + $0x4c] sm:$0xf] }
 0x1e4   : > { %3157 = vrot.lane.b32.xlu0 %v3085_v34, %s5408_s28  ;;  %v3895_v42 = vpop.permute.xlu1 %3894  ;;  %v3582_v34 = vrot.slane %v3581_v15, 4 }
 0x1e5   : > { %3975 = vst.msk [vmem:[#allocation3 + $0x40] sm:$0xf] %vm3958_vm4, %v3895_v42 }
 0x1e6   : > { %v3897_v47 = vpop.permute.xlu0 %3896  ;;  %3127 = vrot.lane.b32.xlu1 %v3033_v41, %s5408_s28  ;;  %v3791_v41 = vshrl.u32 %v3469_v46, 16  ;;  %v3587_v0 = vsel %vm5548_vm11, %v3582_v34, %v6531_v30  ;;  %v3812_v46 = vrot.slane %v3810_v2, 5  ;;  %v4032_v2 = vld [vmem:[#allocation2 + $0xbc] sm:$0x1] }
 0x1e7   : > { %3976 = vst.msk [vmem:[#allocation3 + $0x44] sm:$0xf] %vm3958_vm4, %v3897_v47  ;;  %v3786_v47 = vshll.u32 %v3468_v25, 16  ;;  %v4117_v25 = vrot.slane %v4004_v19, 5 }
 0x1e8   : > { %3129 = vrot.lane.b32.xlu0 %v3036_v43, %s5408_s28  ;;  %v3867_v53 = vpop.permute.xlu1 %3866  ;;  %v3592_v43 = vrot.slane %v3591_v23, 4  ;;  %v3793_v60 = vrot.slane %v3791_v41, 4 }
 0x1e9   : > { %3961 = vst.msk [vmem:[#allocation3 + $0x8] sm:$0xf] %vm3958_vm4, %v3867_v53  ;;  %v3614_v53 = vrot.slane %v3612_v29, 4  ;;  %v3788_v4 = vrot.slane %v3786_v47, 5  ;;  %v4119_v41 = vrot.slane %v4117_v25, 4 }
 0x1ea   : > { %v3869_v49 = vpop.permute.xlu0 %3868  ;;  %3159 = vrot.lane.b32.xlu1 %v3089_v51, %s5408_s28  ;;  %v3264_v51 = vld [vmem:[#allocation2 + $0xb8] sm:$0xf]  ;;  %v3597_v44 = vsel %vm5548_vm11, %v3592_v43, %v3596_v45  ;;  %v3797_v13 = vor.u32 %v3796_v62, %v3793_v60  ;;  %v2380_v43 = vld [vmem:[#allocation2 + $0xb4] sm:$0xf] }
 0x1eb   : > { %3962 = vst.msk [vmem:[#allocation3 + $0xc] sm:$0xf] %vm3958_vm4, %v3869_v49  ;;  %v3615_v5 = vor.u32 %v3614_v53, %v3610_v52  ;;  %v5378_v45 = vld [vmem:[#allocation2 + $0x58] sm:$0xf]  ;;  %v2726_v48 = vshll.u32 %v2380_v43, 16 }
 0x1ec   : > { %3161 = vrot.lane.b32.xlu0 %v3092_v54, %s5408_s28  ;;  %v3899_v59 = vpop.permute.xlu1 %3898  ;;  %v3800_v54 = vshll.u32 %v3470_v37, 16 }
 0x1ed   : > { %3977 = vst.msk [vmem:[#allocation3 + $0x48] sm:$0xf] %vm3958_vm4, %v3899_v59  ;;  %v3605_v59 = vor.u32 %v3604_v32, %v3601_v40  ;;  %v6581_v40 = vld [vmem:[#allocation2 + $0x58] sm:$0xf] }
 0x1ee   : > { %v3901_v50 = vpop.permute.xlu0 %3900  ;;  %3317 = vrot.lane.b32.xlu1 %v3245_v36, %s5409_s29  ;;  %v3447_v36 = vld [vmem:[#allocation2 + $0x5c] sm:$0x1]  ;;  %v3802_v7 = vrot.slane %v3800_v54, 5  ;;  %v4124_v54 = vrot.slane %v6581_v40, 5 }
 0x1ef   : > { %3978 = vst.msk [vmem:[#allocation3 + $0x4c] sm:$0xf] %vm3958_vm4, %v3901_v50  ;;  %v3784_v50 = vrot.slane %v3783_v57, 4  ;;  %v3618_v6 = vshll.u32 %v3447_v36, 16  ;;  %v3606_v3 = vrot.slane %v3605_v59, 4  ;;  %v2544_v57 = vshrl.u32 %v5378_v45, 16 }
 0x1f0   : > { %3319 = vrot.lane.b32.xlu0 %v3246_v56, %s5409_s29  ;;  %v4200_v9 = vpop.permute.xlu1 %4199  ;;  %v2723_v36 = vshrl.u32 %v2380_v43, 16 }
 0x1f1   : > { %4296 = vst.msk [vmem:[#allocation3] sm:$0xf] %vm4295_vm6, %v4200_v9  ;;  %v3789_v1 = vsel %vm5548_vm11, %v3784_v50, %v3788_v4  ;;  %v3620_v15 = vrot.slane %v3618_v6, 5  ;;  %v3611_v20 = vsel %vm5548_vm11, %v3606_v3, %v3610_v52  ;;  %v4118_v52 = vsel %vm5910_vm14, %v5137_v35, %v4117_v25 }
 0x1f2   : > { %v4202_v10 = vpop.permute.xlu0 %4201  ;;  %3349 = vrot.lane.b32.xlu1 %v3261_v8, %s5409_s29  ;;  %v3806_v8 = vrot.slane %v3804_v55, 4  ;;  %v2381_v55 = vld [vmem:[#allocation2 + $0xb8] sm:$0xf]  ;;  %v2546_v4 = vrot.slane %v2544_v57, 4 }
 0x1f3   : > { %4297 = vst.msk [vmem:[#allocation3 + $0x4] sm:$0xf] %vm4295_vm6, %v4202_v10  ;;  %v3616_v10 = vrot.slane %v3615_v5, 4  ;;  %v2732_v5 = vshll.u32 %v2381_v55, 16  ;;  %v2736_v6 = vshrl.u32 %v2381_v55, 16 }
 0x1f4   : > { %3351 = vrot.lane.b32.xlu0 %v3262_v14, %s5409_s29  ;;  %v4232_v21 = vpop.permute.xlu1 %4231  ;;  %v3807_v12 = vor.u32 %v3806_v8, %v3802_v7 }
 0x1f5   : > { %4312 = vst.msk [vmem:[#allocation3 + $0x40] sm:$0xf] %vm4295_vm6, %v4232_v21  ;;  %v3798_v21 = vrot.slane %v3797_v13, 4  ;;  %v3621_v63 = vsel %vm5548_vm11, %v3616_v10, %v3620_v15  ;;  %v2728_v10 = vrot.slane %v2726_v48, 5  ;;  %v2360_v15 = vld [vmem:[#allocation2 + $0x64] sm:$0xf] }
 0x1f6   : > { %v4234_v61 = vpop.permute.xlu0 %4233  ;;  %3321 = vrot.lane.b32.xlu1 %v3247_v17, %s5409_s29  ;;  %v3808_v26 = vrot.slane %v3807_v12, 4  ;;  %v2738_v24 = vrot.slane %v2736_v6, 4  ;;  %v2564_v25 = vshll.u32 %v2360_v15, 16 }
 0x1f7   : > { %4313 = vst.msk [vmem:[#allocation3 + $0x44] sm:$0xf] %vm4295_vm6, %v4234_v61  ;;  %v4028_v61 = vld [vmem:[#allocation2 + $0xac] sm:$0xf]  ;;  %v3803_v34 = vsel %vm5548_vm11, %v3798_v21, %v3802_v7  ;;  %v2359_v7 = vld [vmem:[#allocation2 + $0x60] sm:$0xf] }
 0x1f8   : > { %3323 = vrot.lane.b32.xlu0 %v3248_v28, %s5409_s29  ;;  %v4204_v42 = vpop.permute.xlu1 %4203  ;;  %v4005_v28 = vld [vmem:[#allocation2 + $0x50] sm:$0x1]  ;;  %v3813_v32 = vsel %vm5548_vm11, %v3808_v26, %v3812_v46 }
 0x1f9   : > { %4298 = vst.msk [vmem:[#allocation3 + $0x8] sm:$0xf] %vm4295_vm6, %v4204_v42  ;;  %v4120_v31 = vrot.slane %v4005_v28, 5  ;;  %v4173_v42 = vrot.slane %v4028_v61, 5  ;;  %v2382_v28 = vld [vmem:[#allocation2 + $0xbc] sm:$0x1] }
 0x1fa   : > { %v4206_v49 = vpop.permute.xlu0 %4205  ;;  %3353 = vrot.lane.b32.xlu1 %v3263_v38, %s5409_s29  ;;  %v5361_v58 = vld [vmem:[#allocation3] sm:$0xff]   ;;  %v4027_v38 = vld [vmem:[#allocation2 + $0xa8] sm:$0xe]  ;;  %v4183_v61 = vrot.slane %v4032_v2, 5  ;;  %v2742_v57 = vshll.u32 %v2382_v28, 16 }
 0x1fb   : > { %4299 = vst.msk [vmem:[#allocation3 + $0xc] sm:$0xf] %vm4295_vm6, %v4206_v49  ;;  %5285 = vmatprep.mubr.msk.bf16.mxu0 %vm4470_vm8, %v5361_v58  ;;  %v5145_v53 = vrot.slane %v4027_v38, 9  ;;  %v4008_v58 = vld [vmem:[#allocation2 + $0x5c] sm:$0x1]  ;;  %v4121_v59 = vsel %vm5910_vm14, %v4119_v41, %v4120_v31  ;;  %v4175_v60 = vrot.slane %v4173_v42, 4 }
 0x1fc   : > { %3355 = vrot.lane.b32.xlu0 %v3264_v51, %s5409_s29  ;;  %v4236_v56 = vpop.permute.xlu1 %4235  ;;  %v4029_v51 = vld [vmem:[#allocation2 + $0xb0] sm:$0x1] }
 0x1fd   : > { %4314 = vst.msk [vmem:[#allocation3 + $0x48] sm:$0xf] %vm4295_vm6, %v4236_v56  ;;  %v4176_v62 = vrot.slane %v4029_v51, 5  ;;  %v4031_v56 = vld [vmem:[#allocation2 + $0xb8] sm:$0xf]  ;;  %v4174_v8 = vsel %vm5910_vm14, %v5145_v53, %v4173_v42 }
 0x1fe   : > { %v4238_v9 = vpop.permute.xlu0 %4237  ;;  %3878 = vrot.lane.b32.xlu1 %v3587_v0, %s5410_s30  ;;  %v5363_v30 = vld [vmem:[#allocation3 + $0x40] sm:$0xff]   ;;  %v4006_v0 = vld [vmem:[#allocation2 + $0x54] sm:$0xe]  ;;  %v4180_v13 = vrot.slane %v4031_v56, 5  ;;  %v2744_v56 = vrot.slane %v2742_v57, 5 }
 0x1ff   : > { %4315 = vst.msk [vmem:[#allocation3 + $0x4c] sm:$0xf] %vm4295_vm6, %v4238_v9  ;;  %5301 = vmatprep.mubr.msk.bf16.mxu1 %vm4470_vm8, %v5363_v30  ;;  %v4126_v9 = vrot.slane %v4124_v54, 4  ;;  %v4127_v30 = vrot.slane %v4008_v58, 5  ;;  %v5138_v18 = vrot.slane %v4006_v0, 9  ;;  %v4177_v12 = vsel %vm5910_vm14, %v4175_v60, %v4176_v62 }
 0x200   : > { %3880 = vrot.lane.b32.xlu0 %v3597_v44, %s5410_s30  ;;  %v2811_v14 = vpop.permute.xlu1 %2810  ;;  %v4030_v44 = vld [vmem:[#allocation2 + $0xb4] sm:$0xe] }
 0x201   : > { %2887 = vst.msk [vmem:[#allocation3 + $0x50] sm:$0xf] %vm2866_vm3, %v2811_v14  ;;  %v5146_v14 = vrot.slane %v4030_v44, 9  ;;  %v4128_v26 = vsel %vm5910_vm14, %v4126_v9, %v4127_v30  ;;  %v4125_v46 = vsel %vm5910_vm14, %v5138_v18, %v4124_v54 }
 0x202   : > { %v2813_v16 = vpop.permute.xlu0 %2812  ;;  %3910 = vrot.lane.b32.xlu1 %v3779_v11, %s5410_s30  ;;  %v5364_v17 = vld [vmem:[#allocation3 + $0x8] sm:$0xff]   ;;  %v2358_v11 = vld [vmem:[#allocation2 + $0x5c] sm:$0x1] }
 0x203   : > { %2888 = vst.msk [vmem:[#allocation3 + $0x54] sm:$0xf] %vm2866_vm3, %v2813_v16  ;;  %5286 = vmatmul.mubr.msk.bf16.vlgmr.msra.gmra.mxu0 %vm4470_vm8, %v5364_v17  ;;  %v2555_v16 = vshrl.u32 %v2359_v7, 16  ;;  %v2558_v17 = vshll.u32 %v2359_v7, 16  ;;  %v2550_v21 = vshll.u32 %v2358_v11, 16 }
 0x204   : > { %3912 = vrot.lane.b32.xlu0 %v3789_v1, %s5410_s30  ;;  %v2815_v23 = vpop.permute.xlu1 %2814  ;;  %v2725_v1 = vrot.slane %v2723_v36, 4  ;;  %v2385_v7 = vld [vmem:[#allocation2 + $0xc8] sm:$0x1] }
 0x205   : > { %2889 = vst.msk [vmem:[#allocation3 + $0x58] sm:$0xf] %vm2866_vm3, %v2815_v23  ;;  %v6605_v23 = vrot.slane %v2732_v5, 5  ;;  %v2557_v38 = vrot.slane %v2555_v16, 4  ;;  %v2560_v40 = vrot.slane %v2558_v17, 5  ;;  %v2552_v43 = vrot.slane %v2550_v21, 5 }
 0x206   : > { %v2817_v27 = vpop.permute.xlu0 %2816  ;;  %3882 = vrot.lane.b32.xlu1 %v3611_v20, %s5410_s30  ;;  %v5365_v29 = vld [vmem:[#allocation3 + $0x48] sm:$0xff]   ;;  %v2547_v20 = vor.u32 %v2546_v4, %v6174_v22  ;;  %v4182_v22 = vrot.slane %v4180_v13, 4  ;;  %v2729_v35 = vor.u32 %v2728_v10, %v2725_v1  ;;  %v2766_v1 = vshll.u32 %v2385_v7, 16  ;;  %v2917_v17 = vld [vmem:[#allocation2 + $0x54] sm:$0xe] }
 0x207   : > { %2890 = vst.msk [vmem:[#allocation3 + $0x5c] sm:$0xf] %vm2866_vm3, %v2817_v27  ;;  %5302 = vmatmul.mubr.msk.bf16.vlgmr.msra.gmra.mxu1 %vm4470_vm8, %v5365_v29  ;;  %v2568_v27 = vshrl.u32 %v2360_v15, 16  ;;  %v2739_v45 = vor.u32 %v2738_v24, %v6605_v23  ;;  %v2561_v0 = vor.u32 %v2560_v40, %v2557_v38  ;;  %v2918_v15 = vld [vmem:[#allocation2 + $0x58] sm:$0xf]  ;;  %v5123_v28 = vrot.slane %v2917_v17, 9 }
 0x208   : > { %3884 = vrot.lane.b32.xlu0 %v3621_v63, %s5410_s30  ;;  %v3116_v37 = vpop.permute.xlu1 %3115  ;;  %v2383_v63 = vld [vmem:[#allocation2 + $0xc0] sm:$0xf]  ;;  %v2548_v42 = vrot.slane %v2547_v20, 4  ;;  %v4184_v55 = vsel %vm5910_vm14, %v4182_v22, %v4183_v61  ;;  %v2730_v58 = vrot.slane %v2729_v35, 4  ;;  %v2768_v21 = vrot.slane %v2766_v1, 5 }
 0x209   : > { %3208 = vst.msk [vmem:[#allocation3 + $0x10] sm:$0xf] %vm3203_vm7, %v3116_v37  ;;  %v2384_v37 = vld [vmem:[#allocation2 + $0xc4] sm:$0xf]  ;;  %v2750_v41 = vshll.u32 %v2383_v63, 16  ;;  %v2570_v51 = vrot.slane %v2568_v27, 4 }
 0x20a   : > { %v3118_v47 = vpop.permute.xlu0 %3117  ;;  %3914 = vrot.lane.b32.xlu1 %v3803_v34, %s5410_s30  ;;  %v4181_v34 = vsel %vm5910_vm14, %v5146_v14, %v4180_v13  ;;  %v2760_v53 = vshrl.u32 %v2384_v37, 16  ;;  %v2553_v60 = vsel %vm5548_vm11, %v2548_v42, %v2552_v43  ;;  %v2740_v62 = vrot.slane %v2739_v45, 4  ;;  %v2941_v27 = vld [vmem:[#allocation2 + $0xb4] sm:$0xe]  ;;  %v2921_v38 = vld [vmem:[#allocation2 + $0x64] sm:$0xf] }
 0x20b   : > { %3209 = vst.msk [vmem:[#allocation3 + $0x14] sm:$0xf] %vm3203_vm7, %v3118_v47  ;;  %v2566_v47 = vrot.slane %v2564_v25, 5  ;;  %v2752_v48 = vrot.slane %v2750_v41, 5  ;;  %v2562_v9 = vrot.slane %v2561_v0, 4  ;;  %v3046_v57 = vrot.slane %v2921_v38, 5 }
 0x20c   : > { %3916 = vrot.lane.b32.xlu0 %v3813_v32, %s5410_s30  ;;  %v3148_v49 = vpop.permute.xlu1 %3147  ;;  %v2747_v32 = vshrl.u32 %v2383_v63, 16  ;;  %v2762_v5 = vrot.slane %v2760_v53, 4  ;;  %v2745_v11 = vsel %vm5548_vm11, %v2740_v62, %v2744_v56  ;;  %v2919_v63 = vld [vmem:[#allocation2 + $0x5c] sm:$0x1] }
 0x20d   : > { %3224 = vst.msk [vmem:[#allocation3 + $0x50] sm:$0xf] %vm3203_vm7, %v3148_v49  ;;  %v2361_v49 = vld [vmem:[#allocation2 + $0x68] sm:$0x1]  ;;  %v2571_v44 = vor.u32 %v2570_v51, %v2566_v47  ;;  %v3042_v61 = vrot.slane %v2919_v63, 5  ;;  %v3048_v0 = vrot.slane %v3046_v57, 4 }
 0x20e   : > { %v3150_v50 = vpop.permute.xlu0 %3149  ;;  %4215 = vrot.lane.b32.xlu1 %v4118_v52, %s5411_s10  ;;  %v2756_v52 = vshll.u32 %v2384_v37, 16  ;;  %v2749_v36 = vrot.slane %v2747_v32, 4  ;;  %v2943_v37 = vld [vmem:[#allocation2 + $0xbc] sm:$0x1]  ;;  %v5131_v32 = vrot.slane %v2941_v27, 9 }
 0x20f   : > { %3225 = vst.msk [vmem:[#allocation3 + $0x54] sm:$0xf] %vm3203_vm7, %v3150_v50  ;;  %v2574_v50 = vshll.u32 %v2361_v49, 16  ;;  %v3098_v45 = vrot.slane %v2943_v37, 5  ;;  %v2922_v51 = vld [vmem:[#allocation2 + $0x68] sm:$0x1] }
 0x210   : > { %4217 = vrot.lane.b32.xlu0 %v4121_v59, %s5411_s10  ;;  %v3120_v3 = vpop.permute.xlu1 %3119  ;;  %v2758_v4 = vrot.slane %v2756_v52, 5  ;;  %v2753_v30 = vor.u32 %v2752_v48, %v2749_v36  ;;  %v2945_v52 = vld [vmem:[#allocation2 + $0xc4] sm:$0xf]  ;;  %v2944_v49 = vld [vmem:[#allocation2 + $0xc0] sm:$0xe]  ;;  %v3049_v36 = vrot.slane %v2922_v51, 5 }
 0x211   : > { %3210 = vst.msk [vmem:[#allocation3 + $0x18] sm:$0xf] %vm3203_vm7, %v3120_v3  ;;  %v2572_v3 = vrot.slane %v2571_v44, 4  ;;  %v2576_v13 = vrot.slane %v2574_v50, 5  ;;  %v3102_v48 = vrot.slane %v2945_v52, 5  ;;  %v5132_v56 = vrot.slane %v2944_v49, 9 }
 0x212   : > { %v3122_v19 = vpop.permute.xlu0 %3121  ;;  %4247 = vrot.lane.b32.xlu1 %v4174_v8, %s5411_s10  ;;  %v2735_v8 = vsel %vm5548_vm11, %v2730_v58, %v6605_v23  ;;  %v2763_v14 = vor.u32 %v2762_v5, %v2758_v4  ;;  %v2754_v2 = vrot.slane %v2753_v30, 4  ;;  %v3039_v23 = vrot.slane %v2918_v15, 5  ;;  %v3449_v30 = vld [vmem:[#allocation2 + $0x64] sm:$0xf]  ;;  %v3475_v52 = vld [vmem:[#allocation2 + $0xcc] sm:$0xf] }
 0x213   : > { %3211 = vst.msk [vmem:[#allocation3 + $0x1c] sm:$0xf] %vm3203_vm7, %v3122_v19  ;;  %v2577_v19 = vsel %vm5548_vm11, %v2572_v3, %v2576_v13  ;;  %v3050_v50 = vsel %vm5910_vm14, %v3048_v0, %v3049_v36  ;;  %v3103_v7 = vsel %vm5910_vm14, %v5132_v56, %v3102_v48  ;;  %v3632_v1 = vshll.u32 %v3449_v30, 16 }
 0x214   : > { %4249 = vrot.lane.b32.xlu0 %v4177_v12, %s5411_s10  ;;  %v3152_v29 = vpop.permute.xlu1 %3151  ;;  %v2567_v12 = vsel %vm5548_vm11, %v2562_v9, %v2566_v47  ;;  %v2764_v20 = vrot.slane %v2763_v14, 4  ;;  %v3041_v22 = vrot.slane %v3039_v23, 4  ;;  %v3040_v40 = vsel %vm5910_vm14, %v5123_v28, %v3039_v23  ;;  %v3249_v14 = vld [vmem:[#allocation2 + $0x60] sm:$0xf]  ;;  %v3450_v28 = vld [vmem:[#allocation2 + $0x68] sm:$0x1] }
 0x215   : > { %3226 = vst.msk [vmem:[#allocation3 + $0x58] sm:$0xf] %vm3203_vm7, %v3152_v29  ;;  %v6690_v63 = vrot.slane %v3632_v1, 5  ;;  %v3839_v56 = vshrl.u32 %v3475_v52, 16 }
 0x216   : > { %v3154_v31 = vpop.permute.xlu0 %3153  ;;  %4219 = vrot.lane.b32.xlu1 %v4125_v46, %s5411_s10  ;;  %v2759_v46 = vsel %vm5548_vm11, %v2754_v2, %v2758_v4  ;;  %v2769_v29 = vsel %vm5548_vm11, %v2764_v20, %v2768_v21  ;;  %v3043_v42 = vsel %vm5910_vm14, %v3041_v22, %v3042_v61  ;;  %v3104_v4 = vrot.slane %v3102_v48, 4  ;;  %v3473_v2 = vld [vmem:[#allocation2 + $0xc4] sm:$0xf]  ;;  %v3251_v61 = vld [vmem:[#allocation2 + $0x6c] sm:$0xf] }
 0x217   : > { %3227 = vst.msk [vmem:[#allocation3 + $0x5c] sm:$0xf] %vm3203_vm7, %v3154_v31  ;;  %v2920_v31 = vld [vmem:[#allocation2 + $0x60] sm:$0xe]  ;;  %v3828_v27 = vshrl.u32 %v3473_v2, 16 }
 0x218   : > { %4221 = vrot.lane.b32.xlu0 %v4128_v26, %s5411_s10  ;;  %v3310_v54 = vpop.permute.xlu1 %3309  ;;  %v2942_v26 = vld [vmem:[#allocation2 + $0xb8] sm:$0xf]  ;;  %v3266_v22 = vld [vmem:[#allocation2 + $0xc4] sm:$0xf]  ;;  %v3476_v48 = vld [vmem:[#allocation2 + $0xd0] sm:$0xf] }
 0x219   : > { %3402 = vst.msk [vmem:[#allocation3 + $0x10] sm:$0xf] %vm3397_vm5, %v3310_v54  ;;  %v5124_v54 = vrot.slane %v2920_v31, 9  ;;  %v3830_v51 = vrot.slane %v3828_v27, 4 }
 0x21a   : > { %v3312_v59 = vpop.permute.xlu0 %3311  ;;  %4251 = vrot.lane.b32.xlu1 %v4181_v34, %s5411_s10  ;;  %v3095_v34 = vrot.slane %v2942_v26, 5  ;;  %v3824_v26 = vshll.u32 %v3473_v2, 16 }
 0x21b   : > { %3403 = vst.msk [vmem:[#allocation3 + $0x14] sm:$0xf] %vm3397_vm5, %v3312_v59  ;;  %v3047_v62 = vsel %vm5910_vm14, %v5124_v54, %v3046_v57  ;;  %v3474_v54 = vld [vmem:[#allocation2 + $0xc8] sm:$0x1] }
 0x21c   : > { %4253 = vrot.lane.b32.xlu0 %v4184_v55, %s5411_s10  ;;  %v3342_v6 = vpop.permute.xlu1 %3341  ;;  %v3097_v43 = vrot.slane %v3095_v34, 4  ;;  %v3096_v53 = vsel %vm5910_vm14, %v5131_v32, %v3095_v34  ;;  %v3252_v32 = vld [vmem:[#allocation2 + $0x70] sm:$0xf]  ;;  %v6696_v31 = vrot.slane %v3824_v26, 5 }
 0x21d   : > { %3418 = vst.msk [vmem:[#allocation3 + $0x50] sm:$0xf] %vm3397_vm5, %v3342_v6 }
 0x21e   : > { %v3344_v18 = vpop.permute.xlu0 %3343  ;;  %2796 = vrot.lane.b32.xlu1 %v2553_v60, %s5407_s27  ;;  %v3099_v58 = vsel %vm5910_vm14, %v3097_v43, %v3098_v45  ;;  %v2946_v60 = vld [vmem:[#allocation2 + $0xc8] sm:$0x1] }
 0x21f   : > { %3419 = vst.msk [vmem:[#allocation3 + $0x54] sm:$0xf] %vm3397_vm5, %v3344_v18  ;;  %v3105_v5 = vrot.slane %v2946_v60, 5 }
 0x220   : > { %v3314_v10 = vpop.permute.xlu1 %3313  ;;  %2826 = vrot.lane.b32.xlu0 %v2735_v8, %s5407_s27  ;;  %v3448_v8 = vld [vmem:[#allocation2 + $0x60] sm:$0xf] }
 0x221   : > { %3404 = vst.msk [vmem:[#allocation3 + $0x18] sm:$0xf] %vm3397_vm5, %v3314_v10  ;;  %v3106_v18 = vsel %vm5910_vm14, %v3104_v4, %v3105_v5  ;;  %v3623_v3 = vshrl.u32 %v3448_v8, 16  ;;  %v3626_v13 = vshll.u32 %v3448_v8, 16  ;;  %v3472_v10 = vld [vmem:[#allocation2 + $0xc0] sm:$0xf] }
 0x222   : > { %v3316_v16 = vpop.permute.xlu0 %3315  ;;  %2828 = vrot.lane.b32.xlu1 %v2745_v11, %s5407_s27  ;;  %v3815_v21 = vshrl.u32 %v3472_v10, 16  ;;  %v3818_v23 = vshll.u32 %v3472_v10, 16  ;;  %v3834_v8 = vshll.u32 %v3474_v54, 16  ;;  %v4034_v54 = vld [vmem:[#allocation2 + $0xc4] sm:$0xf] }
 0x223   : > { %3405 = vst.msk [vmem:[#allocation3 + $0x1c] sm:$0xf] %vm3397_vm5, %v3316_v16  ;;  %v3250_v16 = vld [vmem:[#allocation2 + $0x64] sm:$0xf]  ;;  %v3628_v20 = vrot.slane %v3626_v13, 5 }
 0x224   : > { %v3346_v24 = vpop.permute.xlu1 %3345  ;;  %2798 = vrot.lane.b32.xlu0 %v2567_v12, %s5407_s27  ;;  %v3636_v12 = vshrl.u32 %v3449_v30, 16  ;;  %v3817_v37 = vrot.slane %v3815_v21, 4  ;;  %v3820_v38 = vrot.slane %v3818_v23, 5  ;;  %v3453_v30 = vld [vmem:[#allocation2 + $0x74] sm:$0x1] }
 0x225   : > { %3420 = vst.msk [vmem:[#allocation3 + $0x58] sm:$0xf] %vm3397_vm5, %v3346_v24  ;;  %v3265_v24 = vld [vmem:[#allocation2 + $0xc0] sm:$0xf] }
 0x226   : > { %v3348_v25 = vpop.permute.xlu0 %3347  ;;  %2800 = vrot.lane.b32.xlu1 %v2577_v19, %s5407_s27  ;;  %v3625_v19 = vrot.slane %v3623_v3, 4  ;;  %v3821_v36 = vor.u32 %v3820_v38, %v3817_v37  ;;  %v3852_v3 = vshrl.u32 %v3476_v48, 16 }
 0x227   : > { %3421 = vst.msk [vmem:[#allocation3 + $0x5c] sm:$0xf] %vm3397_vm5, %v3348_v25  ;;  %v3638_v25 = vrot.slane %v3636_v12, 4 }
 0x228   : > { %v3871_v35 = vpop.permute.xlu1 %3870  ;;  %2830 = vrot.lane.b32.xlu0 %v2759_v46, %s5407_s27  ;;  %v3822_v1 = vrot.slane %v3821_v36, 4 }
 0x229   : > { %3963 = vst.msk [vmem:[#allocation3 + $0x10] sm:$0xf] %vm3958_vm4, %v3871_v35  ;;  %v3629_v35 = vor.u32 %v3628_v20, %v3625_v19  ;;  %v3836_v19 = vrot.slane %v3834_v8, 5  ;;  %v3666_v20 = vshll.u32 %v3453_v30, 16 }
 0x22a   : > { %v3873_v41 = vpop.permute.xlu0 %3872  ;;  %2832 = vrot.lane.b32.xlu1 %v2769_v29, %s5407_s27  ;;  %v3451_v29 = vld [vmem:[#allocation2 + $0x6c] sm:$0xf] }
 0x22b   : > { %3964 = vst.msk [vmem:[#allocation3 + $0x14] sm:$0xf] %vm3958_vm4, %v3873_v41  ;;  %v3642_v41 = vshll.u32 %v3450_v28, 16  ;;  %v3650_v43 = vshll.u32 %v3451_v29, 16  ;;  %v3630_v0 = vrot.slane %v3629_v35, 4  ;;  %v3827_v28 = vsel %vm5548_vm11, %v3822_v1, %v6696_v31 }
 0x22c   : > { %v3903_v47 = vpop.permute.xlu1 %3902  ;;  %3131 = vrot.lane.b32.xlu0 %v3040_v40, %s5408_s28  ;;  %v3452_v40 = vld [vmem:[#allocation2 + $0x70] sm:$0xf]  ;;  %v4036_v1 = vld [vmem:[#allocation2 + $0xcc] sm:$0xe] }
 0x22d   : > { %3979 = vst.msk [vmem:[#allocation3 + $0x50] sm:$0xf] %vm3958_vm4, %v3903_v47  ;;  %v3639_v47 = vor.u32 %v3638_v25, %v6690_v63  ;;  %v3660_v49 = vshrl.u32 %v3452_v40, 16 }
 0x22e   : > { %v3905_v55 = vpop.permute.xlu0 %3904  ;;  %3133 = vrot.lane.b32.xlu1 %v3043_v42, %s5408_s28  ;;  %v3647_v42 = vshrl.u32 %v3451_v29, 16 }
 0x22f   : > { %3980 = vst.msk [vmem:[#allocation3 + $0x54] sm:$0xf] %vm3958_vm4, %v3905_v55  ;;  %v3656_v55 = vshll.u32 %v3452_v40, 16  ;;  %v3640_v5 = vrot.slane %v3639_v47, 4 }
 0x230   : > { %v3875_v59 = vpop.permute.xlu1 %3874  ;;  %3163 = vrot.lane.b32.xlu0 %v3096_v53, %s5408_s28  ;;  %v3267_v53 = vld [vmem:[#allocation2 + $0xcc] sm:$0xf]  ;;  %v3649_v60 = vrot.slane %v3647_v42, 4 }
 0x231   : > { %3965 = vst.msk [vmem:[#allocation3 + $0x18] sm:$0xf] %vm3958_vm4, %v3875_v59  ;;  %v3268_v59 = vld [vmem:[#allocation2 + $0xd0] sm:$0xf] }
 0x232   : > { %v3877_v44 = vpop.permute.xlu0 %3876  ;;  %3165 = vrot.lane.b32.xlu1 %v3099_v58, %s5408_s28 }
 0x233   : > { %3966 = vst.msk [vmem:[#allocation3 + $0x1c] sm:$0xf] %vm3958_vm4, %v3877_v44  ;;  %v3842_v44 = vshll.u32 %v3475_v52, 16 }
 0x234   : > { %v3907_v6 = vpop.permute.xlu1 %3906  ;;  %3135 = vrot.lane.b32.xlu0 %v3047_v62, %s5408_s28  ;;  %v3652_v62 = vrot.slane %v3650_v43, 5  ;;  %v4009_v43 = vld [vmem:[#allocation2 + $0x60] sm:$0xe] }
 0x235   : > { %3981 = vst.msk [vmem:[#allocation3 + $0x58] sm:$0xf] %vm3958_vm4, %v3907_v6  ;;  %v3644_v6 = vrot.slane %v3642_v41, 5  ;;  %v3844_v12 = vrot.slane %v3842_v44, 5  ;;  %v4013_v44 = vld [vmem:[#allocation2 + $0x70] sm:$0xf] }
 0x236   : > { %v3909_v9 = vpop.permute.xlu0 %3908  ;;  %3137 = vrot.lane.b32.xlu1 %v3050_v50, %s5408_s28  ;;  %v3653_v10 = vor.u32 %v3652_v62, %v3649_v60  ;;  %v4187_v60 = vrot.slane %v4034_v54, 5 }
 0x237   : > { %3982 = vst.msk [vmem:[#allocation3 + $0x5c] sm:$0xf] %vm3958_vm4, %v3909_v9  ;;  %v3658_v9 = vrot.slane %v3656_v55, 5 }
 0x238   : > { %v4208_v11 = vpop.permute.xlu1 %4207  ;;  %3167 = vrot.lane.b32.xlu0 %v3103_v7, %s5408_s28  ;;  %v3831_v7 = vor.u32 %v3830_v51, %v6696_v31  ;;  %v3654_v25 = vrot.slane %v3653_v10, 4 }
 0x239   : > { %4300 = vst.msk [vmem:[#allocation3 + $0x10] sm:$0xf] %vm4295_vm6, %v4208_v11  ;;  %v3848_v11 = vshll.u32 %v3476_v48, 16 }
 0x23a   : > { %v4210_v15 = vpop.permute.xlu0 %4209  ;;  %3169 = vrot.lane.b32.xlu1 %v3106_v18, %s5408_s28  ;;  %v3662_v18 = vrot.slane %v3660_v49, 4  ;;  %v3832_v21 = vrot.slane %v3831_v7, 4  ;;  %v3659_v41 = vsel %vm5548_vm11, %v3654_v25, %v3658_v9  ;;  %v5139_v49 = vrot.slane %v4009_v43, 9 }
 0x23b   : > { %4301 = vst.msk [vmem:[#allocation3 + $0x14] sm:$0xf] %vm4295_vm6, %v4210_v15  ;;  %v3841_v15 = vrot.slane %v3839_v56, 4  ;;  %v4035_v56 = vld [vmem:[#allocation2 + $0xc8] sm:$0x1]  ;;  %v4189_v7 = vrot.slane %v4187_v60, 4 }
 0x23c   : > { %v4240_v17 = vpop.permute.xlu1 %4239  ;;  %3325 = vrot.lane.b32.xlu0 %v3249_v14, %s5409_s29  ;;  %v3635_v14 = vsel %vm5548_vm11, %v3630_v0, %v6690_v63  ;;  %v3663_v23 = vor.u32 %v3662_v18, %v3658_v9  ;;  %v3854_v63 = vrot.slane %v3852_v3, 4  ;;  %v4033_v0 = vld [vmem:[#allocation2 + $0xc0] sm:$0xe]  ;;  %v4190_v8 = vrot.slane %v4035_v56, 5  ;;  %v4014_v18 = vld [vmem:[#allocation2 + $0x74] sm:$0x1] }
 0x23d   : > { %4316 = vst.msk [vmem:[#allocation3 + $0x50] sm:$0xf] %vm4295_vm6, %v4240_v17  ;;  %v3645_v17 = vsel %vm5548_vm11, %v3640_v5, %v3644_v6  ;;  %v3845_v27 = vor.u32 %v3844_v12, %v3841_v15  ;;  %v4012_v6 = vld [vmem:[#allocation2 + $0x6c] sm:$0xe]  ;;  %v4138_v9 = vrot.slane %v4013_v44, 5  ;;  %v4141_v12 = vrot.slane %v4014_v18, 5 }
 0x23e   : > { %v4242_v46 = vpop.permute.xlu0 %4241  ;;  %3327 = vrot.lane.b32.xlu1 %v3250_v16, %s5409_s29  ;;  %v3664_v35 = vrot.slane %v3663_v23, 4  ;;  %v4191_v10 = vsel %vm5910_vm14, %v4189_v7, %v4190_v8 }
 0x23f   : > { %4317 = vst.msk [vmem:[#allocation3 + $0x54] sm:$0xf] %vm4295_vm6, %v4242_v46  ;;  %v3477_v46 = vld [vmem:[#allocation2 + $0xd4] sm:$0x1]  ;;  %v3846_v31 = vrot.slane %v3845_v27, 4  ;;  %v4140_v15 = vrot.slane %v4138_v9, 4 }
 0x240   : > { %v4212_v34 = vpop.permute.xlu1 %4211  ;;  %3357 = vrot.lane.b32.xlu0 %v3265_v24, %s5409_s29  ;;  %v3850_v24 = vrot.slane %v3848_v11, 5  ;;  %v3858_v38 = vshll.u32 %v3477_v46, 16  ;;  %v4037_v11 = vld [vmem:[#allocation2 + $0xd0] sm:$0xf] }
 0x241   : > { %4302 = vst.msk [vmem:[#allocation3 + $0x18] sm:$0xf] %vm4295_vm6, %v4212_v34  ;;  %v3837_v34 = vsel %vm5548_vm11, %v3832_v21, %v3836_v19  ;;  %v4142_v23 = vsel %vm5910_vm14, %v4140_v15, %v4141_v12  ;;  %v6830_v15 = vld [vmem:[%s7134_s4] ss:$0 sm:$0xff] }
 0x242   : > { %v4214_v45 = vpop.permute.xlu0 %4213  ;;  %3359 = vrot.lane.b32.xlu1 %v3266_v22, %s5409_s29  ;;  %v5366_v57 = vld [vmem:[#allocation3 + $0x10] sm:$0xff]   ;;  %v3855_v37 = vor.u32 %v3854_v63, %v3850_v24  ;;  %v3860_v47 = vrot.slane %v3858_v38, 5  ;;  %v3851_v55 = vsel %vm5548_vm11, %v3846_v31, %v3850_v24 }
 0x243   : > { %4303 = vst.msk [vmem:[#allocation3 + $0x1c] sm:$0xf] %vm4295_vm6, %v4214_v45  ;;  %5289 = vmatprep.mubr.msk.bf16.mxu0 %vm4470_vm8, %v5366_v57 }
 0x244   : > { %v4244_v58 = vpop.permute.xlu1 %4243  ;;  %3329 = vrot.lane.b32.xlu0 %v3251_v61, %s5409_s29  ;;  %v3668_v61 = vrot.slane %v3666_v20, 5  ;;  %v3856_v57 = vrot.slane %v3855_v37, 4  ;;  %v5148_v20 = vrot.slane %v4036_v1, 9 }
 0x245   : > { %4318 = vst.msk [vmem:[#allocation3 + $0x58] sm:$0xf] %vm4295_vm6, %v4244_v58 }
 0x246   : > { %v4246_v50 = vpop.permute.xlu0 %4245  ;;  %3331 = vrot.lane.b32.xlu1 %v3252_v32, %s5409_s29  ;;  %v5367_v4 = vld [vmem:[#allocation3 + $0x50] sm:$0xff]   ;;  %v4010_v32 = vld [vmem:[#allocation2 + $0x64] sm:$0xf]  ;;  %v3669_v45 = vsel %vm5548_vm11, %v3664_v35, %v3668_v61  ;;  %v3861_v36 = vsel %vm5548_vm11, %v3856_v57, %v3860_v47 }
 0x247   : > { %4319 = vst.msk [vmem:[#allocation3 + $0x5c] sm:$0xf] %vm4295_vm6, %v4246_v50  ;;  %5305 = vmatprep.mubr.msk.bf16.mxu1 %vm4470_vm8, %v5367_v4  ;;  %v4131_v51 = vrot.slane %v4010_v32, 5  ;;  %v5147_v4 = vrot.slane %v4033_v0, 9 }
 0x248   : > { %v2819_v13 = vpop.permute.xlu1 %2818  ;;  %3361 = vrot.lane.b32.xlu0 %v3267_v53, %s5409_s29  ;;  %v4011_v53 = vld [vmem:[#allocation2 + $0x68] sm:$0x1] }
 0x249   : > { %2891 = vst.msk [vmem:[#allocation3 + $0x60] sm:$0xf] %vm2866_vm3, %v2819_v13  ;;  %v4133_v48 = vrot.slane %v4131_v51, 4  ;;  %v4132_v50 = vsel %vm5910_vm14, %v5139_v49, %v4131_v51  ;;  %v4188_v3 = vsel %vm5910_vm14, %v5147_v4, %v4187_v60  ;;  %v5140_v13 = vrot.slane %v4012_v6, 9 }
 0x24a   : > { %v2821_v2 = vpop.permute.xlu0 %2820  ;;  %3363 = vrot.lane.b32.xlu1 %v3268_v59, %s5409_s29  ;;  %v5368_v16 = vld [vmem:[#allocation3 + $0x18] sm:$0xff]   ;;  %v4134_v59 = vrot.slane %v4011_v53, 5 }
 0x24b   : > { %2892 = vst.msk [vmem:[#allocation3 + $0x64] sm:$0xf] %vm2866_vm3, %v2821_v2  ;;  %5290 = vmatmul.mubr.msk.bf16.gmra.mxu0 %vm4470_vm8, %v5368_v16  ;;  %v4194_v2 = vrot.slane %v4037_v11, 5  ;;  %v4139_v19 = vsel %vm5910_vm14, %v5140_v13, %v4138_v9 }
 0x24c   : > { %v2823_v26 = vpop.permute.xlu1 %2822  ;;  %3886 = vrot.lane.b32.xlu0 %v3635_v14, %s5410_s30  ;;  %v4135_v33 = vsel %vm5910_vm14, %v4133_v48, %v4134_v59 }
 0x24d   : > { %2893 = vst.msk [vmem:[#allocation3 + $0x68] sm:$0xf] %vm2866_vm3, %v2823_v26  ;;  %v4196_v24 = vrot.slane %v4194_v2, 4  ;;  %v4195_v46 = vsel %vm5910_vm14, %v5148_v20, %v4194_v2 }
 0x24e   : > { %v2825_v29 = vpop.permute.xlu0 %2824  ;;  %3888 = vrot.lane.b32.xlu1 %v3645_v17, %s5410_s30  ;;  %v5369_v22 = vld [vmem:[#allocation3 + $0x58] sm:$0xff]  }
 0x24f   : > { %2894 = vst.msk [vmem:[#allocation3 + $0x6c] sm:$0xf] %vm2866_vm3, %v2825_v29  ;;  %5306 = vmatmul.mubr.msk.bf16.gmra.mxu1 %vm4470_vm8, %v5369_v22  ;;  %v4038_v17 = vld [vmem:[#allocation2 + $0xd4] sm:$0x1] }
 0x250   : > { %v3124_v40 = vpop.permute.xlu1 %3123  ;;  %3918 = vrot.lane.b32.xlu0 %v3827_v28, %s5410_s30  ;;  %v4197_v63 = vrot.slane %v4038_v17, 5 }
 0x251   : > { %3212 = vst.msk [vmem:[#allocation3 + $0x20] sm:$0xf] %vm3203_vm7, %v3124_v40 }
 0x252   : > { %v3126_v42 = vpop.permute.xlu0 %3125  ;;  %3920 = vrot.lane.b32.xlu1 %v3837_v34, %s5410_s30  ;;  %v4198_v25 = vsel %vm5910_vm14, %v4196_v24, %v4197_v63 }
 0x253   : > { %3213 = vst.msk [vmem:[#allocation3 + $0x24] sm:$0xf] %vm3203_vm7, %v3126_v42 }
 0x254   : > { %v3156_v52 = vpop.permute.xlu1 %3155  ;;  %3890 = vrot.lane.b32.xlu0 %v3659_v41, %s5410_s30 }
 0x255   : > { %3228 = vst.msk [vmem:[#allocation3 + $0x60] sm:$0xf] %vm3203_vm7, %v3156_v52 }
 0x256   : > { %v3158_v58 = vpop.permute.xlu0 %3157  ;;  %3892 = vrot.lane.b32.xlu1 %v3669_v45, %s5410_s30 }
 0x257   : > { %3229 = vst.msk [vmem:[#allocation3 + $0x64] sm:$0xf] %vm3203_vm7, %v3158_v58 }
 0x258   : > { %v3128_v62 = vpop.permute.xlu1 %3127  ;;  %3922 = vrot.lane.b32.xlu0 %v3851_v55, %s5410_s30 }
 0x259   : > { %3214 = vst.msk [vmem:[#allocation3 + $0x28] sm:$0xf] %vm3203_vm7, %v3128_v62 }
 0x25a   : > { %v3130_v5 = vpop.permute.xlu0 %3129  ;;  %3924 = vrot.lane.b32.xlu1 %v3861_v36, %s5410_s30 }
 0x25b   : > { %3215 = vst.msk [vmem:[#allocation3 + $0x2c] sm:$0xf] %vm3203_vm7, %v3130_v5 }
 0x25c   : > { %v3160_v30 = vpop.permute.xlu1 %3159  ;;  %4223 = vrot.lane.b32.xlu0 %v4132_v50, %s5411_s10 }
 0x25d   : > { %3230 = vst.msk [vmem:[#allocation3 + $0x68] sm:$0xf] %vm3203_vm7, %v3160_v30 }
 0x25e   : > { %v3162_v14 = vpop.permute.xlu0 %3161  ;;  %4225 = vrot.lane.b32.xlu1 %v4135_v33, %s5411_s10 }
 0x25f   : > { %3231 = vst.msk [vmem:[#allocation3 + $0x6c] sm:$0xf] %vm3203_vm7, %v3162_v14 }
 0x260   : > { %v3318_v16 = vpop.permute.xlu1 %3317  ;;  %4255 = vrot.lane.b32.xlu0 %v4188_v3, %s5411_s10 }
 0x261   : > { %3406 = vst.msk [vmem:[#allocation3 + $0x20] sm:$0xf] %vm3397_vm5, %v3318_v16 }
 0x262   : > { %v3320_v21 = vpop.permute.xlu0 %3319  ;;  %4257 = vrot.lane.b32.xlu1 %v4191_v10, %s5411_s10 }
 0x263   : > { %3407 = vst.msk [vmem:[#allocation3 + $0x24] sm:$0xf] %vm3397_vm5, %v3320_v21 }
 0x264   : > { %v3350_v26 = vpop.permute.xlu1 %3349  ;;  %4227 = vrot.lane.b32.xlu0 %v4139_v19, %s5411_s10 }
 0x265   : > { %3422 = vst.msk [vmem:[#allocation3 + $0x60] sm:$0xf] %vm3397_vm5, %v3350_v26 }
 0x266   : > { %v3352_v28 = vpop.permute.xlu0 %3351  ;;  %4229 = vrot.lane.b32.xlu1 %v4142_v23, %s5411_s10 }
 0x267   : > { %3423 = vst.msk [vmem:[#allocation3 + $0x64] sm:$0xf] %vm3397_vm5, %v3352_v28 }
 0x268   : > { %v3322_v27 = vpop.permute.xlu1 %3321  ;;  %4259 = vrot.lane.b32.xlu0 %v4195_v46, %s5411_s10 }
 0x269   : > { %3408 = vst.msk [vmem:[#allocation3 + $0x28] sm:$0xf] %vm3397_vm5, %v3322_v27 }
 0x26a   : > { %v3324_v29 = vpop.permute.xlu0 %3323  ;;  %4261 = vrot.lane.b32.xlu1 %v4198_v25, %s5411_s10 }
 0x26b   : > { %3409 = vst.msk [vmem:[#allocation3 + $0x2c] sm:$0xf] %vm3397_vm5, %v3324_v29 }
 0x26c   : > { %v3354_v22 = vpop.permute.xlu1 %3353 }
 0x26d   : > { %3424 = vst.msk [vmem:[#allocation3 + $0x68] sm:$0xf] %vm3397_vm5, %v3354_v22 }
 0x26e   : > { %v3356_v61 = vpop.permute.xlu0 %3355 }
 0x26f   : > { %3425 = vst.msk [vmem:[#allocation3 + $0x6c] sm:$0xf] %vm3397_vm5, %v3356_v61 }
 0x270   : > { %v3879_v34 = vpop.permute.xlu1 %3878 }
 0x271   : > { %3967 = vst.msk [vmem:[#allocation3 + $0x20] sm:$0xf] %vm3958_vm4, %v3879_v34 }
 0x272   : > { %v3881_v39 = vpop.permute.xlu0 %3880 }
 0x273   : > { %3968 = vst.msk [vmem:[#allocation3 + $0x24] sm:$0xf] %vm3958_vm4, %v3881_v39 }
 0x274   : > { %v3911_v35 = vpop.permute.xlu1 %3910 }
 0x275   : > { %3983 = vst.msk [vmem:[#allocation3 + $0x60] sm:$0xf] %vm3958_vm4, %v3911_v35 }
 0x276   : > { %v3913_v37 = vpop.permute.xlu0 %3912 }
 0x277   : > { %3984 = vst.msk [vmem:[#allocation3 + $0x64] sm:$0xf] %vm3958_vm4, %v3913_v37 }
 0x278   : > { %v3883_v38 = vpop.permute.xlu1 %3882 }
 0x279   : > { %3969 = vst.msk [vmem:[#allocation3 + $0x28] sm:$0xf] %vm3958_vm4, %v3883_v38 }
 0x27a   : > { %v3885_v40 = vpop.permute.xlu0 %3884 }
 0x27b   : > { %3970 = vst.msk [vmem:[#allocation3 + $0x2c] sm:$0xf] %vm3958_vm4, %v3885_v40 }
 0x27c   : > { %v3915_v32 = vpop.permute.xlu1 %3914 }
 0x27d   : > { %3985 = vst.msk [vmem:[#allocation3 + $0x68] sm:$0xf] %vm3958_vm4, %v3915_v32 }
 0x27e   : > { %v3917_v41 = vpop.permute.xlu0 %3916 }
 0x27f   : > { %3986 = vst.msk [vmem:[#allocation3 + $0x6c] sm:$0xf] %vm3958_vm4, %v3917_v41 }
 0x280   : > { %v4216_v31 = vpop.permute.xlu1 %4215 }
 0x281   : > { %4304 = vst.msk [vmem:[#allocation3 + $0x20] sm:$0xf] %vm4295_vm6, %v4216_v31 }
 0x282   : > { %v4218_v42 = vpop.permute.xlu0 %4217 }
 0x283   : > { %4305 = vst.msk [vmem:[#allocation3 + $0x24] sm:$0xf] %vm4295_vm6, %v4218_v42 }
 0x284   : > { %v4248_v43 = vpop.permute.xlu1 %4247 }
 0x285   : > { %4320 = vst.msk [vmem:[#allocation3 + $0x60] sm:$0xf] %vm4295_vm6, %v4248_v43 }
 0x286   : > { %v4250_v45 = vpop.permute.xlu0 %4249 }
 0x287   : > { %4321 = vst.msk [vmem:[#allocation3 + $0x64] sm:$0xf] %vm4295_vm6, %v4250_v45 }
 0x288   : > { %v4220_v57 = vpop.permute.xlu1 %4219 }
 0x289   : > { %4306 = vst.msk [vmem:[#allocation3 + $0x28] sm:$0xf] %vm4295_vm6, %v4220_v57 }
 0x28a   : > { %v4222_v47 = vpop.permute.xlu0 %4221  ;;  %v5370_v51 = vld [vmem:[#allocation3 + $0x20] sm:$0xff]  }
 0x28b   : > { %4307 = vst.msk [vmem:[#allocation3 + $0x2c] sm:$0xf] %vm4295_vm6, %v4222_v47  ;;  %5293 = vmatprep.mubr.msk.bf16.mxu0 %vm4470_vm8, %v5370_v51 }
 0x28c   : > { %v4252_v52 = vpop.permute.xlu1 %4251 }
 0x28d   : > { %4322 = vst.msk [vmem:[#allocation3 + $0x68] sm:$0xf] %vm4295_vm6, %v4252_v52 }
 0x28e   : > { %v4254_v53 = vpop.permute.xlu0 %4253  ;;  %v5371_v54 = vld [vmem:[#allocation3 + $0x60] sm:$0xff]  }
 0x28f   : > { %4323 = vst.msk [vmem:[#allocation3 + $0x6c] sm:$0xf] %vm4295_vm6, %v4254_v53  ;;  %5309 = vmatprep.mubr.msk.bf16.mxu1 %vm4470_vm8, %v5371_v54 }
 0x290   : > { %v2797_v55 = vpop.permute.xlu1 %2796 }
 0x291   : > { %2880 = vst.msk [vmem:[#allocation3 + $0x34] sm:$0xf] %vm2866_vm3, %v2797_v55 }
 0x292   : > { %v5372_v49 = vld [vmem:[#allocation3 + $0x28] sm:$0xff]   ;;  %v2827_v58 = vpop.permute.xlu0 %2826 }
 0x293   : > { %2895 = vst.msk [vmem:[#allocation3 + $0x70] sm:$0xf] %vm2866_vm3, %v2827_v58  ;;  %5294 = vmatmul.mubr.msk.bf16.gmra.mxu0 %vm4470_vm8, %v5372_v49 }
 0x294   : > { %v2829_v0 = vpop.permute.xlu1 %2828 }
 0x295   : > { %2896 = vst.msk [vmem:[#allocation3 + $0x74] sm:$0xf] %vm2866_vm3, %v2829_v0 }
 0x296   : > { %v5373_v36 = vld [vmem:[#allocation3 + $0x68] sm:$0xff]   ;;  %v2799_v48 = vpop.permute.xlu0 %2798 }
 0x297   : > { %2881 = vst.msk [vmem:[#allocation3 + $0x38] sm:$0xf] %vm2866_vm3, %v2799_v48  ;;  %5310 = vmatmul.mubr.msk.bf16.gmra.mxu1 %vm4470_vm8, %v5373_v36 }
 0x298   : > { %v2801_v59 = vpop.permute.xlu1 %2800 }
 0x299   : > { %2882 = vst.msk [vmem:[#allocation3 + $0x3c] sm:$0xf] %vm2866_vm3, %v2801_v59 }
 0x29a   : > { %v2831_v60 = vpop.permute.xlu0 %2830 }
 0x29b   : > { %2897 = vst.msk [vmem:[#allocation3 + $0x78] sm:$0xf] %vm2866_vm3, %v2831_v60 }
 0x29c   : > { %v2833_v62 = vpop.permute.xlu1 %2832 }
 0x29d   : > { %2898 = vst.msk [vmem:[#allocation3 + $0x7c] sm:$0xf] %vm2866_vm3, %v2833_v62 }
 0x29e   : > { %v3132_v56 = vpop.permute.xlu0 %3131 }
 0x29f   : > { %3216 = vst.msk [vmem:[#allocation3 + $0x30] sm:$0xf] %vm3203_vm7, %v3132_v56 }
 0x2a0   : > { %v3134_v44 = vpop.permute.xlu1 %3133 }
 0x2a1   : > { %3217 = vst.msk [vmem:[#allocation3 + $0x34] sm:$0xf] %vm3203_vm7, %v3134_v44 }
 0x2a2   : > { %v3164_v50 = vpop.permute.xlu0 %3163 }
 0x2a3   : > { %3232 = vst.msk [vmem:[#allocation3 + $0x70] sm:$0xf] %vm3203_vm7, %v3164_v50 }
 0x2a4   : > { %v3166_v4 = vpop.permute.xlu1 %3165 }
 0x2a5   : > { %3233 = vst.msk [vmem:[#allocation3 + $0x74] sm:$0xf] %vm3203_vm7, %v3166_v4 }
 0x2a6   : > { %v3136_v5 = vpop.permute.xlu0 %3135 }
 0x2a7   : > { %3218 = vst.msk [vmem:[#allocation3 + $0x38] sm:$0xf] %vm3203_vm7, %v3136_v5 }
 0x2a8   : > { %v3138_v6 = vpop.permute.xlu1 %3137 }
 0x2a9   : > { %3219 = vst.msk [vmem:[#allocation3 + $0x3c] sm:$0xf] %vm3203_vm7, %v3138_v6 }
 0x2aa   : > { %v3168_v33 = vpop.permute.xlu0 %3167 }
 0x2ab   : > { %3234 = vst.msk [vmem:[#allocation3 + $0x78] sm:$0xf] %vm3203_vm7, %v3168_v33 }
 0x2ac   : > { %v3170_v7 = vpop.permute.xlu1 %3169 }
 0x2ad   : > { %3235 = vst.msk [vmem:[#allocation3 + $0x7c] sm:$0xf] %vm3203_vm7, %v3170_v7 }
 0x2ae   : > { %v3326_v8 = vpop.permute.xlu0 %3325 }
 0x2af   : > { %3410 = vst.msk [vmem:[#allocation3 + $0x30] sm:$0xf] %vm3397_vm5, %v3326_v8 }
 0x2b0   : > { %v3328_v9 = vpop.permute.xlu1 %3327 }
 0x2b1   : > { %3411 = vst.msk [vmem:[#allocation3 + $0x34] sm:$0xf] %vm3397_vm5, %v3328_v9 }
 0x2b2   : > { %v3358_v30 = vpop.permute.xlu0 %3357 }
 0x2b3   : > { %3426 = vst.msk [vmem:[#allocation3 + $0x70] sm:$0xf] %vm3397_vm5, %v3358_v30 }
 0x2b4   : > { %v3360_v18 = vpop.permute.xlu1 %3359 }
 0x2b5   : > { %3427 = vst.msk [vmem:[#allocation3 + $0x74] sm:$0xf] %vm3397_vm5, %v3360_v18 }
 0x2b6   : > { %v3330_v11 = vpop.permute.xlu0 %3329 }
 0x2b7   : > { %3412 = vst.msk [vmem:[#allocation3 + $0x38] sm:$0xf] %vm3397_vm5, %v3330_v11 }
 0x2b8   : > { %v3332_v3 = vpop.permute.xlu1 %3331 }
 0x2b9   : > { %3413 = vst.msk [vmem:[#allocation3 + $0x3c] sm:$0xf] %vm3397_vm5, %v3332_v3 }
 0x2ba   : > { %v3362_v13 = vpop.permute.xlu0 %3361 }
 0x2bb   : > { %3428 = vst.msk [vmem:[#allocation3 + $0x78] sm:$0xf] %vm3397_vm5, %v3362_v13 }
 0x2bc   : > { %v3364_v14 = vpop.permute.xlu1 %3363 }
 0x2bd   : > { %3429 = vst.msk [vmem:[#allocation3 + $0x7c] sm:$0xf] %vm3397_vm5, %v3364_v14 }
 0x2be   : > { %v3887_v1 = vpop.permute.xlu0 %3886 }
 0x2bf   : > { %3971 = vst.msk [vmem:[#allocation3 + $0x30] sm:$0xf] %vm3958_vm4, %v3887_v1 }
 0x2c0   : > { %v3889_v10 = vpop.permute.xlu1 %3888 }
 0x2c1   : > { %3972 = vst.msk [vmem:[#allocation3 + $0x34] sm:$0xf] %vm3958_vm4, %v3889_v10 }
 0x2c2   : > { %v3919_v12 = vpop.permute.xlu0 %3918 }
 0x2c3   : > { %3987 = vst.msk [vmem:[#allocation3 + $0x70] sm:$0xf] %vm3958_vm4, %v3919_v12  ;;  %v5287_v2 = vpop.f32.mrf.mxu0 }
 0x2c4   : > { %v3921_v16 = vpop.permute.xlu1 %3920  ;;  %v4566_v17 = vadd.f32 %v5287_v2, %v6830_v15 }
 0x2c5   : > { %3988 = vst.msk [vmem:[#allocation3 + $0x74] sm:$0xf] %vm3958_vm4, %v3921_v16  ;;  %v4557_v19 = vpop.f32.mrf.mxu0 }
 0x2c6   : > { %v3891_v20 = vpop.permute.xlu0 %3890  ;;  %v4686_v21 = vmax.f32 %v4566_v17, 0.0  ;;  %v4558_v23 = vadd.f32 %v6830_v15, %v4557_v19 }
 0x2c7   : > { %3973 = vst.msk [vmem:[#allocation3 + $0x38] sm:$0xf] %vm3958_vm4, %v3891_v20  ;;  %v5288_v24 = vpop.f32.mrf.mxu0  ;;  %v5303_v63 = vpop.f32.mrf.mxu1 }
 0x2c8   : > { %4721 = vst.msk [vmem:[%s6839_s2 + $0x20] sm:$0xff] %vm4718_vm9, %v4686_v21  ;;  %v4684_v26 = vmax.f32 %v4558_v23, 0.0  ;;  %v4569_v46 = vadd.f32 %v5288_v24, %v6830_v15  ;;  %v6847_v28 = vadd.f32 %v5303_v63, %v6830_v15  ;;  %v3893_v25 = vpop.permute.xlu1 %3892 }
 0x2c9   : > { %3974 = vst.msk [vmem:[#allocation3 + $0x3c] sm:$0xf] %vm3958_vm4, %v3893_v25  ;;  %v4560_v27 = vpop.f32.mrf.mxu0  ;;  %v4621_v29 = vpop.f32.mrf.mxu1 }
 0x2ca   : > { %4719 = vst.msk [vmem:[%s6839_s2] sm:$0xff] %vm4718_vm9, %v4684_v26  ;;  %v4687_v22 = vmax.f32 %v4569_v46, 0.0  ;;  %v4702_v61 = vmax.f32 %v6847_v28, 0.0  ;;  %v4561_v34 = vadd.f32 %v6830_v15, %v4560_v27  ;;  %v6855_v39 = vadd.f32 %v6830_v15, %v4621_v29  ;;  %4783 = vrot.lane.b32.xlu0 %v4684_v26, %s5412_s18  ;;  %v3923_v35 = vpop.permute.xlu0 %3922 }
 0x2cb   : > { %v5304_v37 = vpop.f32.mrf.mxu1  ;;  %3989 = vst.msk [vmem:[#allocation3 + $0x78] sm:$0xf] %vm3958_vm4, %v3923_v35 }
 0x2cc   : > { %4722 = vst.msk [vmem:[%s6839_s2 + $0x28] sm:$0xff] %vm4718_vm9, %v4687_v22  ;;  %4737 = vst.msk [vmem:[%s6839_s2 + $0x120] sm:$0xff] %vm4718_vm9, %v4702_v61  ;;  %v4685_v38 = vmax.f32 %v4561_v34, 0.0  ;;  %v4700_v40 = vmax.f32 %v6855_v39, 0.0  ;;  %v6867_v32 = vadd.f32 %v5304_v37, %v6830_v15  ;;  %v3925_v41 = vpop.permute.xlu1 %3924 }
 0x2cd   : > { %3990 = vst.msk [vmem:[#allocation3 + $0x7c] sm:$0xf] %vm3958_vm4, %v3925_v41  ;;  %v4624_v31 = vpop.f32.mrf.mxu1 }
 0x2ce   : > { %4720 = vst.msk [vmem:[%s6839_s2 + $0x8] sm:$0xff] %vm4718_vm9, %v4685_v38  ;;  %4735 = vst.msk [vmem:[%s6839_s2 + $0x100] sm:$0xff] %vm4718_vm9, %v4700_v40  ;;  %v4703_v42 = vmax.f32 %v6867_v32, 0.0  ;;  %v6878_v43 = vadd.f32 %v6830_v15, %v4624_v31  ;;  %4785 = vrot.lane.b32.xlu1 %v4685_v38, %s5412_s18  ;;  %4787 = vrot.lane.b32.xlu0 %v4686_v21, %s5412_s18  ;;  %v4224_v45 = vpop.permute.xlu0 %4223 }
 0x2cf   : > { %4308 = vst.msk [vmem:[#allocation3 + $0x30] sm:$0xf] %vm4295_vm6, %v4224_v45 }
 0x2d0   : > { %4738 = vst.msk [vmem:[%s6839_s2 + $0x128] sm:$0xff] %vm4718_vm9, %v4703_v42  ;;  %v4701_v57 = vmax.f32 %v6878_v43, 0.0  ;;  %v4226_v47 = vpop.permute.xlu1 %4225 }
 0x2d1   : > { %4309 = vst.msk [vmem:[#allocation3 + $0x34] sm:$0xf] %vm4295_vm6, %v4226_v47 }
 0x2d2   : > { %4736 = vst.msk [vmem:[%s6839_s2 + $0x108] sm:$0xff] %vm4718_vm9, %v4701_v57  ;;  %4789 = vrot.lane.b32.xlu1 %v4687_v22, %s5412_s18  ;;  %v4256_v51 = vpop.permute.xlu0 %4255 }
 0x2d3   : > { %4324 = vst.msk [vmem:[#allocation3 + $0x70] sm:$0xf] %vm4295_vm6, %v4256_v51 }
 0x2d4   : > { %v4258_v52 = vpop.permute.xlu1 %4257 }
 0x2d5   : > { %4325 = vst.msk [vmem:[#allocation3 + $0x74] sm:$0xf] %vm4295_vm6, %v4258_v52 }
 0x2d6   : > { %v4228_v53 = vpop.permute.xlu0 %4227 }
 0x2d7   : > { %4310 = vst.msk [vmem:[#allocation3 + $0x38] sm:$0xf] %vm4295_vm6, %v4228_v53 }
 0x2d8   : > { %v4230_v54 = vpop.permute.xlu1 %4229  ;;  %v5374_v55 = vld [vmem:[#allocation3 + $0x30] sm:$0xff]  }
 0x2d9   : > { %4311 = vst.msk [vmem:[#allocation3 + $0x3c] sm:$0xf] %vm4295_vm6, %v4230_v54  ;;  %5297 = vmatprep.mubr.msk.bf16.mxu0 %vm4470_vm8, %v5374_v55 }
 0x2da   : > { %v4260_v49 = vpop.permute.xlu0 %4259 }
 0x2db   : > { %4326 = vst.msk [vmem:[#allocation3 + $0x78] sm:$0xf] %vm4295_vm6, %v4260_v49 }
 0x2dc   : > { %v5375_v58 = vld [vmem:[#allocation3 + $0x70] sm:$0xff]   ;;  %v4262_v0 = vpop.permute.xlu1 %4261 }
 0x2dd   : > { %4327 = vst.msk [vmem:[#allocation3 + $0x7c] sm:$0xf] %vm4295_vm6, %v4262_v0  ;;  %5313 = vmatprep.mubr.msk.bf16.mxu1 %vm4470_vm8, %v5375_v58 }
 0x2e0   : > { %v5376_v36 = vld [vmem:[#allocation3 + $0x38] sm:$0xff]  }
 0x2e1   : > { %5298 = vmatmul.mubr.msk.bf16.gmra.mxu0 %vm4470_vm8, %v5376_v36 }
 0x2e4   : > { %v5377_v48 = vld [vmem:[#allocation3 + $0x78] sm:$0xff]  }
 0x2e5   : > { %5314 = vmatmul.mubr.msk.bf16.gmra.mxu1 %vm4470_vm8, %v5377_v48 }
 0x30b   : > { %v5291_v59 = vpop.f32.mrf.mxu0 }
 0x30c   : > { %v4582_v60 = vadd.f32 %v5291_v59, %v6830_v15 }
 0x30d   : > { %v4573_v62 = vpop.f32.mrf.mxu0 }
 0x30e   : > { %v4690_v56 = vmax.f32 %v4582_v60, 0.0  ;;  %v4574_v44 = vadd.f32 %v6830_v15, %v4573_v62 }
 0x30f   : > { %v5292_v50 = vpop.f32.mrf.mxu0  ;;  %v5307_v4 = vpop.f32.mrf.mxu1 }
 0x310   : > { %4725 = vst.msk [vmem:[%s6839_s2 + $0x60] sm:$0xff] %vm4718_vm9, %v4690_v56  ;;  %v4688_v5 = vmax.f32 %v4574_v44, 0.0  ;;  %v4585_v6 = vadd.f32 %v5292_v50, %v6830_v15  ;;  %v6910_v33 = vadd.f32 %v5307_v4, %v6830_v15 }
 0x311   : > { %v4576_v7 = vpop.f32.mrf.mxu0  ;;  %v4637_v8 = vpop.f32.mrf.mxu1 }
 0x312   : > { %4723 = vst.msk [vmem:[%s6839_s2 + $0x40] sm:$0xff] %vm4718_vm9, %v4688_v5  ;;  %v4691_v9 = vmax.f32 %v4585_v6, 0.0  ;;  %v4706_v30 = vmax.f32 %v6910_v33, 0.0  ;;  %v4577_v18 = vadd.f32 %v6830_v15, %v4576_v7  ;;  %v6917_v11 = vadd.f32 %v6830_v15, %v4637_v8  ;;  %4791 = vrot.lane.b32.xlu0 %v4688_v5, %s5412_s18 }
 0x313   : > { %v5308_v3 = vpop.f32.mrf.mxu1 }
 0x314   : > { %4726 = vst.msk [vmem:[%s6839_s2 + $0x68] sm:$0xff] %vm4718_vm9, %v4691_v9  ;;  %4741 = vst.msk [vmem:[%s6839_s2 + $0x160] sm:$0xff] %vm4718_vm9, %v4706_v30  ;;  %v4689_v13 = vmax.f32 %v4577_v18, 0.0  ;;  %v4704_v14 = vmax.f32 %v6917_v11, 0.0  ;;  %v6928_v1 = vadd.f32 %v5308_v3, %v6830_v15 }
 0x315   : > { %v4640_v10 = vpop.f32.mrf.mxu1 }
 0x316   : > { %4724 = vst.msk [vmem:[%s6839_s2 + $0x48] sm:$0xff] %vm4718_vm9, %v4689_v13  ;;  %4739 = vst.msk [vmem:[%s6839_s2 + $0x140] sm:$0xff] %vm4718_vm9, %v4704_v14  ;;  %v4707_v12 = vmax.f32 %v6928_v1, 0.0  ;;  %v6938_v2 = vadd.f32 %v6830_v15, %v4640_v10  ;;  %4793 = vrot.lane.b32.xlu1 %v4689_v13, %s5412_s18  ;;  %4795 = vrot.lane.b32.xlu0 %v4690_v56, %s5412_s18 }
 0x318   : > { %4742 = vst.msk [vmem:[%s6839_s2 + $0x168] sm:$0xff] %vm4718_vm9, %v4707_v12  ;;  %v4705_v16 = vmax.f32 %v6938_v2, 0.0 }
 0x31a   : > { %4740 = vst.msk [vmem:[%s6839_s2 + $0x148] sm:$0xff] %vm4718_vm9, %v4705_v16  ;;  %4797 = vrot.lane.b32.xlu1 %v4691_v9, %s5412_s18 }
 0x33c   : > { %v4784_v17 = vpop.permute.xlu0 %4783 }
 0x33d   : > { %5185 = vst.msk [vmem:[%s6839_s2 + $0x10] sm:$0xff] %vm4718_vm9, %v4784_v17 }
 0x340   : > { %v4786_v19 = vpop.permute.xlu1 %4785  ;;  %v4788_v20 = vpop.permute.xlu0 %4787 }
 0x341   : > { %5186 = vst.msk [vmem:[%s6839_s2 + $0x18] sm:$0xff] %vm4718_vm9, %v4786_v19  ;;  %5187 = vst.msk [vmem:[%s6839_s2 + $0x30] sm:$0xff] %vm4718_vm9, %v4788_v20 }
 0x344   : > { %v4790_v21 = vpop.permute.xlu1 %4789 }
 0x345   : > { %5188 = vst.msk [vmem:[%s6839_s2 + $0x38] sm:$0xff] %vm4718_vm9, %v4790_v21 }
 0x353   : > { %v5295_v23 = vpop.f32.mrf.mxu0 }
 0x354   : > { %v4598_v24 = vadd.f32 %v5295_v23, %v6830_v15 }
 0x355   : > { %v4589_v63 = vpop.f32.mrf.mxu0 }
 0x356   : > { %v4694_v26 = vmax.f32 %v4598_v24, 0.0  ;;  %v4590_v46 = vadd.f32 %v6830_v15, %v4589_v63 }
 0x357   : > { %v5296_v25 = vpop.f32.mrf.mxu0  ;;  %v5311_v27 = vpop.f32.mrf.mxu1 }
 0x358   : > { %4729 = vst.msk [vmem:[%s6839_s2 + $0xa0] sm:$0xff] %vm4718_vm9, %v4694_v26  ;;  %v4692_v29 = vmax.f32 %v4590_v46, 0.0  ;;  %v4601_v22 = vadd.f32 %v5296_v25, %v6830_v15  ;;  %v6966_v34 = vadd.f32 %v5311_v27, %v6830_v15 }
 0x359   : > { %v4592_v35 = vpop.f32.mrf.mxu0  ;;  %v4653_v37 = vpop.f32.mrf.mxu1 }
 0x35a   : > { %4727 = vst.msk [vmem:[%s6839_s2 + $0x80] sm:$0xff] %vm4718_vm9, %v4692_v29  ;;  %v4695_v38 = vmax.f32 %v4601_v22, 0.0  ;;  %v4710_v41 = vmax.f32 %v6966_v34, 0.0  ;;  %v4593_v31 = vadd.f32 %v6830_v15, %v4592_v35  ;;  %v6973_v45 = vadd.f32 %v6830_v15, %v4653_v37  ;;  %4799 = vrot.lane.b32.xlu0 %v4692_v29, %s5412_s18 }
 0x35b   : > { %v5312_v47 = vpop.f32.mrf.mxu1 }
 0x35c   : > { %4730 = vst.msk [vmem:[%s6839_s2 + $0xa8] sm:$0xff] %vm4718_vm9, %v4695_v38  ;;  %4745 = vst.msk [vmem:[%s6839_s2 + $0x1a0] sm:$0xff] %vm4718_vm9, %v4710_v41  ;;  %v4693_v51 = vmax.f32 %v4593_v31, 0.0  ;;  %v4708_v52 = vmax.f32 %v6973_v45, 0.0  ;;  %v6984_v53 = vadd.f32 %v5312_v47, %v6830_v15 }
 0x35d   : > { %v4656_v54 = vpop.f32.mrf.mxu1 }
 0x35e   : > { %4728 = vst.msk [vmem:[%s6839_s2 + $0x88] sm:$0xff] %vm4718_vm9, %v4693_v51  ;;  %4743 = vst.msk [vmem:[%s6839_s2 + $0x180] sm:$0xff] %vm4718_vm9, %v4708_v52  ;;  %v4711_v55 = vmax.f32 %v6984_v53, 0.0  ;;  %v4657_v49 = vadd.f32 %v6830_v15, %v4656_v54  ;;  %4801 = vrot.lane.b32.xlu1 %v4693_v51, %s5412_s18  ;;  %4803 = vrot.lane.b32.xlu0 %v4694_v26, %s5412_s18 }
 0x360   : > { %4746 = vst.msk [vmem:[%s6839_s2 + $0x1a8] sm:$0xff] %vm4718_vm9, %v4711_v55  ;;  %v4709_v58 = vmax.f32 %v4657_v49, 0.0 }
 0x362   : > { %4744 = vst.msk [vmem:[%s6839_s2 + $0x188] sm:$0xff] %vm4718_vm9, %v4709_v58  ;;  %4805 = vrot.lane.b32.xlu1 %v4695_v38, %s5412_s18 }
 0x384   : > { %v4792_v0 = vpop.permute.xlu0 %4791 }
 0x385   : > { %5189 = vst.msk [vmem:[%s6839_s2 + $0x50] sm:$0xff] %vm4718_vm9, %v4792_v0 }
 0x388   : > { %v4794_v36 = vpop.permute.xlu1 %4793  ;;  %v4796_v48 = vpop.permute.xlu0 %4795 }
 0x389   : > { %5190 = vst.msk [vmem:[%s6839_s2 + $0x58] sm:$0xff] %vm4718_vm9, %v4794_v36  ;;  %5191 = vst.msk [vmem:[%s6839_s2 + $0x70] sm:$0xff] %vm4718_vm9, %v4796_v48 }
 0x38c   : > { %v4798_v59 = vpop.permute.xlu1 %4797 }
 0x38d   : > { %5192 = vst.msk [vmem:[%s6839_s2 + $0x78] sm:$0xff] %vm4718_vm9, %v4798_v59 }
 0x3a1   : > { %v5299_v60 = vpop.f32.mrf.mxu0 }
 0x3a2   : > { %v4614_v62 = vadd.f32 %v5299_v60, %v6830_v15 }
 0x3a3   : > { %v4605_v56 = vpop.f32.mrf.mxu0 }
 0x3a4   : > { %v4698_v44 = vmax.f32 %v4614_v62, 0.0  ;;  %v4606_v50 = vadd.f32 %v6830_v15, %v4605_v56 }
 0x3a5   : > { %v5300_v4 = vpop.f32.mrf.mxu0  ;;  %v5315_v5 = vpop.f32.mrf.mxu1 }
 0x3a6   : > { %4733 = vst.msk [vmem:[%s6839_s2 + $0xe0] sm:$0xff] %vm4718_vm9, %v4698_v44  ;;  %v4696_v6 = vmax.f32 %v4606_v50, 0.0  ;;  %v4617_v7 = vadd.f32 %v5300_v4, %v6830_v15  ;;  %v4678_v8 = vadd.f32 %v5315_v5, %v6830_v15 }
 0x3a7   : > { %v4608_v9 = vpop.f32.mrf.mxu0  ;;  %v4669_v18 = vpop.f32.mrf.mxu1 }
 0x3a8   : > { %4731 = vst.msk [vmem:[%s6839_s2 + $0xc0] sm:$0xff] %vm4718_vm9, %v4696_v6  ;;  %v4699_v3 = vmax.f32 %v4617_v7, 0.0  ;;  %v4609_v13 = vadd.f32 %v6830_v15, %v4608_v9  ;;  %4807 = vrot.lane.b32.xlu0 %v4696_v6, %s5412_s18  ;;  %v4714_v10 = vmax.f32 %v4678_v8, 0.0  ;;  %v4670_v17 = vadd.f32 %v6830_v15, %v4669_v18 }
 0x3a9   : > { %v5316_v19 = vpop.f32.mrf.mxu1 }
 0x3aa   : > { %4734 = vst.msk [vmem:[%s6839_s2 + $0xe8] sm:$0xff] %vm4718_vm9, %v4699_v3  ;;  %v4697_v20 = vmax.f32 %v4609_v13, 0.0  ;;  %4749 = vst.msk [vmem:[%s6839_s2 + $0x1e0] sm:$0xff] %vm4718_vm9, %v4714_v10  ;;  %v4712_v21 = vmax.f32 %v4670_v17, 0.0  ;;  %v4681_v23 = vadd.f32 %v5316_v19, %v6830_v15 }
 0x3ab   : > { %v4672_v24 = vpop.f32.mrf.mxu1 }
 0x3ac   : > { %4732 = vst.msk [vmem:[%s6839_s2 + $0xc8] sm:$0xff] %vm4718_vm9, %v4697_v20  ;;  %4809 = vrot.lane.b32.xlu1 %v4697_v20, %s5412_s18  ;;  %4811 = vrot.lane.b32.xlu0 %v4698_v44, %s5412_s18  ;;  %4747 = vst.msk [vmem:[%s6839_s2 + $0x1c0] sm:$0xff] %vm4718_vm9, %v4712_v21  ;;  %v4715_v63 = vmax.f32 %v4681_v23, 0.0  ;;  %v4673_v26 = vadd.f32 %v6830_v15, %v4672_v24 }
 0x3ae   : > { %4750 = vst.msk [vmem:[%s6839_s2 + $0x1e8] sm:$0xff] %vm4718_vm9, %v4715_v63  ;;  %v4713_v46 = vmax.f32 %v4673_v26, 0.0 }
 0x3b0   : > { %4813 = vrot.lane.b32.xlu1 %v4699_v3, %s5412_s18  ;;  %4815 = vrot.lane.b32.xlu0 %v4700_v40, %s5412_s18  ;;  %4748 = vst.msk [vmem:[%s6839_s2 + $0x1c8] sm:$0xff] %vm4718_vm9, %v4713_v46 }
 0x3b4   : > { %4817 = vrot.lane.b32.xlu1 %v4701_v57, %s5412_s18  ;;  %4819 = vrot.lane.b32.xlu0 %v4702_v61, %s5412_s18 }
 0x3b8   : > { %4821 = vrot.lane.b32.xlu1 %v4703_v42, %s5412_s18  ;;  %4823 = vrot.lane.b32.xlu0 %v4704_v14, %s5412_s18 }
 0x3bc   : > { %4825 = vrot.lane.b32.xlu1 %v4705_v16, %s5412_s18  ;;  %4827 = vrot.lane.b32.xlu0 %v4706_v30, %s5412_s18 }
 0x3c0   : > { %4829 = vrot.lane.b32.xlu1 %v4707_v12, %s5412_s18  ;;  %4831 = vrot.lane.b32.xlu0 %v4708_v52, %s5412_s18 }
 0x3c4   : > { %4833 = vrot.lane.b32.xlu1 %v4709_v58, %s5412_s18  ;;  %4835 = vrot.lane.b32.xlu0 %v4710_v41, %s5412_s18 }
 0x3c8   : > { %4837 = vrot.lane.b32.xlu1 %v4711_v55, %s5412_s18  ;;  %4839 = vrot.lane.b32.xlu0 %v4712_v21, %s5412_s18 }
 0x3cc   : > { %v4800_v15 = vpop.permute.xlu0 %4799  ;;  %4841 = vrot.lane.b32.xlu1 %v4713_v46, %s5412_s18  ;;  %4843 = vrot.lane.b32.xlu0 %v4714_v10, %s5412_s18 }
 0x3cd   : > { %5193 = vst.msk [vmem:[%s6839_s2 + $0x90] sm:$0xff] %vm4718_vm9, %v4800_v15 }
 0x3d0   : > { %v4802_v28 = vpop.permute.xlu1 %4801  ;;  %v4804_v61 = vpop.permute.xlu0 %4803  ;;  %4845 = vrot.lane.b32.xlu1 %v4715_v63, %s5412_s18 }
 0x3d1   : > { %5194 = vst.msk [vmem:[%s6839_s2 + $0x98] sm:$0xff] %vm4718_vm9, %v4802_v28  ;;  %5195 = vst.msk [vmem:[%s6839_s2 + $0xb0] sm:$0xff] %vm4718_vm9, %v4804_v61 }
 0x3d4   : > { %v4806_v39 = vpop.permute.xlu1 %4805 }
 0x3d5   : > { %5196 = vst.msk [vmem:[%s6839_s2 + $0xb8] sm:$0xff] %vm4718_vm9, %v4806_v39 }
 0x41a   : > { %v4808_v40 = vpop.permute.xlu0 %4807 }
 0x41b   : > { %5197 = vst.msk [vmem:[%s6839_s2 + $0xd0] sm:$0xff] %vm4718_vm9, %v4808_v40 }
 0x41e   : > { %v4810_v32 = vpop.permute.xlu1 %4809  ;;  %v4812_v42 = vpop.permute.xlu0 %4811 }
 0x41f   : > { %5198 = vst.msk [vmem:[%s6839_s2 + $0xd8] sm:$0xff] %vm4718_vm9, %v4810_v32  ;;  %5199 = vst.msk [vmem:[%s6839_s2 + $0xf0] sm:$0xff] %vm4718_vm9, %v4812_v42 }
 0x422   : > { %v4814_v43 = vpop.permute.xlu1 %4813  ;;  %v4816_v57 = vpop.permute.xlu0 %4815 }
 0x423   : > { %5200 = vst.msk [vmem:[%s6839_s2 + $0xf8] sm:$0xff] %vm4718_vm9, %v4814_v43  ;;  %5201 = vst.msk [vmem:[%s6839_s2 + $0x110] sm:$0xff] %vm4718_vm9, %v4816_v57 }
 0x426   : > { %v4818_v33 = vpop.permute.xlu1 %4817  ;;  %v4820_v30 = vpop.permute.xlu0 %4819 }
 0x427   : > { %5202 = vst.msk [vmem:[%s6839_s2 + $0x118] sm:$0xff] %vm4718_vm9, %v4818_v33  ;;  %5203 = vst.msk [vmem:[%s6839_s2 + $0x130] sm:$0xff] %vm4718_vm9, %v4820_v30 }
 0x42a   : > { %v4822_v11 = vpop.permute.xlu1 %4821  ;;  %v4824_v14 = vpop.permute.xlu0 %4823 }
 0x42b   : > { %5204 = vst.msk [vmem:[%s6839_s2 + $0x138] sm:$0xff] %vm4718_vm9, %v4822_v11  ;;  %5205 = vst.msk [vmem:[%s6839_s2 + $0x150] sm:$0xff] %vm4718_vm9, %v4824_v14 }
 0x42e   : > { %v4826_v1 = vpop.permute.xlu1 %4825  ;;  %v4828_v12 = vpop.permute.xlu0 %4827 }
 0x42f   : > { %5206 = vst.msk [vmem:[%s6839_s2 + $0x158] sm:$0xff] %vm4718_vm9, %v4826_v1  ;;  %5207 = vst.msk [vmem:[%s6839_s2 + $0x170] sm:$0xff] %vm4718_vm9, %v4828_v12 }
 0x432   : > { %v4830_v2 = vpop.permute.xlu1 %4829  ;;  %v4832_v16 = vpop.permute.xlu0 %4831 }
 0x433   : > { %5208 = vst.msk [vmem:[%s6839_s2 + $0x178] sm:$0xff] %vm4718_vm9, %v4830_v2  ;;  %5209 = vst.msk [vmem:[%s6839_s2 + $0x190] sm:$0xff] %vm4718_vm9, %v4832_v16 }
 0x436   : > { %v4834_v25 = vpop.permute.xlu1 %4833  ;;  %v4836_v27 = vpop.permute.xlu0 %4835 }
 0x437   : > { %5210 = vst.msk [vmem:[%s6839_s2 + $0x198] sm:$0xff] %vm4718_vm9, %v4834_v25  ;;  %5211 = vst.msk [vmem:[%s6839_s2 + $0x1b0] sm:$0xff] %vm4718_vm9, %v4836_v27 }
 0x43a   : > { %v4838_v29 = vpop.permute.xlu1 %4837  ;;  %v4840_v22 = vpop.permute.xlu0 %4839 }
 0x43b   : > { %5212 = vst.msk [vmem:[%s6839_s2 + $0x1b8] sm:$0xff] %vm4718_vm9, %v4838_v29  ;;  %5213 = vst.msk [vmem:[%s6839_s2 + $0x1d0] sm:$0xff] %vm4718_vm9, %v4840_v22 }
 0x43e   : > { %v4842_v34 = vpop.permute.xlu1 %4841  ;;  %v4844_v35 = vpop.permute.xlu0 %4843 }
 0x43f   : > { %5214 = vst.msk [vmem:[%s6839_s2 + $0x1d8] sm:$0xff] %vm4718_vm9, %v4842_v34  ;;  %5215 = vst.msk [vmem:[%s6839_s2 + $0x1f0] sm:$0xff] %vm4718_vm9, %v4844_v35 }
 0x442   : > { %v4846_v37 = vpop.permute.xlu1 %4845 }
 0x443   : > { %5216 = vst.msk [vmem:[%s6839_s2 + $0x1f8] sm:$0xff] %vm4718_vm9, %v4846_v37 }
 0x444 PF: > { %s15_s20 = sadd.s32 1, %s5401_s20   ;;  %s7148_s18 = smov %s5397_s19 }
 0x445   : > { %p12_p5 = scmp.ge.s32.totalorder %s15_s20, 4   ;;  %s7149_s19 = smov %s7151_s1 }
 0x447   :  { %14 = sbr.rel (!%p12_p5) target bundleno = 2 (0x2), region = 99 }

</bundles_post_ra>
